<compile_context>
chip_gen: v7x
topology: tpu7x:2x2x1
jax: 0.10.0
libtpu: 0.0.40
codegen_flags: <defaults>
</compile_context>

<pallas_src>
import jax
import jax.numpy as jnp
from jax.experimental import pallas as pl
from jax.experimental.pallas import tpu as pltpu


def _round_up(x, m):
    return (x + m - 1) // m * m


# ------------------------------ param prep ----------------------------------

def init_params(key, width_height_axis_pools):
    """PyTorch-layout parameters (same tensors as the nn.Module)."""
    feat = int(64 * width_height_axis_pools["width"] * width_height_axis_pools["height"])
    keys = jax.random.split(key, 10)

    def scaled(k, shape, fan_in):
        return jax.random.normal(k, shape, jnp.float32) / jnp.sqrt(float(fan_in))

    return {
        "conv1_w": scaled(keys[0], (32, 3, 3, 3), 3 * 9),     # (Cout, Cin, kh, kw)
        "conv1_b": 0.01 * jax.random.normal(keys[1], (32,), jnp.float32),
        "conv2_w": scaled(keys[2], (64, 32, 3, 3), 32 * 9),
        "conv2_b": 0.01 * jax.random.normal(keys[3], (64,), jnp.float32),
        "fc1_w": scaled(keys[4], (feat, 512), feat),
        "fc1_b": 0.01 * jax.random.normal(keys[5], (512,), jnp.float32),
        "fc2_w": scaled(keys[6], (512, 128), 512),
        "fc2_b": 0.01 * jax.random.normal(keys[7], (128,), jnp.float32),
        "fc3_w": scaled(keys[8], (128, 5), 128),
        "fc3_b": 0.01 * jax.random.normal(keys[9], (5,), jnp.float32),
    }


def prepare_kernel_params(params, width_height_axis_pools):
    """One-time conversion of PyTorch-layout params to kernel layout.

    * conv weights (Cout, Cin, 3, 3) -> 9 taps of (Cin, Cout)
    * fc1 rows permuted from torch NCHW-flatten order to position-major (HWC)
      order and reshaped to (n_pos, C2, 512): the flatten permutation becomes a
      free, one-time weight relabel instead of a runtime transpose.
    * fc2 and fc3 (no ReLU between them) folded into one (512, 5) linear layer,
      then zero-padded to 128 output lanes (lane-dense store).
    """
    Ho2 = int(width_height_axis_pools["height"])
    Wo2 = int(width_height_axis_pools["width"])
    n_pos = Ho2 * Wo2

    w1 = params["conv1_w"]                      # (C1, Cin, 3, 3)
    C1, Cin = w1.shape[0], w1.shape[1]
    w2 = params["conv2_w"]                      # (C2, C1, 3, 3)
    C2 = w2.shape[0]

    w1_taps = jnp.transpose(w1, (2, 3, 1, 0)).reshape(9, Cin, C1)
    w2_taps = jnp.transpose(w2, (2, 3, 1, 0)).reshape(9, C1, C2)

    fc1_w = params["fc1_w"]                     # rows in torch NCHW-flatten order
    assert fc1_w.shape[0] == C2 * n_pos
    # perm[pos*C2 + c] = c*n_pos + pos  (torch flatten index of channel c at pos)
    perm = (jnp.arange(n_pos)[:, None] + n_pos * jnp.arange(C2)[None, :]).reshape(-1)
    fc1w = fc1_w[perm, :].reshape(n_pos, C2, fc1_w.shape[1])

    # Fold fc2 ∘ fc3 (both linear, no nonlinearity in between).
    fc23_w = params["fc2_w"] @ params["fc3_w"]                      # (512, 5)
    fc23_b = params["fc2_b"] @ params["fc3_w"] + params["fc3_b"]    # (5,)
    n_cls = fc23_w.shape[1]
    F3 = _round_up(n_cls, 128)
    fc23w = jnp.pad(fc23_w, ((0, 0), (0, F3 - n_cls)))
    fc23b = jnp.pad(fc23_b, (0, F3 - n_cls)).reshape(1, F3)

    return {
        "w1": w1_taps, "b1": params["conv1_b"].reshape(1, C1),
        "w2": w2_taps, "b2": params["conv2_b"].reshape(1, C2),
        "fc1w": fc1w, "fc1b": params["fc1_b"].reshape(1, -1),
        "fc23w": fc23w, "fc23b": fc23b,
    }


# --------------------------- fused forward kernel ----------------------------

def multi_myconvnet_forward(kparams, x_nchw, num_classes=5):
    N, Cin, H, W = x_nchw.shape
    C1 = kparams["b1"].shape[1]
    C2 = kparams["b2"].shape[1]
    F3 = kparams["fc23b"].shape[1]           # lane-padded classifier width

    Hp, Wp = H + 2, W + 2                    # conv1 padded spatial
    Ho1, Wo1 = H // 3, W // 3                # after MaxPool2d(3, 3)
    H2, W2 = Ho1, Wo1
    Hp2, Wp2 = H2 + 2, W2 + 2                # conv2 padded spatial
    Ho2, Wo2 = H2 // 2, W2 // 2              # after MaxPool2d(2, 2)
    n_pos = Ho2 * Wo2
    assert kparams["fc1w"].shape[0] == n_pos, "fc1 weight / input size mismatch"

    L1 = H * Wp                              # conv1 rows, flat index = y*Wp + x
    L2 = H2 * Wp2                            # conv2 rows, flat index = y*Wp2 + x
    PAD1 = _round_up(Hp * Wp + 2, 8)         # +2 keeps the last tap slice in-bounds
    PAD2 = _round_up(Hp2 * Wp2 + 2, 8)

    # Tiny XLA-side input prep: NCHW -> padded, row-flattened NHWC (a few KB).
    x_nhwc = jnp.transpose(x_nchw, (0, 2, 3, 1)).astype(jnp.float32)
    x_pad = jnp.pad(x_nhwc, ((0, 0), (1, 1), (1, 1), (0, 0)))
    x_flat = x_pad.reshape(N, Hp * Wp, Cin)
    x_flat = jnp.pad(x_flat, ((0, 0), (0, PAD1 - Hp * Wp), (0, 0)))

    def kernel(x_ref, w1_ref, b1_ref, w2_ref, b2_ref,
               fc1w_ref, fc1b_ref, fc23w_ref, fc23b_ref,
               out_ref, xp2_ref):
        # ---- conv1 (3x3, pad 1) + ReLU: 9 accumulated K=Cin matmuls ----------
        xin = x_ref[0]                                       # (PAD1, Cin)
        acc1 = None
        for ky in range(3):
            for kx in range(3):
                off = ky * Wp + kx
                t = jnp.dot(xin[off:off + L1, :], w1_ref[ky * 3 + kx],
                            preferred_element_type=jnp.float32)
                acc1 = t if acc1 is None else acc1 + t
        a1 = jnp.maximum(acc1 + b1_ref[...], 0.0)            # (L1, C1)

        # ---- MaxPool2d(3,3) fused in-register; scatter pooled rows into the
        # zero-padded, row-flattened conv2 input scratch (borders re-zeroed each
        # step so it is megacore-safe) -------------------------------------------
        xp2_ref[...] = jnp.zeros_like(xp2_ref)
        for py in range(Ho1):
            r0 = (3 * py) * Wp
            m = jnp.maximum(
                jnp.maximum(a1[r0:r0 + W, :], a1[r0 + Wp:r0 + Wp + W, :]),
                a1[r0 + 2 * Wp:r0 + 2 * Wp + W, :])          # (W, C1)
            for px in range(Wo1):
                c = 3 * px
                p = jnp.maximum(jnp.maximum(m[c:c + 1, :], m[c + 1:c + 2, :]),
                                m[c + 2:c + 3, :])           # (1, C1)
                dst = (py + 1) * Wp2 + (px + 1)
                xp2_ref[dst:dst + 1, :] = p

        # ---- conv2 (3x3, pad 1) + ReLU ---------------------------------------
        x2 = xp2_ref[...]                                    # (PAD2, C1)
        acc2 = None
        for ky in range(3):
            for kx in range(3):
                off = ky * Wp2 + kx
                t = jnp.dot(x2[off:off + L2, :], w2_ref[ky * 3 + kx],
                            preferred_element_type=jnp.float32)
                acc2 = t if acc2 is None else acc2 + t
        a2 = jnp.maximum(acc2 + b2_ref[...], 0.0)            # (L2, C2)

        # ---- MaxPool2d(2,2) + flatten + fc1 fused (fc1 rows pre-permuted so
        # position-major blocks reproduce torch's NCHW .view(N, -1)); the
        # y-direction max is hoisted out of the per-position loop ----------------
        h = None
        for qy in range(Ho2):
            rA = (2 * qy) * Wp2
            rB = rA + Wp2
            m = jnp.maximum(a2[rA:rA + W2, :], a2[rB:rB + W2, :])   # (W2, C2)
            for qx in range(Wo2):
                c = 2 * qx
                p = jnp.maximum(m[c:c + 1, :], m[c + 1:c + 2, :])    # (1, C2)
                t = jnp.dot(p, fc1w_ref[qy * Wo2 + qx],
                            preferred_element_type=jnp.float32)      # (1, F1)
                h = t if h is None else h + t
        h1 = jnp.maximum(h + fc1b_ref[...], 0.0)                     # (1, F1)

        # ---- fc2 ∘ fc3 folded into a single linear layer at prep time ---------
        o = jnp.dot(h1, fc23w_ref[...],
                    preferred_element_type=jnp.float32) + fc23b_ref[...]
        out_ref[0] = o                                        # (1, F3) lane-dense

    def full_spec(shape):
        nd = len(shape)
        return pl.BlockSpec(shape, lambda n, _nd=nd: (0,) * _nd)

    in_specs = [
        pl.BlockSpec((1, PAD1, Cin), lambda n: (n, 0, 0)),
        full_spec(kparams["w1"].shape), full_spec(kparams["b1"].shape),
        full_spec(kparams["w2"].shape), full_spec(kparams["b2"].shape),
        full_spec(kparams["fc1w"].shape), full_spec(kparams["fc1b"].shape),
        full_spec(kparams["fc23w"].shape), full_spec(kparams["fc23b"].shape),
    ]

    out = pl.pallas_call(
        kernel,
        out_shape=jax.ShapeDtypeStruct((N, 1, F3), jnp.float32),
        grid=(N,),
        in_specs=in_specs,
        out_specs=pl.BlockSpec((1, 1, F3), lambda n: (n, 0, 0)),
        scratch_shapes=[pltpu.VMEM((PAD2, C1), jnp.float32)],
        compiler_params=pltpu.CompilerParams(
            dimension_semantics=("parallel",)),   # megacore: split batch across TCs
    )(x_flat, kparams["w1"], kparams["b1"], kparams["w2"], kparams["b2"],
      kparams["fc1w"], kparams["fc1b"], kparams["fc23w"], kparams["fc23b"])

    return out[:, 0, :num_classes]


# ------------------------------ pure-JAX reference ---------------------------

def reference_forward(params, x_nchw):
    x = jnp.transpose(x_nchw, (0, 2, 3, 1))

    def conv(x, w, b):
        w_hwio = jnp.transpose(w, (2, 3, 1, 0))
        y = jax.lax.conv_general_dilated(
            x, w_hwio, (1, 1), "SAME",
            dimension_numbers=("NHWC", "HWIO", "NHWC"))
        return jax.nn.relu(y + b)

    def maxpool(x, p):
        return jax.lax.reduce_window(
            x, -jnp.inf, jax.lax.max, (1, p, p, 1), (1, p, p, 1), "VALID")

    x1 = maxpool(conv(x, params["conv1_w"], params["conv1_b"]), 3)
    x2 = maxpool(conv(x1, params["conv2_w"], params["conv2_b"]), 2)
    flat = jnp.transpose(x2, (0, 3, 1, 2)).reshape(x2.shape[0], -1)
    h = jax.nn.relu(flat @ params["fc1_w"] + params["fc1_b"])
    h = h @ params["fc2_w"] + params["fc2_b"]
    return h @ params["fc3_w"] + params["fc3_b"]


# ---------------------------------- main -------------------------------------

if __name__ == "__main__":
    key = jax.random.PRNGKey(0)
    k_param, k_x = jax.random.split(key)

    # Input 12x12 -> MaxPool(3) -> 4x4 -> MaxPool(2) -> 2x2  => width=2, height=2.
    width_height_axis_pools = {"width": 2, "height": 2}
    params = init_params(k_param, width_height_axis_pools)
    kparams = prepare_kernel_params(params, width_height_axis_pools)  # one-time

    x = jax.random.normal(k_x, (2, 3, 12, 12), jnp.float32)   # NCHW, like PyTorch

    fwd = jax.jit(multi_myconvnet_forward)
    out = jax.block_until_ready(fwd(kparams, x))

    ref = reference_forward(params, x)
    assert out.shape == (2, 5), out.shape
    assert jnp.allclose(out, ref, rtol=1e-3, atol=1e-3), "mismatch vs JAX reference"

    print("KERNEL_OK")
</pallas_src>

<mosaic_0001>
module attributes {stable_mosaic.version = 11 : i64} {
  func.func @kernel(%arg0: i32, %arg1: memref<1x200x3xf32, #tpu.memory_space<vmem>>, %arg2: memref<9x3x32xf32, #tpu.memory_space<vmem>>, %arg3: memref<1x32xf32, #tpu.memory_space<vmem>>, %arg4: memref<9x32x64xf32, #tpu.memory_space<vmem>>, %arg5: memref<1x64xf32, #tpu.memory_space<vmem>>, %arg6: memref<4x64x512xf32, #tpu.memory_space<vmem>>, %arg7: memref<1x512xf32, #tpu.memory_space<vmem>>, %arg8: memref<512x128xf32, #tpu.memory_space<vmem>>, %arg9: memref<1x128xf32, #tpu.memory_space<vmem>>, %arg10: memref<1x1x128xf32, #tpu.memory_space<vmem>>, %arg11: memref<40x32xf32, #tpu.memory_space<vmem>>) attributes {dimension_semantics = [#tpu.dimension_semantics<parallel>], iteration_bounds = array<i64: 2>, scalar_prefetch = 0 : i64, scratch_operands = 1 : i64, tpu.core_type = #tpu.core_type<tc>, window_params = [{transform_indices = @transform_0, window_bounds = array<i64: 1, 200, 3>}, {pipeline_mode = #tpu.pipeline_mode<synchronous>, transform_indices = @transform_1, window_bounds = array<i64: 9, 3, 32>}, {pipeline_mode = #tpu.pipeline_mode<synchronous>, transform_indices = @transform_2, window_bounds = array<i64: 1, 32>}, {pipeline_mode = #tpu.pipeline_mode<synchronous>, transform_indices = @transform_3, window_bounds = array<i64: 9, 32, 64>}, {pipeline_mode = #tpu.pipeline_mode<synchronous>, transform_indices = @transform_4, window_bounds = array<i64: 1, 64>}, {pipeline_mode = #tpu.pipeline_mode<synchronous>, transform_indices = @transform_5, window_bounds = array<i64: 4, 64, 512>}, {pipeline_mode = #tpu.pipeline_mode<synchronous>, transform_indices = @transform_6, window_bounds = array<i64: 1, 512>}, {pipeline_mode = #tpu.pipeline_mode<synchronous>, transform_indices = @transform_7, window_bounds = array<i64: 512, 128>}, {pipeline_mode = #tpu.pipeline_mode<synchronous>, transform_indices = @transform_8, window_bounds = array<i64: 1, 128>}, {transform_indices = @transform_9, window_bounds = array<i64: 1, 1, 128>}]} {
    %c0 = arith.constant 0 : index
    %c0_0 = arith.constant 0 : index
    %c0_1 = arith.constant 0 : index
    %0 = vector.load %arg1[%c0, %c0_0, %c0_1] : memref<1x200x3xf32, #tpu.memory_space<vmem>>, vector<1x200x3xf32>
    %1 = vector.shape_cast %0 : vector<1x200x3xf32> to vector<200x3xf32>
    %2 = vector.extract_strided_slice %1 {offsets = [0, 0], sizes = [168, 3], strides = [1, 1]} : vector<200x3xf32> to vector<168x3xf32>
    %c0_2 = arith.constant 0 : index
    %c0_3 = arith.constant 0 : index
    %c0_4 = arith.constant 0 : index
    %3 = vector.load %arg2[%c0_2, %c0_3, %c0_4] : memref<9x3x32xf32, #tpu.memory_space<vmem>>, vector<1x3x32xf32>
    %4 = vector.shape_cast %3 : vector<1x3x32xf32> to vector<3x32xf32>
    %cst = arith.constant dense<0.000000e+00> : vector<168x32xf32>
    %5 = tpu.matmul %2, %4, %cst {dimension_numbers = #tpu.dot_dimension_numbers<[1], [0], [0], [1], [0, 0, 1, 1], [], []>} : vector<168x3xf32>, vector<3x32xf32>, vector<168x32xf32> -> vector<168x32xf32>
    %6 = vector.extract_strided_slice %1 {offsets = [1, 0], sizes = [168, 3], strides = [1, 1]} : vector<200x3xf32> to vector<168x3xf32>
    %c1 = arith.constant 1 : index
    %c0_5 = arith.constant 0 : index
    %c0_6 = arith.constant 0 : index
    %7 = vector.load %arg2[%c1, %c0_5, %c0_6] : memref<9x3x32xf32, #tpu.memory_space<vmem>>, vector<1x3x32xf32>
    %8 = vector.shape_cast %7 : vector<1x3x32xf32> to vector<3x32xf32>
    %cst_7 = arith.constant dense<0.000000e+00> : vector<168x32xf32>
    %9 = tpu.matmul %6, %8, %cst_7 {dimension_numbers = #tpu.dot_dimension_numbers<[1], [0], [0], [1], [0, 0, 1, 1], [], []>} : vector<168x3xf32>, vector<3x32xf32>, vector<168x32xf32> -> vector<168x32xf32>
    %10 = arith.addf %5, %9 : vector<168x32xf32>
    %11 = vector.extract_strided_slice %1 {offsets = [2, 0], sizes = [168, 3], strides = [1, 1]} : vector<200x3xf32> to vector<168x3xf32>
    %c2 = arith.constant 2 : index
    %c0_8 = arith.constant 0 : index
    %c0_9 = arith.constant 0 : index
    %12 = vector.load %arg2[%c2, %c0_8, %c0_9] : memref<9x3x32xf32, #tpu.memory_space<vmem>>, vector<1x3x32xf32>
    %13 = vector.shape_cast %12 : vector<1x3x32xf32> to vector<3x32xf32>
    %cst_10 = arith.constant dense<0.000000e+00> : vector<168x32xf32>
    %14 = tpu.matmul %11, %13, %cst_10 {dimension_numbers = #tpu.dot_dimension_numbers<[1], [0], [0], [1], [0, 0, 1, 1], [], []>} : vector<168x3xf32>, vector<3x32xf32>, vector<168x32xf32> -> vector<168x32xf32>
    %15 = arith.addf %10, %14 : vector<168x32xf32>
    %16 = vector.extract_strided_slice %1 {offsets = [14, 0], sizes = [168, 3], strides = [1, 1]} : vector<200x3xf32> to vector<168x3xf32>
    %c3 = arith.constant 3 : index
    %c0_11 = arith.constant 0 : index
    %c0_12 = arith.constant 0 : index
    %17 = vector.load %arg2[%c3, %c0_11, %c0_12] : memref<9x3x32xf32, #tpu.memory_space<vmem>>, vector<1x3x32xf32>
    %18 = vector.shape_cast %17 : vector<1x3x32xf32> to vector<3x32xf32>
    %cst_13 = arith.constant dense<0.000000e+00> : vector<168x32xf32>
    %19 = tpu.matmul %16, %18, %cst_13 {dimension_numbers = #tpu.dot_dimension_numbers<[1], [0], [0], [1], [0, 0, 1, 1], [], []>} : vector<168x3xf32>, vector<3x32xf32>, vector<168x32xf32> -> vector<168x32xf32>
    %20 = arith.addf %15, %19 : vector<168x32xf32>
    %21 = vector.extract_strided_slice %1 {offsets = [15, 0], sizes = [168, 3], strides = [1, 1]} : vector<200x3xf32> to vector<168x3xf32>
    %c4 = arith.constant 4 : index
    %c0_14 = arith.constant 0 : index
    %c0_15 = arith.constant 0 : index
    %22 = vector.load %arg2[%c4, %c0_14, %c0_15] : memref<9x3x32xf32, #tpu.memory_space<vmem>>, vector<1x3x32xf32>
    %23 = vector.shape_cast %22 : vector<1x3x32xf32> to vector<3x32xf32>
    %cst_16 = arith.constant dense<0.000000e+00> : vector<168x32xf32>
    %24 = tpu.matmul %21, %23, %cst_16 {dimension_numbers = #tpu.dot_dimension_numbers<[1], [0], [0], [1], [0, 0, 1, 1], [], []>} : vector<168x3xf32>, vector<3x32xf32>, vector<168x32xf32> -> vector<168x32xf32>
    %25 = arith.addf %20, %24 : vector<168x32xf32>
    %26 = vector.extract_strided_slice %1 {offsets = [16, 0], sizes = [168, 3], strides = [1, 1]} : vector<200x3xf32> to vector<168x3xf32>
    %c5 = arith.constant 5 : index
    %c0_17 = arith.constant 0 : index
    %c0_18 = arith.constant 0 : index
    %27 = vector.load %arg2[%c5, %c0_17, %c0_18] : memref<9x3x32xf32, #tpu.memory_space<vmem>>, vector<1x3x32xf32>
    %28 = vector.shape_cast %27 : vector<1x3x32xf32> to vector<3x32xf32>
    %cst_19 = arith.constant dense<0.000000e+00> : vector<168x32xf32>
    %29 = tpu.matmul %26, %28, %cst_19 {dimension_numbers = #tpu.dot_dimension_numbers<[1], [0], [0], [1], [0, 0, 1, 1], [], []>} : vector<168x3xf32>, vector<3x32xf32>, vector<168x32xf32> -> vector<168x32xf32>
    %30 = arith.addf %25, %29 : vector<168x32xf32>
    %31 = vector.extract_strided_slice %1 {offsets = [28, 0], sizes = [168, 3], strides = [1, 1]} : vector<200x3xf32> to vector<168x3xf32>
    %c6 = arith.constant 6 : index
    %c0_20 = arith.constant 0 : index
    %c0_21 = arith.constant 0 : index
    %32 = vector.load %arg2[%c6, %c0_20, %c0_21] : memref<9x3x32xf32, #tpu.memory_space<vmem>>, vector<1x3x32xf32>
    %33 = vector.shape_cast %32 : vector<1x3x32xf32> to vector<3x32xf32>
    %cst_22 = arith.constant dense<0.000000e+00> : vector<168x32xf32>
    %34 = tpu.matmul %31, %33, %cst_22 {dimension_numbers = #tpu.dot_dimension_numbers<[1], [0], [0], [1], [0, 0, 1, 1], [], []>} : vector<168x3xf32>, vector<3x32xf32>, vector<168x32xf32> -> vector<168x32xf32>
    %35 = arith.addf %30, %34 : vector<168x32xf32>
    %36 = vector.extract_strided_slice %1 {offsets = [29, 0], sizes = [168, 3], strides = [1, 1]} : vector<200x3xf32> to vector<168x3xf32>
    %c7 = arith.constant 7 : index
    %c0_23 = arith.constant 0 : index
    %c0_24 = arith.constant 0 : index
    %37 = vector.load %arg2[%c7, %c0_23, %c0_24] : memref<9x3x32xf32, #tpu.memory_space<vmem>>, vector<1x3x32xf32>
    %38 = vector.shape_cast %37 : vector<1x3x32xf32> to vector<3x32xf32>
    %cst_25 = arith.constant dense<0.000000e+00> : vector<168x32xf32>
    %39 = tpu.matmul %36, %38, %cst_25 {dimension_numbers = #tpu.dot_dimension_numbers<[1], [0], [0], [1], [0, 0, 1, 1], [], []>} : vector<168x3xf32>, vector<3x32xf32>, vector<168x32xf32> -> vector<168x32xf32>
    %40 = arith.addf %35, %39 : vector<168x32xf32>
    %41 = vector.extract_strided_slice %1 {offsets = [30, 0], sizes = [168, 3], strides = [1, 1]} : vector<200x3xf32> to vector<168x3xf32>
    %c8 = arith.constant 8 : index
    %c0_26 = arith.constant 0 : index
    %c0_27 = arith.constant 0 : index
    %42 = vector.load %arg2[%c8, %c0_26, %c0_27] : memref<9x3x32xf32, #tpu.memory_space<vmem>>, vector<1x3x32xf32>
    %43 = vector.shape_cast %42 : vector<1x3x32xf32> to vector<3x32xf32>
    %cst_28 = arith.constant dense<0.000000e+00> : vector<168x32xf32>
    %44 = tpu.matmul %41, %43, %cst_28 {dimension_numbers = #tpu.dot_dimension_numbers<[1], [0], [0], [1], [0, 0, 1, 1], [], []>} : vector<168x3xf32>, vector<3x32xf32>, vector<168x32xf32> -> vector<168x32xf32>
    %45 = arith.addf %40, %44 : vector<168x32xf32>
    %c0_29 = arith.constant 0 : index
    %c0_30 = arith.constant 0 : index
    %46 = vector.load %arg3[%c0_29, %c0_30] : memref<1x32xf32, #tpu.memory_space<vmem>>, vector<1x32xf32>
    %47 = vector.broadcast %46 : vector<1x32xf32> to vector<168x32xf32>
    %48 = arith.addf %45, %47 : vector<168x32xf32>
    %cst_31 = arith.constant 0.000000e+00 : f32
    %49 = vector.broadcast %cst_31 : f32 to vector<168x32xf32>
    %50 = arith.maximumf %48, %49 : vector<168x32xf32>
    %cst_32 = arith.constant 0.000000e+00 : f32
    %51 = vector.broadcast %cst_32 : f32 to vector<40x32xf32>
    %c0_33 = arith.constant 0 : index
    %c0_34 = arith.constant 0 : index
    %52 = vector.load %arg11[%c0_33, %c0_34] : memref<40x32xf32, #tpu.memory_space<vmem>>, vector<40x32xf32>
    tpu.vector_store %arg11[%c0_33, %c0_34], %51 {strides = array<i32>} : memref<40x32xf32, #tpu.memory_space<vmem>>, vector<40x32xf32>,
    %53 = vector.extract_strided_slice %50 {offsets = [0, 0], sizes = [12, 32], strides = [1, 1]} : vector<168x32xf32> to vector<12x32xf32>
    %54 = vector.extract_strided_slice %50 {offsets = [14, 0], sizes = [12, 32], strides = [1, 1]} : vector<168x32xf32> to vector<12x32xf32>
    %55 = arith.maximumf %53, %54 : vector<12x32xf32>
    %56 = vector.extract_strided_slice %50 {offsets = [28, 0], sizes = [12, 32], strides = [1, 1]} : vector<168x32xf32> to vector<12x32xf32>
    %57 = arith.maximumf %55, %56 : vector<12x32xf32>
    %58 = vector.extract_strided_slice %57 {offsets = [0, 0], sizes = [1, 32], strides = [1, 1]} : vector<12x32xf32> to vector<1x32xf32>
    %59 = vector.extract_strided_slice %57 {offsets = [1, 0], sizes = [1, 32], strides = [1, 1]} : vector<12x32xf32> to vector<1x32xf32>
    %60 = arith.maximumf %58, %59 : vector<1x32xf32>
    %61 = vector.extract_strided_slice %57 {offsets = [2, 0], sizes = [1, 32], strides = [1, 1]} : vector<12x32xf32> to vector<1x32xf32>
    %62 = arith.maximumf %60, %61 : vector<1x32xf32>
    %c7_35 = arith.constant 7 : index
    %c0_36 = arith.constant 0 : index
    %63 = vector.load %arg11[%c7_35, %c0_36] : memref<40x32xf32, #tpu.memory_space<vmem>>, vector<1x32xf32>
    tpu.vector_store %arg11[%c7_35, %c0_36], %62 {strides = array<i32>} : memref<40x32xf32, #tpu.memory_space<vmem>>, vector<1x32xf32>,
    %64 = vector.extract_strided_slice %57 {offsets = [3, 0], sizes = [1, 32], strides = [1, 1]} : vector<12x32xf32> to vector<1x32xf32>
    %65 = vector.extract_strided_slice %57 {offsets = [4, 0], sizes = [1, 32], strides = [1, 1]} : vector<12x32xf32> to vector<1x32xf32>
    %66 = arith.maximumf %64, %65 : vector<1x32xf32>
    %67 = vector.extract_strided_slice %57 {offsets = [5, 0], sizes = [1, 32], strides = [1, 1]} : vector<12x32xf32> to vector<1x32xf32>
    %68 = arith.maximumf %66, %67 : vector<1x32xf32>
    %c8_37 = arith.constant 8 : index
    %c0_38 = arith.constant 0 : index
    %69 = vector.load %arg11[%c8_37, %c0_38] : memref<40x32xf32, #tpu.memory_space<vmem>>, vector<1x32xf32>
    tpu.vector_store %arg11[%c8_37, %c0_38], %68 {strides = array<i32>} : memref<40x32xf32, #tpu.memory_space<vmem>>, vector<1x32xf32>,
    %70 = vector.extract_strided_slice %57 {offsets = [6, 0], sizes = [1, 32], strides = [1, 1]} : vector<12x32xf32> to vector<1x32xf32>
    %71 = vector.extract_strided_slice %57 {offsets = [7, 0], sizes = [1, 32], strides = [1, 1]} : vector<12x32xf32> to vector<1x32xf32>
    %72 = arith.maximumf %70, %71 : vector<1x32xf32>
    %73 = vector.extract_strided_slice %57 {offsets = [8, 0], sizes = [1, 32], strides = [1, 1]} : vector<12x32xf32> to vector<1x32xf32>
    %74 = arith.maximumf %72, %73 : vector<1x32xf32>
    %c9 = arith.constant 9 : index
    %c0_39 = arith.constant 0 : index
    %75 = vector.load %arg11[%c9, %c0_39] : memref<40x32xf32, #tpu.memory_space<vmem>>, vector<1x32xf32>
    tpu.vector_store %arg11[%c9, %c0_39], %74 {strides = array<i32>} : memref<40x32xf32, #tpu.memory_space<vmem>>, vector<1x32xf32>,
    %76 = vector.extract_strided_slice %57 {offsets = [9, 0], sizes = [1, 32], strides = [1, 1]} : vector<12x32xf32> to vector<1x32xf32>
    %77 = vector.extract_strided_slice %57 {offsets = [10, 0], sizes = [1, 32], strides = [1, 1]} : vector<12x32xf32> to vector<1x32xf32>
    %78 = arith.maximumf %76, %77 : vector<1x32xf32>
    %79 = vector.extract_strided_slice %57 {offsets = [11, 0], sizes = [1, 32], strides = [1, 1]} : vector<12x32xf32> to vector<1x32xf32>
    %80 = arith.maximumf %78, %79 : vector<1x32xf32>
    %c10 = arith.constant 10 : index
    %c0_40 = arith.constant 0 : index
    %81 = vector.load %arg11[%c10, %c0_40] : memref<40x32xf32, #tpu.memory_space<vmem>>, vector<1x32xf32>
    tpu.vector_store %arg11[%c10, %c0_40], %80 {strides = array<i32>} : memref<40x32xf32, #tpu.memory_space<vmem>>, vector<1x32xf32>,
    %82 = vector.extract_strided_slice %50 {offsets = [42, 0], sizes = [12, 32], strides = [1, 1]} : vector<168x32xf32> to vector<12x32xf32>
    %83 = vector.extract_strided_slice %50 {offsets = [56, 0], sizes = [12, 32], strides = [1, 1]} : vector<168x32xf32> to vector<12x32xf32>
    %84 = arith.maximumf %82, %83 : vector<12x32xf32>
    %85 = vector.extract_strided_slice %50 {offsets = [70, 0], sizes = [12, 32], strides = [1, 1]} : vector<168x32xf32> to vector<12x32xf32>
    %86 = arith.maximumf %84, %85 : vector<12x32xf32>
    %87 = vector.extract_strided_slice %86 {offsets = [0, 0], sizes = [1, 32], strides = [1, 1]} : vector<12x32xf32> to vector<1x32xf32>
    %88 = vector.extract_strided_slice %86 {offsets = [1, 0], sizes = [1, 32], strides = [1, 1]} : vector<12x32xf32> to vector<1x32xf32>
    %89 = arith.maximumf %87, %88 : vector<1x32xf32>
    %90 = vector.extract_strided_slice %86 {offsets = [2, 0], sizes = [1, 32], strides = [1, 1]} : vector<12x32xf32> to vector<1x32xf32>
    %91 = arith.maximumf %89, %90 : vector<1x32xf32>
    %c13 = arith.constant 13 : index
    %c0_41 = arith.constant 0 : index
    %92 = vector.load %arg11[%c13, %c0_41] : memref<40x32xf32, #tpu.memory_space<vmem>>, vector<1x32xf32>
    tpu.vector_store %arg11[%c13, %c0_41], %91 {strides = array<i32>} : memref<40x32xf32, #tpu.memory_space<vmem>>, vector<1x32xf32>,
    %93 = vector.extract_strided_slice %86 {offsets = [3, 0], sizes = [1, 32], strides = [1, 1]} : vector<12x32xf32> to vector<1x32xf32>
    %94 = vector.extract_strided_slice %86 {offsets = [4, 0], sizes = [1, 32], strides = [1, 1]} : vector<12x32xf32> to vector<1x32xf32>
    %95 = arith.maximumf %93, %94 : vector<1x32xf32>
    %96 = vector.extract_strided_slice %86 {offsets = [5, 0], sizes = [1, 32], strides = [1, 1]} : vector<12x32xf32> to vector<1x32xf32>
    %97 = arith.maximumf %95, %96 : vector<1x32xf32>
    %c14 = arith.constant 14 : index
    %c0_42 = arith.constant 0 : index
    %98 = vector.load %arg11[%c14, %c0_42] : memref<40x32xf32, #tpu.memory_space<vmem>>, vector<1x32xf32>
    tpu.vector_store %arg11[%c14, %c0_42], %97 {strides = array<i32>} : memref<40x32xf32, #tpu.memory_space<vmem>>, vector<1x32xf32>,
    %99 = vector.extract_strided_slice %86 {offsets = [6, 0], sizes = [1, 32], strides = [1, 1]} : vector<12x32xf32> to vector<1x32xf32>
    %100 = vector.extract_strided_slice %86 {offsets = [7, 0], sizes = [1, 32], strides = [1, 1]} : vector<12x32xf32> to vector<1x32xf32>
    %101 = arith.maximumf %99, %100 : vector<1x32xf32>
    %102 = vector.extract_strided_slice %86 {offsets = [8, 0], sizes = [1, 32], strides = [1, 1]} : vector<12x32xf32> to vector<1x32xf32>
    %103 = arith.maximumf %101, %102 : vector<1x32xf32>
    %c15 = arith.constant 15 : index
    %c0_43 = arith.constant 0 : index
    %104 = vector.load %arg11[%c15, %c0_43] : memref<40x32xf32, #tpu.memory_space<vmem>>, vector<1x32xf32>
    tpu.vector_store %arg11[%c15, %c0_43], %103 {strides = array<i32>} : memref<40x32xf32, #tpu.memory_space<vmem>>, vector<1x32xf32>,
    %105 = vector.extract_strided_slice %86 {offsets = [9, 0], sizes = [1, 32], strides = [1, 1]} : vector<12x32xf32> to vector<1x32xf32>
    %106 = vector.extract_strided_slice %86 {offsets = [10, 0], sizes = [1, 32], strides = [1, 1]} : vector<12x32xf32> to vector<1x32xf32>
    %107 = arith.maximumf %105, %106 : vector<1x32xf32>
    %108 = vector.extract_strided_slice %86 {offsets = [11, 0], sizes = [1, 32], strides = [1, 1]} : vector<12x32xf32> to vector<1x32xf32>
    %109 = arith.maximumf %107, %108 : vector<1x32xf32>
    %c16 = arith.constant 16 : index
    %c0_44 = arith.constant 0 : index
    %110 = vector.load %arg11[%c16, %c0_44] : memref<40x32xf32, #tpu.memory_space<vmem>>, vector<1x32xf32>
    tpu.vector_store %arg11[%c16, %c0_44], %109 {strides = array<i32>} : memref<40x32xf32, #tpu.memory_space<vmem>>, vector<1x32xf32>,
    %111 = vector.extract_strided_slice %50 {offsets = [84, 0], sizes = [12, 32], strides = [1, 1]} : vector<168x32xf32> to vector<12x32xf32>
    %112 = vector.extract_strided_slice %50 {offsets = [98, 0], sizes = [12, 32], strides = [1, 1]} : vector<168x32xf32> to vector<12x32xf32>
    %113 = arith.maximumf %111, %112 : vector<12x32xf32>
    %114 = vector.extract_strided_slice %50 {offsets = [112, 0], sizes = [12, 32], strides = [1, 1]} : vector<168x32xf32> to vector<12x32xf32>
    %115 = arith.maximumf %113, %114 : vector<12x32xf32>
    %116 = vector.extract_strided_slice %115 {offsets = [0, 0], sizes = [1, 32], strides = [1, 1]} : vector<12x32xf32> to vector<1x32xf32>
    %117 = vector.extract_strided_slice %115 {offsets = [1, 0], sizes = [1, 32], strides = [1, 1]} : vector<12x32xf32> to vector<1x32xf32>
    %118 = arith.maximumf %116, %117 : vector<1x32xf32>
    %119 = vector.extract_strided_slice %115 {offsets = [2, 0], sizes = [1, 32], strides = [1, 1]} : vector<12x32xf32> to vector<1x32xf32>
    %120 = arith.maximumf %118, %119 : vector<1x32xf32>
    %c19 = arith.constant 19 : index
    %c0_45 = arith.constant 0 : index
    %121 = vector.load %arg11[%c19, %c0_45] : memref<40x32xf32, #tpu.memory_space<vmem>>, vector<1x32xf32>
    tpu.vector_store %arg11[%c19, %c0_45], %120 {strides = array<i32>} : memref<40x32xf32, #tpu.memory_space<vmem>>, vector<1x32xf32>,
    %122 = vector.extract_strided_slice %115 {offsets = [3, 0], sizes = [1, 32], strides = [1, 1]} : vector<12x32xf32> to vector<1x32xf32>
    %123 = vector.extract_strided_slice %115 {offsets = [4, 0], sizes = [1, 32], strides = [1, 1]} : vector<12x32xf32> to vector<1x32xf32>
    %124 = arith.maximumf %122, %123 : vector<1x32xf32>
    %125 = vector.extract_strided_slice %115 {offsets = [5, 0], sizes = [1, 32], strides = [1, 1]} : vector<12x32xf32> to vector<1x32xf32>
    %126 = arith.maximumf %124, %125 : vector<1x32xf32>
    %c20 = arith.constant 20 : index
    %c0_46 = arith.constant 0 : index
    %127 = vector.load %arg11[%c20, %c0_46] : memref<40x32xf32, #tpu.memory_space<vmem>>, vector<1x32xf32>
    tpu.vector_store %arg11[%c20, %c0_46], %126 {strides = array<i32>} : memref<40x32xf32, #tpu.memory_space<vmem>>, vector<1x32xf32>,
    %128 = vector.extract_strided_slice %115 {offsets = [6, 0], sizes = [1, 32], strides = [1, 1]} : vector<12x32xf32> to vector<1x32xf32>
    %129 = vector.extract_strided_slice %115 {offsets = [7, 0], sizes = [1, 32], strides = [1, 1]} : vector<12x32xf32> to vector<1x32xf32>
    %130 = arith.maximumf %128, %129 : vector<1x32xf32>
    %131 = vector.extract_strided_slice %115 {offsets = [8, 0], sizes = [1, 32], strides = [1, 1]} : vector<12x32xf32> to vector<1x32xf32>
    %132 = arith.maximumf %130, %131 : vector<1x32xf32>
    %c21 = arith.constant 21 : index
    %c0_47 = arith.constant 0 : index
    %133 = vector.load %arg11[%c21, %c0_47] : memref<40x32xf32, #tpu.memory_space<vmem>>, vector<1x32xf32>
    tpu.vector_store %arg11[%c21, %c0_47], %132 {strides = array<i32>} : memref<40x32xf32, #tpu.memory_space<vmem>>, vector<1x32xf32>,
    %134 = vector.extract_strided_slice %115 {offsets = [9, 0], sizes = [1, 32], strides = [1, 1]} : vector<12x32xf32> to vector<1x32xf32>
    %135 = vector.extract_strided_slice %115 {offsets = [10, 0], sizes = [1, 32], strides = [1, 1]} : vector<12x32xf32> to vector<1x32xf32>
    %136 = arith.maximumf %134, %135 : vector<1x32xf32>
    %137 = vector.extract_strided_slice %115 {offsets = [11, 0], sizes = [1, 32], strides = [1, 1]} : vector<12x32xf32> to vector<1x32xf32>
    %138 = arith.maximumf %136, %137 : vector<1x32xf32>
    %c22 = arith.constant 22 : index
    %c0_48 = arith.constant 0 : index
    %139 = vector.load %arg11[%c22, %c0_48] : memref<40x32xf32, #tpu.memory_space<vmem>>, vector<1x32xf32>
    tpu.vector_store %arg11[%c22, %c0_48], %138 {strides = array<i32>} : memref<40x32xf32, #tpu.memory_space<vmem>>, vector<1x32xf32>,
    %140 = vector.extract_strided_slice %50 {offsets = [126, 0], sizes = [12, 32], strides = [1, 1]} : vector<168x32xf32> to vector<12x32xf32>
    %141 = vector.extract_strided_slice %50 {offsets = [140, 0], sizes = [12, 32], strides = [1, 1]} : vector<168x32xf32> to vector<12x32xf32>
    %142 = arith.maximumf %140, %141 : vector<12x32xf32>
    %143 = vector.extract_strided_slice %50 {offsets = [154, 0], sizes = [12, 32], strides = [1, 1]} : vector<168x32xf32> to vector<12x32xf32>
    %144 = arith.maximumf %142, %143 : vector<12x32xf32>
    %145 = vector.extract_strided_slice %144 {offsets = [0, 0], sizes = [1, 32], strides = [1, 1]} : vector<12x32xf32> to vector<1x32xf32>
    %146 = vector.extract_strided_slice %144 {offsets = [1, 0], sizes = [1, 32], strides = [1, 1]} : vector<12x32xf32> to vector<1x32xf32>
    %147 = arith.maximumf %145, %146 : vector<1x32xf32>
    %148 = vector.extract_strided_slice %144 {offsets = [2, 0], sizes = [1, 32], strides = [1, 1]} : vector<12x32xf32> to vector<1x32xf32>
    %149 = arith.maximumf %147, %148 : vector<1x32xf32>
    %c25 = arith.constant 25 : index
    %c0_49 = arith.constant 0 : index
    %150 = vector.load %arg11[%c25, %c0_49] : memref<40x32xf32, #tpu.memory_space<vmem>>, vector<1x32xf32>
    tpu.vector_store %arg11[%c25, %c0_49], %149 {strides = array<i32>} : memref<40x32xf32, #tpu.memory_space<vmem>>, vector<1x32xf32>,
    %151 = vector.extract_strided_slice %144 {offsets = [3, 0], sizes = [1, 32], strides = [1, 1]} : vector<12x32xf32> to vector<1x32xf32>
    %152 = vector.extract_strided_slice %144 {offsets = [4, 0], sizes = [1, 32], strides = [1, 1]} : vector<12x32xf32> to vector<1x32xf32>
    %153 = arith.maximumf %151, %152 : vector<1x32xf32>
    %154 = vector.extract_strided_slice %144 {offsets = [5, 0], sizes = [1, 32], strides = [1, 1]} : vector<12x32xf32> to vector<1x32xf32>
    %155 = arith.maximumf %153, %154 : vector<1x32xf32>
    %c26 = arith.constant 26 : index
    %c0_50 = arith.constant 0 : index
    %156 = vector.load %arg11[%c26, %c0_50] : memref<40x32xf32, #tpu.memory_space<vmem>>, vector<1x32xf32>
    tpu.vector_store %arg11[%c26, %c0_50], %155 {strides = array<i32>} : memref<40x32xf32, #tpu.memory_space<vmem>>, vector<1x32xf32>,
    %157 = vector.extract_strided_slice %144 {offsets = [6, 0], sizes = [1, 32], strides = [1, 1]} : vector<12x32xf32> to vector<1x32xf32>
    %158 = vector.extract_strided_slice %144 {offsets = [7, 0], sizes = [1, 32], strides = [1, 1]} : vector<12x32xf32> to vector<1x32xf32>
    %159 = arith.maximumf %157, %158 : vector<1x32xf32>
    %160 = vector.extract_strided_slice %144 {offsets = [8, 0], sizes = [1, 32], strides = [1, 1]} : vector<12x32xf32> to vector<1x32xf32>
    %161 = arith.maximumf %159, %160 : vector<1x32xf32>
    %c27 = arith.constant 27 : index
    %c0_51 = arith.constant 0 : index
    %162 = vector.load %arg11[%c27, %c0_51] : memref<40x32xf32, #tpu.memory_space<vmem>>, vector<1x32xf32>
    tpu.vector_store %arg11[%c27, %c0_51], %161 {strides = array<i32>} : memref<40x32xf32, #tpu.memory_space<vmem>>, vector<1x32xf32>,
    %163 = vector.extract_strided_slice %144 {offsets = [9, 0], sizes = [1, 32], strides = [1, 1]} : vector<12x32xf32> to vector<1x32xf32>
    %164 = vector.extract_strided_slice %144 {offsets = [10, 0], sizes = [1, 32], strides = [1, 1]} : vector<12x32xf32> to vector<1x32xf32>
    %165 = arith.maximumf %163, %164 : vector<1x32xf32>
    %166 = vector.extract_strided_slice %144 {offsets = [11, 0], sizes = [1, 32], strides = [1, 1]} : vector<12x32xf32> to vector<1x32xf32>
    %167 = arith.maximumf %165, %166 : vector<1x32xf32>
    %c28 = arith.constant 28 : index
    %c0_52 = arith.constant 0 : index
    %168 = vector.load %arg11[%c28, %c0_52] : memref<40x32xf32, #tpu.memory_space<vmem>>, vector<1x32xf32>
    tpu.vector_store %arg11[%c28, %c0_52], %167 {strides = array<i32>} : memref<40x32xf32, #tpu.memory_space<vmem>>, vector<1x32xf32>,
    %c0_53 = arith.constant 0 : index
    %c0_54 = arith.constant 0 : index
    %169 = vector.load %arg11[%c0_53, %c0_54] : memref<40x32xf32, #tpu.memory_space<vmem>>, vector<40x32xf32>
    %170 = vector.extract_strided_slice %169 {offsets = [0, 0], sizes = [24, 32], strides = [1, 1]} : vector<40x32xf32> to vector<24x32xf32>
    %c0_55 = arith.constant 0 : index
    %c0_56 = arith.constant 0 : index
    %c0_57 = arith.constant 0 : index
    %171 = vector.load %arg4[%c0_55, %c0_56, %c0_57] : memref<9x32x64xf32, #tpu.memory_space<vmem>>, vector<1x32x64xf32>
    %172 = vector.shape_cast %171 : vector<1x32x64xf32> to vector<32x64xf32>
    %cst_58 = arith.constant dense<0.000000e+00> : vector<24x64xf32>
    %173 = tpu.matmul %170, %172, %cst_58 {dimension_numbers = #tpu.dot_dimension_numbers<[1], [0], [0], [1], [0, 0, 1, 1], [], []>} : vector<24x32xf32>, vector<32x64xf32>, vector<24x64xf32> -> vector<24x64xf32>
    %174 = vector.extract_strided_slice %169 {offsets = [1, 0], sizes = [24, 32], strides = [1, 1]} : vector<40x32xf32> to vector<24x32xf32>
    %c1_59 = arith.constant 1 : index
    %c0_60 = arith.constant 0 : index
    %c0_61 = arith.constant 0 : index
    %175 = vector.load %arg4[%c1_59, %c0_60, %c0_61] : memref<9x32x64xf32, #tpu.memory_space<vmem>>, vector<1x32x64xf32>
    %176 = vector.shape_cast %175 : vector<1x32x64xf32> to vector<32x64xf32>
    %cst_62 = arith.constant dense<0.000000e+00> : vector<24x64xf32>
    %177 = tpu.matmul %174, %176, %cst_62 {dimension_numbers = #tpu.dot_dimension_numbers<[1], [0], [0], [1], [0, 0, 1, 1], [], []>} : vector<24x32xf32>, vector<32x64xf32>, vector<24x64xf32> -> vector<24x64xf32>
    %178 = arith.addf %173, %177 : vector<24x64xf32>
    %179 = vector.extract_strided_slice %169 {offsets = [2, 0], sizes = [24, 32], strides = [1, 1]} : vector<40x32xf32> to vector<24x32xf32>
    %c2_63 = arith.constant 2 : index
    %c0_64 = arith.constant 0 : index
    %c0_65 = arith.constant 0 : index
    %180 = vector.load %arg4[%c2_63, %c0_64, %c0_65] : memref<9x32x64xf32, #tpu.memory_space<vmem>>, vector<1x32x64xf32>
    %181 = vector.shape_cast %180 : vector<1x32x64xf32> to vector<32x64xf32>
    %cst_66 = arith.constant dense<0.000000e+00> : vector<24x64xf32>
    %182 = tpu.matmul %179, %181, %cst_66 {dimension_numbers = #tpu.dot_dimension_numbers<[1], [0], [0], [1], [0, 0, 1, 1], [], []>} : vector<24x32xf32>, vector<32x64xf32>, vector<24x64xf32> -> vector<24x64xf32>
    %183 = arith.addf %178, %182 : vector<24x64xf32>
    %184 = vector.extract_strided_slice %169 {offsets = [6, 0], sizes = [24, 32], strides = [1, 1]} : vector<40x32xf32> to vector<24x32xf32>
    %c3_67 = arith.constant 3 : index
    %c0_68 = arith.constant 0 : index
    %c0_69 = arith.constant 0 : index
    %185 = vector.load %arg4[%c3_67, %c0_68, %c0_69] : memref<9x32x64xf32, #tpu.memory_space<vmem>>, vector<1x32x64xf32>
    %186 = vector.shape_cast %185 : vector<1x32x64xf32> to vector<32x64xf32>
    %cst_70 = arith.constant dense<0.000000e+00> : vector<24x64xf32>
    %187 = tpu.matmul %184, %186, %cst_70 {dimension_numbers = #tpu.dot_dimension_numbers<[1], [0], [0], [1], [0, 0, 1, 1], [], []>} : vector<24x32xf32>, vector<32x64xf32>, vector<24x64xf32> -> vector<24x64xf32>
    %188 = arith.addf %183, %187 : vector<24x64xf32>
    %189 = vector.extract_strided_slice %169 {offsets = [7, 0], sizes = [24, 32], strides = [1, 1]} : vector<40x32xf32> to vector<24x32xf32>
    %c4_71 = arith.constant 4 : index
    %c0_72 = arith.constant 0 : index
    %c0_73 = arith.constant 0 : index
    %190 = vector.load %arg4[%c4_71, %c0_72, %c0_73] : memref<9x32x64xf32, #tpu.memory_space<vmem>>, vector<1x32x64xf32>
    %191 = vector.shape_cast %190 : vector<1x32x64xf32> to vector<32x64xf32>
    %cst_74 = arith.constant dense<0.000000e+00> : vector<24x64xf32>
    %192 = tpu.matmul %189, %191, %cst_74 {dimension_numbers = #tpu.dot_dimension_numbers<[1], [0], [0], [1], [0, 0, 1, 1], [], []>} : vector<24x32xf32>, vector<32x64xf32>, vector<24x64xf32> -> vector<24x64xf32>
    %193 = arith.addf %188, %192 : vector<24x64xf32>
    %194 = vector.extract_strided_slice %169 {offsets = [8, 0], sizes = [24, 32], strides = [1, 1]} : vector<40x32xf32> to vector<24x32xf32>
    %c5_75 = arith.constant 5 : index
    %c0_76 = arith.constant 0 : index
    %c0_77 = arith.constant 0 : index
    %195 = vector.load %arg4[%c5_75, %c0_76, %c0_77] : memref<9x32x64xf32, #tpu.memory_space<vmem>>, vector<1x32x64xf32>
    %196 = vector.shape_cast %195 : vector<1x32x64xf32> to vector<32x64xf32>
    %cst_78 = arith.constant dense<0.000000e+00> : vector<24x64xf32>
    %197 = tpu.matmul %194, %196, %cst_78 {dimension_numbers = #tpu.dot_dimension_numbers<[1], [0], [0], [1], [0, 0, 1, 1], [], []>} : vector<24x32xf32>, vector<32x64xf32>, vector<24x64xf32> -> vector<24x64xf32>
    %198 = arith.addf %193, %197 : vector<24x64xf32>
    %199 = vector.extract_strided_slice %169 {offsets = [12, 0], sizes = [24, 32], strides = [1, 1]} : vector<40x32xf32> to vector<24x32xf32>
    %c6_79 = arith.constant 6 : index
    %c0_80 = arith.constant 0 : index
    %c0_81 = arith.constant 0 : index
    %200 = vector.load %arg4[%c6_79, %c0_80, %c0_81] : memref<9x32x64xf32, #tpu.memory_space<vmem>>, vector<1x32x64xf32>
    %201 = vector.shape_cast %200 : vector<1x32x64xf32> to vector<32x64xf32>
    %cst_82 = arith.constant dense<0.000000e+00> : vector<24x64xf32>
    %202 = tpu.matmul %199, %201, %cst_82 {dimension_numbers = #tpu.dot_dimension_numbers<[1], [0], [0], [1], [0, 0, 1, 1], [], []>} : vector<24x32xf32>, vector<32x64xf32>, vector<24x64xf32> -> vector<24x64xf32>
    %203 = arith.addf %198, %202 : vector<24x64xf32>
    %204 = vector.extract_strided_slice %169 {offsets = [13, 0], sizes = [24, 32], strides = [1, 1]} : vector<40x32xf32> to vector<24x32xf32>
    %c7_83 = arith.constant 7 : index
    %c0_84 = arith.constant 0 : index
    %c0_85 = arith.constant 0 : index
    %205 = vector.load %arg4[%c7_83, %c0_84, %c0_85] : memref<9x32x64xf32, #tpu.memory_space<vmem>>, vector<1x32x64xf32>
    %206 = vector.shape_cast %205 : vector<1x32x64xf32> to vector<32x64xf32>
    %cst_86 = arith.constant dense<0.000000e+00> : vector<24x64xf32>
    %207 = tpu.matmul %204, %206, %cst_86 {dimension_numbers = #tpu.dot_dimension_numbers<[1], [0], [0], [1], [0, 0, 1, 1], [], []>} : vector<24x32xf32>, vector<32x64xf32>, vector<24x64xf32> -> vector<24x64xf32>
    %208 = arith.addf %203, %207 : vector<24x64xf32>
    %209 = vector.extract_strided_slice %169 {offsets = [14, 0], sizes = [24, 32], strides = [1, 1]} : vector<40x32xf32> to vector<24x32xf32>
    %c8_87 = arith.constant 8 : index
    %c0_88 = arith.constant 0 : index
    %c0_89 = arith.constant 0 : index
    %210 = vector.load %arg4[%c8_87, %c0_88, %c0_89] : memref<9x32x64xf32, #tpu.memory_space<vmem>>, vector<1x32x64xf32>
    %211 = vector.shape_cast %210 : vector<1x32x64xf32> to vector<32x64xf32>
    %cst_90 = arith.constant dense<0.000000e+00> : vector<24x64xf32>
    %212 = tpu.matmul %209, %211, %cst_90 {dimension_numbers = #tpu.dot_dimension_numbers<[1], [0], [0], [1], [0, 0, 1, 1], [], []>} : vector<24x32xf32>, vector<32x64xf32>, vector<24x64xf32> -> vector<24x64xf32>
    %213 = arith.addf %208, %212 : vector<24x64xf32>
    %c0_91 = arith.constant 0 : index
    %c0_92 = arith.constant 0 : index
    %214 = vector.load %arg5[%c0_91, %c0_92] : memref<1x64xf32, #tpu.memory_space<vmem>>, vector<1x64xf32>
    %215 = vector.broadcast %214 : vector<1x64xf32> to vector<24x64xf32>
    %216 = arith.addf %213, %215 : vector<24x64xf32>
    %cst_93 = arith.constant 0.000000e+00 : f32
    %217 = vector.broadcast %cst_93 : f32 to vector<24x64xf32>
    %218 = arith.maximumf %216, %217 : vector<24x64xf32>
    %219 = vector.extract_strided_slice %218 {offsets = [0, 0], sizes = [4, 64], strides = [1, 1]} : vector<24x64xf32> to vector<4x64xf32>
    %220 = vector.extract_strided_slice %218 {offsets = [6, 0], sizes = [4, 64], strides = [1, 1]} : vector<24x64xf32> to vector<4x64xf32>
    %221 = arith.maximumf %219, %220 : vector<4x64xf32>
    %222 = vector.extract_strided_slice %221 {offsets = [0, 0], sizes = [1, 64], strides = [1, 1]} : vector<4x64xf32> to vector<1x64xf32>
    %223 = vector.extract_strided_slice %221 {offsets = [1, 0], sizes = [1, 64], strides = [1, 1]} : vector<4x64xf32> to vector<1x64xf32>
    %224 = arith.maximumf %222, %223 : vector<1x64xf32>
    %c0_94 = arith.constant 0 : index
    %c0_95 = arith.constant 0 : index
    %c0_96 = arith.constant 0 : index
    %225 = vector.load %arg6[%c0_94, %c0_95, %c0_96] : memref<4x64x512xf32, #tpu.memory_space<vmem>>, vector<1x64x512xf32>
    %226 = vector.shape_cast %225 : vector<1x64x512xf32> to vector<64x512xf32>
    %cst_97 = arith.constant dense<0.000000e+00> : vector<1x512xf32>
    %227 = tpu.matmul %224, %226, %cst_97 {dimension_numbers = #tpu.dot_dimension_numbers<[1], [0], [0], [1], [0, 0, 1, 1], [], []>} : vector<1x64xf32>, vector<64x512xf32>, vector<1x512xf32> -> vector<1x512xf32>
    %228 = vector.extract_strided_slice %221 {offsets = [2, 0], sizes = [1, 64], strides = [1, 1]} : vector<4x64xf32> to vector<1x64xf32>
    %229 = vector.extract_strided_slice %221 {offsets = [3, 0], sizes = [1, 64], strides = [1, 1]} : vector<4x64xf32> to vector<1x64xf32>
    %230 = arith.maximumf %228, %229 : vector<1x64xf32>
    %c1_98 = arith.constant 1 : index
    %c0_99 = arith.constant 0 : index
    %c0_100 = arith.constant 0 : index
    %231 = vector.load %arg6[%c1_98, %c0_99, %c0_100] : memref<4x64x512xf32, #tpu.memory_space<vmem>>, vector<1x64x512xf32>
    %232 = vector.shape_cast %231 : vector<1x64x512xf32> to vector<64x512xf32>
    %cst_101 = arith.constant dense<0.000000e+00> : vector<1x512xf32>
    %233 = tpu.matmul %230, %232, %cst_101 {dimension_numbers = #tpu.dot_dimension_numbers<[1], [0], [0], [1], [0, 0, 1, 1], [], []>} : vector<1x64xf32>, vector<64x512xf32>, vector<1x512xf32> -> vector<1x512xf32>
    %234 = arith.addf %227, %233 : vector<1x512xf32>
    %235 = vector.extract_strided_slice %218 {offsets = [12, 0], sizes = [4, 64], strides = [1, 1]} : vector<24x64xf32> to vector<4x64xf32>
    %236 = vector.extract_strided_slice %218 {offsets = [18, 0], sizes = [4, 64], strides = [1, 1]} : vector<24x64xf32> to vector<4x64xf32>
    %237 = arith.maximumf %235, %236 : vector<4x64xf32>
    %238 = vector.extract_strided_slice %237 {offsets = [0, 0], sizes = [1, 64], strides = [1, 1]} : vector<4x64xf32> to vector<1x64xf32>
    %239 = vector.extract_strided_slice %237 {offsets = [1, 0], sizes = [1, 64], strides = [1, 1]} : vector<4x64xf32> to vector<1x64xf32>
    %240 = arith.maximumf %238, %239 : vector<1x64xf32>
    %c2_102 = arith.constant 2 : index
    %c0_103 = arith.constant 0 : index
    %c0_104 = arith.constant 0 : index
    %241 = vector.load %arg6[%c2_102, %c0_103, %c0_104] : memref<4x64x512xf32, #tpu.memory_space<vmem>>, vector<1x64x512xf32>
    %242 = vector.shape_cast %241 : vector<1x64x512xf32> to vector<64x512xf32>
    %cst_105 = arith.constant dense<0.000000e+00> : vector<1x512xf32>
    %243 = tpu.matmul %240, %242, %cst_105 {dimension_numbers = #tpu.dot_dimension_numbers<[1], [0], [0], [1], [0, 0, 1, 1], [], []>} : vector<1x64xf32>, vector<64x512xf32>, vector<1x512xf32> -> vector<1x512xf32>
    %244 = arith.addf %234, %243 : vector<1x512xf32>
    %245 = vector.extract_strided_slice %237 {offsets = [2, 0], sizes = [1, 64], strides = [1, 1]} : vector<4x64xf32> to vector<1x64xf32>
    %246 = vector.extract_strided_slice %237 {offsets = [3, 0], sizes = [1, 64], strides = [1, 1]} : vector<4x64xf32> to vector<1x64xf32>
    %247 = arith.maximumf %245, %246 : vector<1x64xf32>
    %c3_106 = arith.constant 3 : index
    %c0_107 = arith.constant 0 : index
    %c0_108 = arith.constant 0 : index
    %248 = vector.load %arg6[%c3_106, %c0_107, %c0_108] : memref<4x64x512xf32, #tpu.memory_space<vmem>>, vector<1x64x512xf32>
    %249 = vector.shape_cast %248 : vector<1x64x512xf32> to vector<64x512xf32>
    %cst_109 = arith.constant dense<0.000000e+00> : vector<1x512xf32>
    %250 = tpu.matmul %247, %249, %cst_109 {dimension_numbers = #tpu.dot_dimension_numbers<[1], [0], [0], [1], [0, 0, 1, 1], [], []>} : vector<1x64xf32>, vector<64x512xf32>, vector<1x512xf32> -> vector<1x512xf32>
    %251 = arith.addf %244, %250 : vector<1x512xf32>
    %c0_110 = arith.constant 0 : index
    %c0_111 = arith.constant 0 : index
    %252 = vector.load %arg7[%c0_110, %c0_111] : memref<1x512xf32, #tpu.memory_space<vmem>>, vector<1x512xf32>
    %253 = arith.addf %251, %252 : vector<1x512xf32>
    %cst_112 = arith.constant 0.000000e+00 : f32
    %254 = vector.broadcast %cst_112 : f32 to vector<1x512xf32>
    %255 = arith.maximumf %253, %254 : vector<1x512xf32>
    %c0_113 = arith.constant 0 : index
    %c0_114 = arith.constant 0 : index
    %256 = vector.load %arg8[%c0_113, %c0_114] : memref<512x128xf32, #tpu.memory_space<vmem>>, vector<512x128xf32>
    %cst_115 = arith.constant dense<0.000000e+00> : vector<1x128xf32>
    %257 = tpu.matmul %255, %256, %cst_115 {dimension_numbers = #tpu.dot_dimension_numbers<[1], [0], [0], [1], [0, 0, 1, 1], [], []>} : vector<1x512xf32>, vector<512x128xf32>, vector<1x128xf32> -> vector<1x128xf32>
    %c0_116 = arith.constant 0 : index
    %c0_117 = arith.constant 0 : index
    %258 = vector.load %arg9[%c0_116, %c0_117] : memref<1x128xf32, #tpu.memory_space<vmem>>, vector<1x128xf32>
    %259 = arith.addf %257, %258 : vector<1x128xf32>
    %c0_118 = arith.constant 0 : index
    %c0_119 = arith.constant 0 : index
    %c0_120 = arith.constant 0 : index
    %260 = vector.load %arg10[%c0_118, %c0_119, %c0_120] : memref<1x1x128xf32, #tpu.memory_space<vmem>>, vector<1x1x128xf32>
    %261 = vector.shape_cast %260 : vector<1x1x128xf32> to vector<1x128xf32>
    %262 = vector.shape_cast %259 : vector<1x128xf32> to vector<1x1x128xf32>
    tpu.vector_store %arg10[%c0_118, %c0_119, %c0_120], %262 {strides = array<i32>} : memref<1x1x128xf32, #tpu.memory_space<vmem>>, vector<1x1x128xf32>,
    return
  }
  func.func @transform_0(%arg0: i32) -> (i32, i32, i32) {
    %c0_i32 = arith.constant 0 : i32
    %c0_i32_0 = arith.constant 0 : i32
    %c0_i32_1 = arith.constant 0 : i32
    return %arg0, %c0_i32, %c0_i32_0 : i32, i32, i32
  }
  func.func @transform_1(%arg0: i32) -> (i32, i32, i32) {
    %c0_i32 = arith.constant 0 : i32
    %c0_i32_0 = arith.constant 0 : i32
    %c0_i32_1 = arith.constant 0 : i32
    %c0_i32_2 = arith.constant 0 : i32
    return %c0_i32, %c0_i32_0, %c0_i32_1 : i32, i32, i32
  }
  func.func @transform_2(%arg0: i32) -> (i32, i32) {
    %c0_i32 = arith.constant 0 : i32
    %c0_i32_0 = arith.constant 0 : i32
    %c0_i32_1 = arith.constant 0 : i32
    return %c0_i32, %c0_i32_0 : i32, i32
  }
  func.func @transform_3(%arg0: i32) -> (i32, i32, i32) {
    %c0_i32 = arith.constant 0 : i32
    %c0_i32_0 = arith.constant 0 : i32
    %c0_i32_1 = arith.constant 0 : i32
    %c0_i32_2 = arith.constant 0 : i32
    return %c0_i32, %c0_i32_0, %c0_i32_1 : i32, i32, i32
  }
  func.func @transform_4(%arg0: i32) -> (i32, i32) {
    %c0_i32 = arith.constant 0 : i32
    %c0_i32_0 = arith.constant 0 : i32
    %c0_i32_1 = arith.constant 0 : i32
    return %c0_i32, %c0_i32_0 : i32, i32
  }
  func.func @transform_5(%arg0: i32) -> (i32, i32, i32) {
    %c0_i32 = arith.constant 0 : i32
    %c0_i32_0 = arith.constant 0 : i32
    %c0_i32_1 = arith.constant 0 : i32
    %c0_i32_2 = arith.constant 0 : i32
    return %c0_i32, %c0_i32_0, %c0_i32_1 : i32, i32, i32
  }
  func.func @transform_6(%arg0: i32) -> (i32, i32) {
    %c0_i32 = arith.constant 0 : i32
    %c0_i32_0 = arith.constant 0 : i32
    %c0_i32_1 = arith.constant 0 : i32
    return %c0_i32, %c0_i32_0 : i32, i32
  }
  func.func @transform_7(%arg0: i32) -> (i32, i32) {
    %c0_i32 = arith.constant 0 : i32
    %c0_i32_0 = arith.constant 0 : i32
    %c0_i32_1 = arith.constant 0 : i32
    return %c0_i32, %c0_i32_0 : i32, i32
  }
  func.func @transform_8(%arg0: i32) -> (i32, i32) {
    %c0_i32 = arith.constant 0 : i32
    %c0_i32_0 = arith.constant 0 : i32
    %c0_i32_1 = arith.constant 0 : i32
    return %c0_i32, %c0_i32_0 : i32, i32
  }
  func.func @transform_9(%arg0: i32) -> (i32, i32, i32) {
    %c0_i32 = arith.constant 0 : i32
    %c0_i32_0 = arith.constant 0 : i32
    %c0_i32_1 = arith.constant 0 : i32
    return %arg0, %c0_i32, %c0_i32_0 : i32, i32, i32
  }
}

</mosaic_0001>

<bundles_post_ra>
// kernel: multi_myconvnet_forward.1
= control target key start
LH: loop header
LB: loop body
LE: loop exit
PB: predicated region body
PF: predicated region fallthrough
CT: control target
= control target key end

     0   :  { %14 = vsyncpa [#allocation4], 0  ;;  %s9067_s0 = inlined_call_operand.vmem [shape: f32[2,200,3], index: 0, kind: input, shape index: {}]   ;;  %s9068_s1 = inlined_call_operand.vmem [shape: f32[9,3,32], index: 1, kind: input, shape index: {}]   ;;  %s9069_s2 = inlined_call_operand.vmem [shape: f32[1,32], index: 2, kind: input, shape index: {}]   ;;  %s9070_s3 = inlined_call_operand.hbm [shape: f32[9,32,64], index: 3, kind: input, shape index: {}]   ;;  %s9071_s4 = inlined_call_operand.vmem [shape: f32[1,64], index: 4, kind: input, shape index: {}]   ;;  %s9072_s5 = inlined_call_operand.vmem [shape: f32[4,64,512], index: 5, kind: input, shape index: {}]   ;;  %s9073_s6 = inlined_call_operand.vmem [shape: f32[1,512], index: 6, kind: input, shape index: {}]   ;;  %s9074_s7 = inlined_call_operand.vmem [shape: f32[512,128], index: 7, kind: input, shape index: {}]   ;;  %s9075_s8 = inlined_call_operand.vmem [shape: f32[1,128], index: 8, kind: input, shape index: {}]   ;;  %s9076_s9 = inlined_call_operand.hbm [shape: f32[2,1,128], index: 9, kind: output, shape index: {}]  }
   0x1   :  { %15 = vsyncpa [#allocation5], 0 }
   0x2   :  { %17 = vsyncpa [#allocation5 + $0x1], 0  ;;  %s6763_s30 = smov 0   ;;  %s6765_s10 = smov 0  }
   0x3   :  { %s6767_s11 = smov 0   ;;  %s6769_s12 = smov 0  }
   0x4 LB: > { %s6784_s13 = sadd.s32 4294967295, %s6704_s12   ;;  %s4864_s14 = sadd.s32 4294967294, %s6704_s12   ;;  %s6704_s12 = sphi %s6769_s12, %s9092_s12   ;;  %s6700_s11 = sphi %s6767_s11, %s9091_s11   ;;  %s6696_s10 = sphi %s6765_s10, %s9090_s10   ;;  %s6692_s30 = sphi %s6763_s30, %s9089_s30  }
   0x5   : > { %s6788_s15 = sadd.s32 1, %s6704_s12   ;;  %s224_s16 = sadd.s32 1, %s6700_s11 }
   0x6   : > { %s221_s17 = ssub.s32 %s6704_s12, %s6788_s15  ;;  %p234_p0 = scmp.ne.s32.totalorder %s6700_s11, %s6696_s10 }
   0x7   : > { %p222_p1 = scmp.eq.s32.totalorder %s221_s17, 0  ;;  %p235_p2 = scmp.eq.s32.totalorder %s6784_s13, 1 }
   0x8   : > { %p240_p3 = scmp.ne.s32.totalorder %s6696_s10, %s6692_s30  ;;  %p241_p4 = scmp.eq.s32.totalorder %s4864_s14, 1 }
   0x9   : > { %s6799_s18 = scalar_select %p222_p1, %s6700_s11, %s224_s16  }
   0xa   : > { %p6801_p5 = por %p235_p2, %p234_p0  ;;  %p6805_p6 = por %p241_p4, %p240_p3 }
   0xb   : > { %p4865_p7 = scmp.ge.s32.totalorder %s6704_s12, 1  ;;  %p248_p8 = scmp.lt.s32.totalorder %s6704_s12, 3 }
   0xc   : > { %s9080_s19 = scalar_select %p6801_p5, 1, 0 }
   0xd   : > { %s9081_s20 = scalar_select %p6805_p6, 1, 0 }
   0xe   : > { %p9077_p9 = scmp.eq.s32.totalorder %s6784_s13, 0  ;;  %p6812_p10 = pnand %p4865_p7, %p248_p8 }
   0xf   : > { %s6706_s22 = smov [#allocation3]   ;;  %s6610_s27 = scalar_lea.hbm %s9070_s3, 4608 }
  0x10   : > { %s9082_s21 = scalar_select %p6812_p10, 1, 0 }
  0x11   : > { %s266_s23 = sshll.u32 %s6706_s22, 4  ;;  %p6547_p11 = pneg %p6812_p10  ;;  %s267_s23 = int_to_ptr.vmem [resolvable:$true] %s266_s23 }
  0x12   : > { %p6611_p13 = scmp.ne.s32.totalorder %s9070_s3, %s6610_s27  ;;  %p6617_p3 = scmp.lt.u32.totalorder %s6610_s27, %s9070_s3 }
  0x13   : > { %p6820_p12 = pnand %p9077_p9, %p6547_p11 }
  0x15   : > { %p6612_p0 = pneg %p6820_p12 }
  0x17   : > { %p6613_p1 = pnand %p6612_p0, %p6611_p13 }
  0x19   : > { %p6614_p2 = pneg %p6613_p1 }
  0x1b   : > { %p6619_p4 = pnand %p6617_p3, %p6614_p2 }
  0x1d   : > { %6622 = shalt.err (!%p6619_p4)
}
  0x1e   : > { %s6623_s17 = scalar_lea.vmem %s267_s23, 4608  ;;  %p6631_p9 = scmp.lt.s32.totalorder %s267_s23, %s267_s23 }
  0x1f   : > { %p6624_p7 = scmp.ne.s32.totalorder %s267_s23, %s6623_s17  ;;  %p6632_p6 = scmp.lt.s32.totalorder %s6623_s17, %s6623_s17 }
  0x21   : > { %p6626_p8 = pnand %p6624_p7, %p6612_p0  ;;  %p6633_p5 = por %p6632_p6, %p6631_p9 }
  0x23   : > { %p6627_p11 = pneg %p6626_p8 }
  0x25   : > { %p6634_p10 = pnand %p6633_p5, %p6627_p11 }
  0x27   : > { %6637 = shalt.err (!%p6634_p10)
}
  0x28   : > { %s6707_s22 = smov 128   ;;  %s6708_s25 = smov 8  }
  0x29   : > { %6550 = dma.hbm_to_vmem [thread:$0]  (!%p6820_p12), %s9070_s3, 4608, %s267_s23, [#allocation4], %s6707_s22, %s6707_s22, %s6708_s25  }
  0x2a   : > { %p9084_p13 = scmp.ne.s32.totalorder %s9082_s21, 0 }
  0x2b   : > { %p9085_p1 = scmp.eq.s32.totalorder (!%p9084_p13), %s6784_s13, 0 }
  0x2c   : > { %305 = sbr.rel (%p9084_p13) target bundleno = 1528 (0x5f8), region = 56 }
  0x33   : > { %6683 = dma.done.wait (%p9085_p1), [#allocation4], 4608   ;;  %p9086_p0 = pmov %p9085_p1 }
  0x34   : > { %p340_p5 = scmp.lt.s32.totalorder %s6784_s13, 1  ;;  %v6709_v0 = vmov 0.0   ;;  %vm6710_vm0 = vmmov 0   ;;  %vm482_vm1 = vcmask 1042432   ;;  %vm439_vm2 = vcmask 23552   ;;  %s338_s16 = sand.u32 1, %s6696_s10  }
  0x35   : > { %6685 = vsyncadd (%p9086_p0), [#allocation4], 4294962688  ;;  %5544 = vmatprep.subr.mxu0 %v6709_v0  ;;  %5609 = vmatprep.subr.mxu1 %v6709_v0  ;;  %v4871_v1 = vld [vmem:[%s9068_s1 + $0x4] sm:$0x7]  ;;  %v370_v2 = vld [vmem:[%s9068_s1] sm:$0x7] }
  0x36   : > { %5546 = vmatprep.mubr.msk.f32.mxu0 %vm6710_vm0, %v6709_v0  ;;  %5611 = vmatprep.mubr.msk.f32.mxu1 %vm6710_vm0, %v6709_v0  ;;  %s341_s21 = scalar_select %p340_p5, %s6784_s13, 1  ;;  %vm395_vm3 = vcmask 1046528   ;;  %v4916_v9 = vld [vmem:[%s9068_s1 + $0x8] sm:$0x7]  ;;  %v4939_v16 = vld [vmem:[%s9068_s1 + $0xc] sm:$0x7] }
  0x37   : > { %5545 = vmatpush3.msk.msra.mxu0 %vm482_vm1, %v4871_v1  ;;  %5610 = vmatpush3.msk.msra.mxu1 %vm482_vm1, %v370_v2  ;;  %vm873_vm4 = vcmask 1045504   ;;  %vm1156_vm5 = vcmask 1041408   ;;  %vm1438_vm6 = vcmask 1040384   ;;  %vm1922_vm7 = vcmask 1043456   ;;  %s5210_s25 = sshll.u32 %s6784_s13, 4  ;;  %s339_s26 = scalar_lea.vmem [#allocation6], %s338_s16 }
  0x38   : > { %s6540_s23 = smul.u32 200, %s341_s21  ;;  %5674 = vmatprep.subr.mxu0 %v6709_v0  ;;  %5739 = vmatprep.subr.mxu1 %v6709_v0  ;;  %vm2736_vm8 = vcmask 261120   ;;  %vm2769_vm9 = vcmask 253952   ;;  %vm2771_vm10 = vcmask 257027   ;;  %vm2783_vm11 = vcmask 254977   ;;  %s4797_s28 = sshll.u32 %s339_s26, 4  ;;  %s9027_s28 = int_to_ptr.vmem [resolvable:$true] %s4797_s28 }
  0x39   : > { %2737 = vst.msk [vmem:[#allocation2] sm:$0xff] %vm2736_vm8, %v6709_v0  ;;  %2738 = vst.msk [vmem:[#allocation2 + $0x8] sm:$0xff] %vm2736_vm8, %v6709_v0  ;;  %vm2777_vm12 = vcmask 260102   ;;  %vm2812_vm13 = vcmask 256002   ;;  %vm2814_vm14 = vcmask 259077   ;;  %vm2850_vm15 = vcmask 258052  }
  0x3a   : > { %s6857_s29 = scalar_lea.vmem %s9067_s0, %s6540_s23  ;;  %2739 = vst.msk [vmem:[#allocation2 + $0x10] sm:$0xff] %vm2736_vm8, %v6709_v0  ;;  %2740 = vst.msk [vmem:[#allocation2 + $0x18] sm:$0xff] %vm2736_vm8, %v6709_v0  ;;  %s9025_s23 = scalar_lea.hbm %s9076_s9, %s5210_s25 }
  0x3b   : > { %v345_v3 = vld [vmem:[%s6857_s29] sm:$0xff]  ;;  %v6869_v4 = vld [vmem:[%s6857_s29 + $0x8] sm:$0xff]  ;;  %v6872_v6 = vld [vmem:[%s6857_s29 + $0x10] sm:$0xff]  ;;  %2741 = vst.msk [vmem:[#allocation2 + $0x20] sm:$0xff] %vm2736_vm8, %v6709_v0  ;;  %s4785_s24 = scalar_lea.sflag [#allocation5], %s338_s16  ;;  %s6638_s27 = scalar_lea.vmem %s9027_s28, 16 }
  0x3c   : > { %v396_v5 = vrot.slane %v345_v3, 1  ;;  %v397_v7 = vrot.slane %v6869_v4, 1  ;;  %5612 = vmatmul.mubr.msk.f32.vlgmr.msra.gmra.mrb[0].mxu1 %vm439_vm2, %v345_v3  ;;  %v399_v8 = vrot.slane %v6872_v6, 1  ;;  %v6884_v10 = vld [vmem:[%s6857_s29 + $0x18] sm:$0xff]  ;;  %v6897_v14 = vld [vmem:[%s6857_s29 + $0x20] sm:$0xff]  ;;  %v874_v15 = vrot.slane %v345_v3, 2  ;;  %p6639_p6 = scmp.ne.s32.totalorder %s9027_s28, %s6638_s27 }
  0x3d   : > { %5614 = vmatprep.mubr.msk.f32.mxu1 %vm6710_vm0, %v6709_v0  ;;  %v401_v13 = vrot.slane %v6884_v10, 1  ;;  %v875_v17 = vrot.slane %v6869_v4, 2  ;;  %5740 = vmatpush3.msk.msra.mxu1 %vm482_vm1, %v4939_v16  ;;  %v403_v19 = vrot.slane %v6897_v14, 1  ;;  %v6916_v20 = vld [vmem:[%s6857_s29 + $0x28] sm:$0xff]  ;;  %v6933_v24 = vld [vmem:[%s6857_s29 + $0x30] sm:$0xff]  ;;  %v6945_v27 = vld [vmem:[%s6857_s29 + $0x38] sm:$0xff] }
  0x3e   : > { %v398_v11 = vsel %vm395_vm3, %v396_v5, %v397_v7  ;;  %v400_v12 = vsel %vm395_vm3, %v397_v7, %v399_v8  ;;  %5869 = vmatprep.subr.mxu1 %v6709_v0  ;;  %v405_v23 = vrot.slane %v6916_v20, 1  ;;  %v407_v26 = vrot.slane %v6933_v24, 1  ;;  %v6957_v30 = vld [vmem:[%s6857_s29 + $0x40] sm:$0xff]  ;;  %v6969_v33 = vld [vmem:[%s6857_s29 + $0x48] sm:$0xff]  ;;  %v6981_v36 = vld [vmem:[%s6857_s29 + $0x50] sm:$0xff]  ;;  %p9087_p9 = scmp.ne.s32.totalorder %s9080_s19, 0 }
  0x3f   : > { %5547 = vmatmul.mubr.msk.f32.vlgmr.msra.gmra.mrb[0].mxu0 %vm439_vm2, %v398_v11  ;;  %v402_v18 = vsel %vm395_vm3, %v399_v8, %v401_v13  ;;  %v6923_v21 = vsel %vm873_vm4, %v874_v15, %v875_v17  ;;  %v404_v22 = vsel %vm395_vm3, %v401_v13, %v403_v19  ;;  %v409_v29 = vrot.slane %v6945_v27, 1  ;;  %v6993_v39 = vld [vmem:[%s6857_s29 + $0x58] sm:$0xff]  ;;  %v7005_v42 = vld [vmem:[%s6857_s29 + $0x60] sm:$0xff]  ;;  %v7017_v45 = vld [vmem:[%s6857_s29 + $0x68] sm:$0xff]  ;;  %s6712_s13 = smov [#allocation6]  }
  0x40   : > { %5675 = vmatpush3.msk.msra.mxu0 %vm482_vm1, %v4916_v9  ;;  %5549 = vmatprep.mubr.msk.f32.mxu0 %vm6710_vm0, %v6709_v0  ;;  %v406_v25 = vsel %vm395_vm3, %v403_v19, %v405_v23  ;;  %v408_v28 = vsel %vm395_vm3, %v405_v23, %v407_v26  ;;  %v411_v32 = vrot.slane %v6957_v30, 1  ;;  %v413_v35 = vrot.slane %v6969_v33, 1  ;;  %v7029_v48 = vld [vmem:[%s6857_s29 + $0x70] sm:$0xff]  ;;  %v7041_v51 = vld [vmem:[%s6857_s29 + $0x78] sm:$0xff]  ;;  %v7053_v54 = vld [vmem:[%s6857_s29 + $0x80] sm:$0xff]  ;;  %p6640_p10 = pnand %p6639_p6, %p9087_p9  ;;  %s6642_s14 = sshll.u32 %s6712_s13, 4  ;;  %s6643_s14 = int_to_ptr.vmem [resolvable:$false] %s6642_s14 }
  0x41   : > { %5615 = vmatmul.mubr.msk.f32.gmra.mrb[2].mxu1 %vm439_vm2, %v6869_v4  ;;  %5804 = vmatprep.subr.mxu0 %v6709_v0  ;;  %v410_v31 = vsel %vm395_vm3, %v407_v26, %v409_v29  ;;  %v415_v38 = vrot.slane %v6981_v36, 1  ;;  %v417_v41 = vrot.slane %v6993_v39, 1  ;;  %v419_v44 = vrot.slane %v7005_v42, 1  ;;  %v7065_v57 = vld [vmem:[%s6857_s29 + $0x88] sm:$0xff]  ;;  %v7077_v60 = vld [vmem:[%s6857_s29 + $0x90] sm:$0xff]  ;;  %v7089_v63 = vld [vmem:[%s6857_s29 + $0x98] sm:$0xff]  ;;  %p6645_p2 = scmp.lt.s32.totalorder %s9027_s28, %s6643_s14 }
  0x42   : > { %5617 = vmatprep.mubr.msk.f32.mxu1 %vm6710_vm0, %v6709_v0  ;;  %v412_v34 = vsel %vm395_vm3, %v409_v29, %v411_v32  ;;  %v414_v37 = vsel %vm395_vm3, %v411_v32, %v413_v35  ;;  %v421_v47 = vrot.slane %v7017_v45, 1  ;;  %v423_v50 = vrot.slane %v7029_v48, 1  ;;  %v7101_v3 = vld [vmem:[%s6857_s29 + $0xa0] sm:$0xff]  ;;  %v7113_v8 = vld [vmem:[%s6857_s29 + $0xa8] sm:$0xff]  ;;  %v4985_v19 = vld [vmem:[%s9068_s1 + $0x14] sm:$0x7]  ;;  %p6641_p12 = pneg %p6640_p10 }
  0x43   : > { %5550 = vmatmul.mubr.msk.f32.gmra.mrb[2].mxu0 %vm439_vm2, %v400_v12  ;;  %v416_v40 = vsel %vm395_vm3, %v413_v35, %v415_v38  ;;  %v418_v43 = vsel %vm395_vm3, %v415_v38, %v417_v41  ;;  %v420_v46 = vsel %vm395_vm3, %v417_v41, %v419_v44  ;;  %v425_v53 = vrot.slane %v7041_v51, 1  ;;  %v4962_v23 = vld [vmem:[%s9068_s1 + $0x10] sm:$0x7]  ;;  %s6644_s17 = scalar_lea.vmem %s6643_s14, 32 }
  0x44   : > { %5552 = vmatprep.mubr.msk.f32.mxu0 %vm6710_vm0, %v6709_v0  ;;  %v422_v49 = vsel %vm395_vm3, %v419_v44, %v421_v47  ;;  %v424_v52 = vsel %vm395_vm3, %v421_v47, %v423_v50  ;;  %v427_v56 = vrot.slane %v7053_v54, 1  ;;  %v429_v59 = vrot.slane %v7065_v57, 1  ;;  %p6646_p3 = scmp.lt.s32.totalorder %s6644_s17, %s6638_s27 }
  0x45   : > { %5618 = vmatmul.mubr.msk.f32.gmra.mrb[4].mxu1 %vm439_vm2, %v6872_v6  ;;  %v426_v55 = vsel %vm395_vm3, %v423_v50, %v425_v53  ;;  %v431_v62 = vrot.slane %v7077_v60, 1  ;;  %v433_v2 = vrot.slane %v7089_v63, 1  ;;  %v435_v7 = vrot.slane %v7101_v3, 1 }
  0x46   : > { %5620 = vmatprep.mubr.msk.f32.mxu1 %vm6710_vm0, %v6709_v0  ;;  %v428_v58 = vsel %vm395_vm3, %v425_v53, %v427_v56  ;;  %v430_v61 = vsel %vm395_vm3, %v427_v56, %v429_v59  ;;  %v437_v11 = vrot.slane %v7113_v8, 1  ;;  %v1157_v12 = vrot.slane %v6869_v4, 6  ;;  %p6647_p4 = por %p6646_p3, %p6645_p2 }
  0x47   : > { %5553 = vmatmul.mubr.msk.f32.gmra.mrb[4].mxu0 %vm439_vm2, %v402_v18  ;;  %v432_v1 = vsel %vm395_vm3, %v429_v59, %v431_v62  ;;  %v434_v5 = vsel %vm395_vm3, %v431_v62, %v433_v2  ;;  %v436_v9 = vsel %vm395_vm3, %v433_v2, %v435_v7  ;;  %v1158_v13 = vrot.slane %v6872_v6, 6 }
  0x48   : > { %5555 = vmatprep.mubr.msk.f32.mxu0 %vm6710_vm0, %v6709_v0  ;;  %v438_v15 = vsel %vm395_vm3, %v435_v7, %v437_v11  ;;  %v1160_v18 = vrot.slane %v6884_v10, 6  ;;  %v1162_v26 = vrot.slane %v6897_v14, 6  ;;  %v879_v29 = vrot.slane %v6884_v10, 2  ;;  %p6648_p7 = pnand %p6647_p4, %p6641_p12 }
  0x49   : > { %5621 = vmatmul.mubr.msk.f32.gmra.mrb[6].mxu1 %vm439_vm2, %v6884_v10  ;;  %v1159_v16 = vsel %vm1156_vm5, %v1157_v12, %v1158_v13  ;;  %v881_v32 = vrot.slane %v6897_v14, 2  ;;  %v1166_v35 = vrot.slane %v6933_v24, 6  ;;  %v883_v38 = vrot.slane %v6916_v20, 2 }
  0x4a   : > { %5623 = vmatprep.mubr.msk.f32.mxu1 %vm6710_vm0, %v6709_v0  ;;  %v1168_v41 = vrot.slane %v6945_v27, 6  ;;  %v885_v44 = vrot.slane %v6933_v24, 2  ;;  %v1170_v47 = vrot.slane %v6957_v30, 6  ;;  %v887_v50 = vrot.slane %v6945_v27, 2 }
  0x4b   : > { %5556 = vmatmul.mubr.msk.f32.gmra.mrb[6].mxu0 %vm439_vm2, %v404_v22  ;;  %v877_v22 = vrot.slane %v6872_v6, 2  ;;  %v1172_v53 = vrot.slane %v6969_v33, 6  ;;  %v889_v56 = vrot.slane %v6957_v30, 2  ;;  %v1174_v59 = vrot.slane %v6981_v36, 6 }
  0x4c   : > { %5558 = vmatprep.mubr.msk.f32.mxu0 %vm6710_vm0, %v6709_v0  ;;  %v891_v62 = vrot.slane %v6969_v33, 2  ;;  %v1176_v2 = vrot.slane %v6993_v39, 6  ;;  %v893_v7 = vrot.slane %v6981_v36, 2  ;;  %v1178_v11 = vrot.slane %v7005_v42, 6 }
  0x4d   : > { %5624 = vmatmul.mubr.msk.f32.gmra.mrb[8].mxu1 %vm439_vm2, %v6897_v14 }
  0x4e   : > { %5626 = vmatprep.mubr.msk.f32.mxu1 %vm6710_vm0, %v6709_v0  ;;  %v894_v12 = vsel %vm873_vm4, %v891_v62, %v893_v7 }
  0x4f   : > { %5559 = vmatmul.mubr.msk.f32.gmra.mrb[8].mxu0 %vm439_vm2, %v406_v25  ;;  %v1161_v25 = vsel %vm1156_vm5, %v1158_v13, %v1160_v18  ;;  %v895_v13 = vrot.slane %v6993_v39, 2 }
  0x50   : > { %5561 = vmatprep.mubr.msk.f32.mxu0 %vm6710_vm0, %v6709_v0 }
  0x51   : > { %5627 = vmatmul.mubr.msk.f32.gmra.mrb[10].mxu1 %vm439_vm2, %v6916_v20 }
  0x52   : > { %5629 = vmatprep.mubr.msk.f32.mxu1 %vm6710_vm0, %v6709_v0 }
  0x53   : > { %5562 = vmatmul.mubr.msk.f32.gmra.mrb[10].mxu0 %vm439_vm2, %v408_v28  ;;  %v878_v28 = vsel %vm873_vm4, %v875_v17, %v877_v22  ;;  %v880_v17 = vsel %vm873_vm4, %v877_v22, %v879_v29 }
  0x54   : > { %5564 = vmatprep.mubr.msk.f32.mxu0 %vm6710_vm0, %v6709_v0 }
  0x55   : > { %5630 = vmatmul.mubr.msk.f32.gmra.mrb[12].mxu1 %vm439_vm2, %v6933_v24 }
  0x56   : > { %5632 = vmatprep.mubr.msk.f32.mxu1 %vm6710_vm0, %v6709_v0 }
  0x57   : > { %5565 = vmatmul.mubr.msk.f32.gmra.mrb[12].mxu0 %vm439_vm2, %v410_v31  ;;  %v1164_v31 = vrot.slane %v6916_v20, 6 }
  0x58   : > { %5567 = vmatprep.mubr.msk.f32.mxu0 %vm6710_vm0, %v6709_v0 }
  0x59   : > { %5633 = vmatmul.mubr.msk.f32.gmra.mrb[14].mxu1 %vm439_vm2, %v6945_v27 }
  0x5a   : > { %5635 = vmatprep.mubr.msk.f32.mxu1 %vm6710_vm0, %v6709_v0 }
  0x5b   : > { %5568 = vmatmul.mubr.msk.f32.gmra.mrb[14].mxu0 %vm439_vm2, %v412_v34  ;;  %v7182_v34 = vsel %vm1156_vm5, %v1162_v26, %v1164_v31 }
  0x5c   : > { %5570 = vmatprep.mubr.msk.f32.mxu0 %vm6710_vm0, %v6709_v0 }
  0x5d   : > { %5636 = vmatmul.mubr.msk.f32.gmra.mrb[16].mxu1 %vm439_vm2, %v6957_v30 }
  0x5e   : > { %5638 = vmatprep.mubr.msk.f32.mxu1 %vm6710_vm0, %v6709_v0 }
  0x5f   : > { %5571 = vmatmul.mubr.msk.f32.gmra.mrb[16].mxu0 %vm439_vm2, %v414_v37  ;;  %v882_v37 = vsel %vm873_vm4, %v879_v29, %v881_v32  ;;  %v1184_v29 = vrot.slane %v7041_v51, 6 }
  0x60   : > { %5573 = vmatprep.mubr.msk.f32.mxu0 %vm6710_vm0, %v6709_v0 }
  0x61   : > { %5639 = vmatmul.mubr.msk.f32.gmra.mrb[18].mxu1 %vm439_vm2, %v6969_v33 }
  0x62   : > { %5641 = vmatprep.mubr.msk.f32.mxu1 %vm6710_vm0, %v6709_v0 }
  0x63   : > { %5574 = vmatmul.mubr.msk.f32.gmra.mrb[18].mxu0 %vm439_vm2, %v416_v40  ;;  %v7195_v40 = vsel %vm1156_vm5, %v1164_v31, %v1166_v35 }
  0x64   : > { %5576 = vmatprep.mubr.msk.f32.mxu0 %vm6710_vm0, %v6709_v0 }
  0x65   : > { %5642 = vmatmul.mubr.msk.f32.gmra.mrb[20].mxu1 %vm439_vm2, %v6981_v36 }
  0x66   : > { %5644 = vmatprep.mubr.msk.f32.mxu1 %vm6710_vm0, %v6709_v0 }
  0x67   : > { %5577 = vmatmul.mubr.msk.f32.gmra.mrb[20].mxu0 %vm439_vm2, %v418_v43  ;;  %v884_v43 = vsel %vm873_vm4, %v881_v32, %v883_v38 }
  0x68   : > { %5579 = vmatprep.mubr.msk.f32.mxu0 %vm6710_vm0, %v6709_v0 }
  0x69   : > { %5645 = vmatmul.mubr.msk.f32.gmra.mrb[22].mxu1 %vm439_vm2, %v6993_v39 }
  0x6a   : > { %5647 = vmatprep.mubr.msk.f32.mxu1 %vm6710_vm0, %v6709_v0 }
  0x6b   : > { %5580 = vmatmul.mubr.msk.f32.gmra.mrb[22].mxu0 %vm439_vm2, %v420_v46  ;;  %v7208_v46 = vsel %vm1156_vm5, %v1166_v35, %v1168_v41  ;;  %v1186_v35 = vrot.slane %v7053_v54, 6 }
  0x6c   : > { %5582 = vmatprep.mubr.msk.f32.mxu0 %vm6710_vm0, %v6709_v0 }
  0x6d   : > { %5648 = vmatmul.mubr.msk.f32.gmra.mrb[24].mxu1 %vm439_vm2, %v7005_v42 }
  0x6e   : > { %5650 = vmatprep.mubr.msk.f32.mxu1 %vm6710_vm0, %v6709_v0 }
  0x6f   : > { %5583 = vmatmul.mubr.msk.f32.gmra.mrb[24].mxu0 %vm439_vm2, %v422_v49  ;;  %v886_v49 = vsel %vm873_vm4, %v883_v38, %v885_v44  ;;  %v903_v38 = vrot.slane %v7041_v51, 2 }
  0x70   : > { %5585 = vmatprep.mubr.msk.f32.mxu0 %vm6710_vm0, %v6709_v0 }
  0x71   : > { %5651 = vmatmul.mubr.msk.f32.gmra.mrb[26].mxu1 %vm439_vm2, %v7017_v45 }
  0x72   : > { %5653 = vmatprep.mubr.msk.f32.mxu1 %vm6710_vm0, %v6709_v0 }
  0x73   : > { %5586 = vmatmul.mubr.msk.f32.gmra.mrb[26].mxu0 %vm439_vm2, %v424_v52  ;;  %v7221_v52 = vsel %vm1156_vm5, %v1168_v41, %v1170_v47  ;;  %v7325_v41 = vsel %vm1156_vm5, %v1184_v29, %v1186_v35 }
  0x74   : > { %5588 = vmatprep.mubr.msk.f32.mxu0 %vm6710_vm0, %v6709_v0 }
  0x75   : > { %5654 = vmatmul.mubr.msk.f32.gmra.mrb[28].mxu1 %vm439_vm2, %v7029_v48 }
  0x76   : > { %5656 = vmatprep.mubr.msk.f32.mxu1 %vm6710_vm0, %v6709_v0 }
  0x77   : > { %5589 = vmatmul.mubr.msk.f32.gmra.mrb[28].mxu0 %vm439_vm2, %v426_v55  ;;  %v888_v55 = vsel %vm873_vm4, %v885_v44, %v887_v50 }
  0x78   : > { %5591 = vmatprep.mubr.msk.f32.mxu0 %vm6710_vm0, %v6709_v0 }
  0x79   : > { %5657 = vmatmul.mubr.msk.f32.gmra.mrb[30].mxu1 %vm439_vm2, %v7041_v51 }
  0x7a   : > { %5659 = vmatprep.mubr.msk.f32.mxu1 %vm6710_vm0, %v6709_v0 }
  0x7b   : > { %5592 = vmatmul.mubr.msk.f32.gmra.mrb[30].mxu0 %vm439_vm2, %v428_v58  ;;  %v7234_v58 = vsel %vm1156_vm5, %v1170_v47, %v1172_v53  ;;  %v905_v47 = vrot.slane %v7053_v54, 2 }
  0x7c   : > { %5594 = vmatprep.mubr.msk.f32.mxu0 %vm6710_vm0, %v6709_v0 }
  0x7d   : > { %5660 = vmatmul.mubr.msk.f32.gmra.mrb[32].mxu1 %vm439_vm2, %v7053_v54 }
  0x7e   : > { %5662 = vmatprep.mubr.msk.f32.mxu1 %vm6710_vm0, %v6709_v0 }
  0x7f   : > { %5595 = vmatmul.mubr.msk.f32.gmra.mrb[32].mxu0 %vm439_vm2, %v430_v61  ;;  %v890_v61 = vsel %vm873_vm4, %v887_v50, %v889_v56  ;;  %v1190_v50 = vrot.slane %v7077_v60, 6 }
  0x80   : > { %5597 = vmatprep.mubr.msk.f32.mxu0 %vm6710_vm0, %v6709_v0 }
  0x81   : > { %5663 = vmatmul.mubr.msk.f32.gmra.mrb[34].mxu1 %vm439_vm2, %v7065_v57 }
  0x82   : > { %5665 = vmatprep.mubr.msk.f32.mxu1 %vm6710_vm0, %v6709_v0 }
  0x83   : > { %5598 = vmatmul.mubr.msk.f32.gmra.mrb[34].mxu0 %vm439_vm2, %v432_v1  ;;  %v7247_v1 = vsel %vm1156_vm5, %v1172_v53, %v1174_v59  ;;  %v906_v53 = vsel %vm873_vm4, %v903_v38, %v905_v47 }
  0x84   : > { %5600 = vmatprep.mubr.msk.f32.mxu0 %vm6710_vm0, %v6709_v0 }
  0x85   : > { %5666 = vmatmul.mubr.msk.f32.gmra.mrb[36].mxu1 %vm439_vm2, %v7077_v60 }
  0x86   : > { %5668 = vmatprep.mubr.msk.f32.mxu1 %vm6710_vm0, %v6709_v0 }
  0x87   : > { %5601 = vmatmul.mubr.msk.f32.gmra.mrb[36].mxu0 %vm439_vm2, %v434_v5  ;;  %v892_v5 = vsel %vm873_vm4, %v889_v56, %v891_v62  ;;  %v909_v62 = vrot.slane %v7077_v60, 2 }
  0x88   : > { %5603 = vmatprep.mubr.msk.f32.mxu0 %vm6710_vm0, %v6709_v0 }
  0x89   : > { %5669 = vmatmul.mubr.msk.f32.gmra.mrb[38].mxu1 %vm439_vm2, %v7089_v63 }
  0x8a   : > { %5671 = vmatprep.mubr.msk.f32.mxu1 %vm6710_vm0, %v6709_v0 }
  0x8b   : > { %5604 = vmatmul.mubr.msk.f32.gmra.mrb[38].mxu0 %vm439_vm2, %v436_v9  ;;  %v7260_v9 = vsel %vm1156_vm5, %v1174_v59, %v1176_v2  ;;  %v1192_v59 = vrot.slane %v7089_v63, 6 }
  0x8c   : > { %5606 = vmatprep.mubr.msk.f32.mxu0 %vm6710_vm0, %v6709_v0 }
  0x8d   : > { %5672 = vmatmul.mubr.msk.f32.gmra.mrb[40].mxu1 %vm439_vm2, %v7101_v3 }
  0x8e   : > { %5741 = vmatprep.mubr.msk.f32.mxu1 %vm6710_vm0, %v6709_v0 }
  0x8f   : > { %5607 = vmatmul.mubr.msk.f32.gmra.mrb[40].mxu0 %vm439_vm2, %v438_v15  ;;  %v7273_v15 = vsel %vm1156_vm5, %v1176_v2, %v1178_v11  ;;  %v7364_v2 = vsel %vm1156_vm5, %v1190_v50, %v1192_v59 }
  0x90   : > { %5676 = vmatprep.mubr.msk.f32.mxu0 %vm6710_vm0, %v6709_v0 }
  0x91   : > { %5742 = vmatmul.mubr.msk.f32.vlgmr.msra.gmra.mrb[42].mxu1 %vm439_vm2, %v1159_v16  ;;  %v1180_v16 = vrot.slane %v7017_v45, 6 }
  0x92   : > { %5744 = vmatprep.mubr.msk.f32.mxu1 %vm6710_vm0, %v6709_v0  ;;  %5870 = vmatpush3.msk.msra.mxu1 %vm482_vm1, %v4985_v19  ;;  %v897_v19 = vrot.slane %v7005_v42, 2 }
  0x93   : > { %5677 = vmatmul.mubr.msk.f32.vlgmr.msra.gmra.mrb[42].mxu0 %vm439_vm2, %v6923_v21  ;;  %5999 = vmatprep.subr.mxu1 %v6709_v0  ;;  %v7169_v21 = vsel %vm1156_vm5, %v1160_v18, %v1162_v26  ;;  %v896_v18 = vsel %vm873_vm4, %v893_v7, %v895_v13  ;;  %v7286_v22 = vsel %vm1156_vm5, %v1178_v11, %v1180_v16  ;;  %v899_v26 = vrot.slane %v7017_v45, 2 }
  0x94   : > { %5805 = vmatpush3.msk.msra.mxu0 %vm482_vm1, %v4962_v23  ;;  %5679 = vmatprep.mubr.msk.f32.mxu0 %vm6710_vm0, %v6709_v0  ;;  %v1182_v23 = vrot.slane %v7029_v48, 6  ;;  %v911_v11 = vrot.slane %v7089_v63, 2 }
  0x95   : > { %5745 = vmatmul.mubr.msk.f32.gmra.mrb[44].mxu1 %vm439_vm2, %v1161_v25  ;;  %5934 = vmatprep.subr.mxu0 %v6709_v0  ;;  %v898_v25 = vsel %vm873_vm4, %v895_v13, %v897_v19  ;;  %v900_v31 = vsel %vm873_vm4, %v897_v19, %v899_v26  ;;  %v1196_v13 = vrot.slane %v7113_v8, 6  ;;  %v913_v19 = vrot.slane %v7101_v3, 2 }
  0x96   : > { %5747 = vmatprep.mubr.msk.f32.mxu1 %vm6710_vm0, %v6709_v0  ;;  %v7312_v32 = vsel %vm1156_vm5, %v1182_v23, %v1184_v29  ;;  %v915_v29 = vrot.slane %v7113_v8, 2 }
  0x97   : > { %5680 = vmatmul.mubr.msk.f32.gmra.mrb[44].mxu0 %vm439_vm2, %v878_v28  ;;  %v7299_v28 = vsel %vm1156_vm5, %v1180_v16, %v1182_v23  ;;  %v7382_v16 = vld [vmem:[%s6857_s29 + $0xb0] sm:$0xff] }
  0x98   : > { %5682 = vmatprep.mubr.msk.f32.mxu0 %vm6710_vm0, %v6709_v0 }
  0x99   : > { %5748 = vmatmul.mubr.msk.f32.gmra.mrb[46].mxu1 %vm439_vm2, %v7169_v21 }
  0x9a   : > { %5750 = vmatprep.mubr.msk.f32.mxu1 %vm6710_vm0, %v6709_v0 }
  0x9b   : > { %5683 = vmatmul.mubr.msk.f32.gmra.mrb[46].mxu0 %vm439_vm2, %v880_v17  ;;  %v901_v17 = vrot.slane %v7029_v48, 2 }
  0x9c   : > { %5685 = vmatprep.mubr.msk.f32.mxu0 %vm6710_vm0, %v6709_v0 }
  0x9d   : > { %5751 = vmatmul.mubr.msk.f32.gmra.mrb[48].mxu1 %vm439_vm2, %v7182_v34  ;;  %v904_v44 = vsel %vm873_vm4, %v901_v17, %v903_v38  ;;  %v5031_v38 = vld [vmem:[%s9068_s1 + $0x1c] sm:$0x7] }
  0x9e   : > { %5753 = vmatprep.mubr.msk.f32.mxu1 %vm6710_vm0, %v6709_v0 }
  0x9f   : > { %5686 = vmatmul.mubr.msk.f32.gmra.mrb[48].mxu0 %vm439_vm2, %v882_v37  ;;  %v902_v37 = vsel %vm873_vm4, %v899_v26, %v901_v17  ;;  %v914_v26 = vsel %vm873_vm4, %v911_v11, %v913_v19  ;;  %v916_v17 = vsel %vm873_vm4, %v913_v19, %v915_v29  ;;  %v1456_v19 = vrot.slane %v6981_v36, 7 }
  0xa0   : > { %5688 = vmatprep.mubr.msk.f32.mxu0 %vm6710_vm0, %v6709_v0  ;;  %v1458_v29 = vrot.slane %v6993_v39, 7 }
  0xa1   : > { %5754 = vmatmul.mubr.msk.f32.gmra.mrb[50].mxu1 %vm439_vm2, %v7195_v40 }
  0xa2   : > { %5756 = vmatprep.mubr.msk.f32.mxu1 %vm6710_vm0, %v6709_v0 }
  0xa3   : > { %5689 = vmatmul.mubr.msk.f32.gmra.mrb[50].mxu0 %vm439_vm2, %v884_v43  ;;  %v1188_v43 = vrot.slane %v7065_v57, 6 }
  0xa4   : > { %5691 = vmatprep.mubr.msk.f32.mxu0 %vm6710_vm0, %v6709_v0 }
  0xa5   : > { %5757 = vmatmul.mubr.msk.f32.gmra.mrb[52].mxu1 %vm439_vm2, %v7208_v46  ;;  %v7351_v56 = vsel %vm1156_vm5, %v1188_v43, %v1190_v50  ;;  %v1444_v50 = vrot.slane %v6897_v14, 7 }
  0xa6   : > { %5759 = vmatprep.mubr.msk.f32.mxu1 %vm6710_vm0, %v6709_v0 }
  0xa7   : > { %5692 = vmatmul.mubr.msk.f32.gmra.mrb[52].mxu0 %vm439_vm2, %v886_v49  ;;  %v7338_v49 = vsel %vm1156_vm5, %v1186_v35, %v1188_v43  ;;  %v1439_v35 = vrot.slane %v6869_v4, 7  ;;  %v1442_v43 = vrot.slane %v6884_v10, 7 }
  0xa8   : > { %5694 = vmatprep.mubr.msk.f32.mxu0 %vm6710_vm0, %v6709_v0 }
  0xa9   : > { %5760 = vmatmul.mubr.msk.f32.gmra.mrb[54].mxu1 %vm439_vm2, %v7221_v52 }
  0xaa   : > { %5762 = vmatprep.mubr.msk.f32.mxu1 %vm6710_vm0, %v6709_v0 }
  0xab   : > { %5695 = vmatmul.mubr.msk.f32.gmra.mrb[54].mxu0 %vm439_vm2, %v888_v55  ;;  %v907_v55 = vrot.slane %v7065_v57, 2 }
  0xac   : > { %5697 = vmatprep.mubr.msk.f32.mxu0 %vm6710_vm0, %v6709_v0 }
  0xad   : > { %5763 = vmatmul.mubr.msk.f32.gmra.mrb[56].mxu1 %vm439_vm2, %v7234_v58  ;;  %v910_v7 = vsel %vm873_vm4, %v907_v55, %v909_v62 }
  0xae   : > { %5765 = vmatprep.mubr.msk.f32.mxu1 %vm6710_vm0, %v6709_v0 }
  0xaf   : > { %5698 = vmatmul.mubr.msk.f32.gmra.mrb[56].mxu0 %vm439_vm2, %v890_v61  ;;  %v908_v61 = vsel %vm873_vm4, %v905_v47, %v907_v55 }
  0xb0   : > { %5700 = vmatprep.mubr.msk.f32.mxu0 %vm6710_vm0, %v6709_v0 }
  0xb1   : > { %5766 = vmatmul.mubr.msk.f32.gmra.mrb[58].mxu1 %vm439_vm2, %v7247_v1 }
  0xb2   : > { %5768 = vmatprep.mubr.msk.f32.mxu1 %vm6710_vm0, %v6709_v0 }
  0xb3   : > { %5701 = vmatmul.mubr.msk.f32.gmra.mrb[58].mxu0 %vm439_vm2, %v892_v5  ;;  %v1194_v5 = vrot.slane %v7101_v3, 6 }
  0xb4   : > { %5703 = vmatprep.mubr.msk.f32.mxu0 %vm6710_vm0, %v6709_v0 }
  0xb5   : > { %5769 = vmatmul.mubr.msk.f32.gmra.mrb[60].mxu1 %vm439_vm2, %v7260_v9  ;;  %v7393_v23 = vsel %vm1156_vm5, %v1194_v5, %v1196_v13 }
  0xb6   : > { %5771 = vmatprep.mubr.msk.f32.mxu1 %vm6710_vm0, %v6709_v0 }
  0xb7   : > { %5704 = vmatmul.mubr.msk.f32.gmra.mrb[60].mxu0 %vm439_vm2, %v894_v12  ;;  %v7377_v12 = vsel %vm1156_vm5, %v1192_v59, %v1194_v5  ;;  %v1448_v59 = vrot.slane %v6933_v24, 7 }
  0xb8   : > { %5706 = vmatprep.mubr.msk.f32.mxu0 %vm6710_vm0, %v6709_v0 }
  0xb9   : > { %5772 = vmatmul.mubr.msk.f32.gmra.mrb[62].mxu1 %vm439_vm2, %v7273_v15 }
  0xba   : > { %5774 = vmatprep.mubr.msk.f32.mxu1 %vm6710_vm0, %v6709_v0 }
  0xbb   : > { %5707 = vmatmul.mubr.msk.f32.gmra.mrb[62].mxu0 %vm439_vm2, %v896_v18  ;;  %v912_v18 = vsel %vm873_vm4, %v909_v62, %v911_v11  ;;  %v1450_v62 = vrot.slane %v6945_v27, 7 }
  0xbc   : > { %5709 = vmatprep.mubr.msk.f32.mxu0 %vm6710_vm0, %v6709_v0 }
  0xbd   : > { %5775 = vmatmul.mubr.msk.f32.gmra.mrb[64].mxu1 %vm439_vm2, %v7286_v22  ;;  %v1451_v5 = vsel %vm1438_vm6, %v1448_v59, %v1450_v62 }
  0xbe   : > { %5777 = vmatprep.mubr.msk.f32.mxu1 %vm6710_vm0, %v6709_v0 }
  0xbf   : > { %5710 = vmatmul.mubr.msk.f32.gmra.mrb[64].mxu0 %vm439_vm2, %v898_v25  ;;  %v1198_v25 = vrot.slane %v7382_v16, 6 }
  0xc0   : > { %5712 = vmatprep.mubr.msk.f32.mxu0 %vm6710_vm0, %v6709_v0 }
  0xc1   : > { %5778 = vmatmul.mubr.msk.f32.gmra.mrb[66].mxu1 %vm439_vm2, %v7299_v28 }
  0xc2   : > { %5780 = vmatprep.mubr.msk.f32.mxu1 %vm6710_vm0, %v6709_v0 }
  0xc3   : > { %5713 = vmatmul.mubr.msk.f32.gmra.mrb[66].mxu0 %vm439_vm2, %v900_v31  ;;  %v7408_v31 = vsel %vm1156_vm5, %v1196_v13, %v1198_v25  ;;  %v1454_v13 = vrot.slane %v6969_v33, 7 }
  0xc4   : > { %5715 = vmatprep.mubr.msk.f32.mxu0 %vm6710_vm0, %v6709_v0 }
  0xc5   : > { %5781 = vmatmul.mubr.msk.f32.gmra.mrb[68].mxu1 %vm439_vm2, %v7312_v32 }
  0xc6   : > { %5783 = vmatprep.mubr.msk.f32.mxu1 %vm6710_vm0, %v6709_v0 }
  0xc7   : > { %5716 = vmatmul.mubr.msk.f32.gmra.mrb[68].mxu0 %vm439_vm2, %v902_v37  ;;  %v1440_v37 = vrot.slane %v6872_v6, 7 }
  0xc8   : > { %5718 = vmatprep.mubr.msk.f32.mxu0 %vm6710_vm0, %v6709_v0 }
  0xc9   : > { %5784 = vmatmul.mubr.msk.f32.gmra.mrb[70].mxu1 %vm439_vm2, %v7325_v41  ;;  %v1441_v4 = vsel %vm1438_vm6, %v1439_v35, %v1440_v37  ;;  %v1443_v47 = vsel %vm1438_vm6, %v1440_v37, %v1442_v43  ;;  %v1462_v35 = vrot.slane %v7017_v45, 7 }
  0xca   : > { %5786 = vmatprep.mubr.msk.f32.mxu1 %vm6710_vm0, %v6709_v0 }
  0xcb   : > { %5719 = vmatmul.mubr.msk.f32.gmra.mrb[70].mxu0 %vm439_vm2, %v904_v44  ;;  %v5008_v44 = vld [vmem:[%s9068_s1 + $0x18] sm:$0x7] }
  0xcc   : > { %5721 = vmatprep.mubr.msk.f32.mxu0 %vm6710_vm0, %v6709_v0 }
  0xcd   : > { %5787 = vmatmul.mubr.msk.f32.gmra.mrb[72].mxu1 %vm439_vm2, %v7338_v49 }
  0xce   : > { %5789 = vmatprep.mubr.msk.f32.mxu1 %vm6710_vm0, %v6709_v0 }
  0xcf   : > { %5722 = vmatmul.mubr.msk.f32.gmra.mrb[72].mxu0 %vm439_vm2, %v906_v53  ;;  %v1446_v53 = vrot.slane %v6916_v20, 7 }
  0xd0   : > { %5724 = vmatprep.mubr.msk.f32.mxu0 %vm6710_vm0, %v6709_v0 }
  0xd1   : > { %5790 = vmatmul.mubr.msk.f32.gmra.mrb[74].mxu1 %vm439_vm2, %v7351_v56  ;;  %v1447_v55 = vsel %vm1438_vm6, %v1444_v50, %v1446_v53 }
  0xd2   : > { %5792 = vmatprep.mubr.msk.f32.mxu1 %vm6710_vm0, %v6709_v0 }
  0xd3   : > { %5725 = vmatmul.mubr.msk.f32.gmra.mrb[74].mxu0 %vm439_vm2, %v908_v61  ;;  %v1449_v61 = vsel %vm1438_vm6, %v1446_v53, %v1448_v59 }
  0xd4   : > { %5727 = vmatprep.mubr.msk.f32.mxu0 %vm6710_vm0, %v6709_v0 }
  0xd5   : > { %5793 = vmatmul.mubr.msk.f32.gmra.mrb[76].mxu1 %vm439_vm2, %v7364_v2 }
  0xd6   : > { %5795 = vmatprep.mubr.msk.f32.mxu1 %vm6710_vm0, %v6709_v0 }
  0xd7   : > { %5728 = vmatmul.mubr.msk.f32.gmra.mrb[76].mxu0 %vm439_vm2, %v910_v7  ;;  %v1452_v7 = vrot.slane %v6957_v30, 7 }
  0xd8   : > { %5730 = vmatprep.mubr.msk.f32.mxu0 %vm6710_vm0, %v6709_v0 }
  0xd9   : > { %5796 = vmatmul.mubr.msk.f32.gmra.mrb[78].mxu1 %vm439_vm2, %v7377_v12  ;;  %v1453_v11 = vsel %vm1438_vm6, %v1450_v62, %v1452_v7 }
  0xda   : > { %5798 = vmatprep.mubr.msk.f32.mxu1 %vm6710_vm0, %v6709_v0 }
  0xdb   : > { %5731 = vmatmul.mubr.msk.f32.gmra.mrb[78].mxu0 %vm439_vm2, %v912_v18  ;;  %v1455_v18 = vsel %vm1438_vm6, %v1452_v7, %v1454_v13 }
  0xdc   : > { %5733 = vmatprep.mubr.msk.f32.mxu0 %vm6710_vm0, %v6709_v0 }
  0xdd   : > { %5799 = vmatmul.mubr.msk.f32.gmra.mrb[80].mxu1 %vm439_vm2, %v7393_v23 }
  0xde   : > { %5801 = vmatprep.mubr.msk.f32.mxu1 %vm6710_vm0, %v6709_v0 }
  0xdf   : > { %5734 = vmatmul.mubr.msk.f32.gmra.mrb[80].mxu0 %vm439_vm2, %v914_v26  ;;  %v1457_v26 = vsel %vm1438_vm6, %v1454_v13, %v1456_v19 }
  0xe0   : > { %5736 = vmatprep.mubr.msk.f32.mxu0 %vm6710_vm0, %v6709_v0 }
  0xe1   : > { %5802 = vmatmul.mubr.msk.f32.gmra.mrb[82].mxu1 %vm439_vm2, %v7408_v31 }
  0xe2   : > { %5871 = vmatprep.mubr.msk.f32.mxu1 %vm6710_vm0, %v6709_v0 }
  0xe3   : > { %5737 = vmatmul.mubr.msk.f32.gmra.mrb[82].mxu0 %vm439_vm2, %v916_v17  ;;  %v1460_v17 = vrot.slane %v7005_v42, 7 }
  0xe4   : > { %5806 = vmatprep.mubr.msk.f32.mxu0 %vm6710_vm0, %v6709_v0 }
  0xe5   : > { %5872 = vmatmul.mubr.msk.f32.vlgmr.msra.gmra.mrb[84].mxu1 %vm439_vm2, %v6872_v6  ;;  %v1445_v6 = vsel %vm1438_vm6, %v1442_v43, %v1444_v50  ;;  %v1463_v37 = vsel %vm1438_vm6, %v1460_v17, %v1462_v35 }
  0xe6   : > { %5874 = vmatprep.mubr.msk.f32.mxu1 %vm6710_vm0, %v6709_v0  ;;  %6000 = vmatpush3.msk.msra.mxu1 %vm482_vm1, %v5031_v38 }
  0xe7   : > { %5807 = vmatmul.mubr.msk.f32.vlgmr.msra.gmra.mrb[84].mxu0 %vm439_vm2, %v1441_v4  ;;  %v1464_v4 = vrot.slane %v7029_v48, 7 }
  0xe8   : > { %5935 = vmatpush3.msk.msra.mxu0 %vm482_vm1, %v5008_v44  ;;  %5809 = vmatprep.mubr.msk.f32.mxu0 %vm6710_vm0, %v6709_v0 }
  0xe9   : > { %5875 = vmatmul.mubr.msk.f32.gmra.mrb[86].mxu1 %vm439_vm2, %v6884_v10  ;;  %6064 = vmatprep.subr.mxu0 %v6709_v0  ;;  %v1465_v50 = vsel %vm1438_vm6, %v1462_v35, %v1464_v4 }
  0xea   : > { %5877 = vmatprep.mubr.msk.f32.mxu1 %vm6710_vm0, %v6709_v0 }
  0xeb   : > { %5810 = vmatmul.mubr.msk.f32.gmra.mrb[86].mxu0 %vm439_vm2, %v1443_v47 }
  0xec   : > { %5812 = vmatprep.mubr.msk.f32.mxu0 %vm6710_vm0, %v6709_v0 }
  0xed   : > { %5878 = vmatmul.mubr.msk.f32.gmra.mrb[88].mxu1 %vm439_vm2, %v6897_v14 }
  0xee   : > { %5880 = vmatprep.mubr.msk.f32.mxu1 %vm6710_vm0, %v6709_v0 }
  0xef   : > { %5813 = vmatmul.mubr.msk.f32.gmra.mrb[88].mxu0 %vm439_vm2, %v1445_v6  ;;  %v1466_v6 = vrot.slane %v7041_v51, 7 }
  0xf0   : > { %5815 = vmatprep.mubr.msk.f32.mxu0 %vm6710_vm0, %v6709_v0 }
  0xf1   : > { %5881 = vmatmul.mubr.msk.f32.gmra.mrb[90].mxu1 %vm439_vm2, %v6916_v20  ;;  %v1467_v62 = vsel %vm1438_vm6, %v1464_v4, %v1466_v6 }
  0xf2   : > { %5883 = vmatprep.mubr.msk.f32.mxu1 %vm6710_vm0, %v6709_v0 }
  0xf3   : > { %5816 = vmatmul.mubr.msk.f32.gmra.mrb[90].mxu0 %vm439_vm2, %v1447_v55 }
  0xf4   : > { %5818 = vmatprep.mubr.msk.f32.mxu0 %vm6710_vm0, %v6709_v0 }
  0xf5   : > { %5884 = vmatmul.mubr.msk.f32.gmra.mrb[92].mxu1 %vm439_vm2, %v6933_v24 }
  0xf6   : > { %5886 = vmatprep.mubr.msk.f32.mxu1 %vm6710_vm0, %v6709_v0 }
  0xf7   : > { %5819 = vmatmul.mubr.msk.f32.gmra.mrb[92].mxu0 %vm439_vm2, %v1449_v61 }
  0xf8   : > { %5821 = vmatprep.mubr.msk.f32.mxu0 %vm6710_vm0, %v6709_v0 }
  0xf9   : > { %5887 = vmatmul.mubr.msk.f32.gmra.mrb[94].mxu1 %vm439_vm2, %v6945_v27 }
  0xfa   : > { %5889 = vmatprep.mubr.msk.f32.mxu1 %vm6710_vm0, %v6709_v0 }
  0xfb   : > { %5822 = vmatmul.mubr.msk.f32.gmra.mrb[94].mxu0 %vm439_vm2, %v1451_v5  ;;  %v1468_v5 = vrot.slane %v7053_v54, 7 }
  0xfc   : > { %5824 = vmatprep.mubr.msk.f32.mxu0 %vm6710_vm0, %v6709_v0 }
  0xfd   : > { %5890 = vmatmul.mubr.msk.f32.gmra.mrb[96].mxu1 %vm439_vm2, %v6957_v30 }
  0xfe   : > { %5892 = vmatprep.mubr.msk.f32.mxu1 %vm6710_vm0, %v6709_v0 }
  0xff   : > { %5825 = vmatmul.mubr.msk.f32.gmra.mrb[96].mxu0 %vm439_vm2, %v1453_v11 }
 0x100   : > { %5827 = vmatprep.mubr.msk.f32.mxu0 %vm6710_vm0, %v6709_v0 }
 0x101   : > { %5893 = vmatmul.mubr.msk.f32.gmra.mrb[98].mxu1 %vm439_vm2, %v6969_v33  ;;  %v1459_v33 = vsel %vm1438_vm6, %v1456_v19, %v1458_v29  ;;  %v1469_v19 = vsel %vm1438_vm6, %v1466_v6, %v1468_v5 }
 0x102   : > { %5895 = vmatprep.mubr.msk.f32.mxu1 %vm6710_vm0, %v6709_v0 }
 0x103   : > { %5828 = vmatmul.mubr.msk.f32.gmra.mrb[98].mxu0 %vm439_vm2, %v1455_v18 }
 0x104   : > { %5830 = vmatprep.mubr.msk.f32.mxu0 %vm6710_vm0, %v6709_v0 }
 0x105   : > { %5896 = vmatmul.mubr.msk.f32.gmra.mrb[100].mxu1 %vm439_vm2, %v6981_v36  ;;  %v1461_v36 = vsel %vm1438_vm6, %v1458_v29, %v1460_v17 }
 0x106   : > { %5898 = vmatprep.mubr.msk.f32.mxu1 %vm6710_vm0, %v6709_v0 }
 0x107   : > { %5831 = vmatmul.mubr.msk.f32.gmra.mrb[100].mxu0 %vm439_vm2, %v1457_v26  ;;  %v1470_v26 = vrot.slane %v7065_v57, 7 }
 0x108   : > { %5833 = vmatprep.mubr.msk.f32.mxu0 %vm6710_vm0, %v6709_v0 }
 0x109   : > { %5899 = vmatmul.mubr.msk.f32.gmra.mrb[102].mxu1 %vm439_vm2, %v6993_v39  ;;  %v1471_v35 = vsel %vm1438_vm6, %v1468_v5, %v1470_v26 }
 0x10a   : > { %5901 = vmatprep.mubr.msk.f32.mxu1 %vm6710_vm0, %v6709_v0 }
 0x10b   : > { %5834 = vmatmul.mubr.msk.f32.gmra.mrb[102].mxu0 %vm439_vm2, %v1459_v33 }
 0x10c   : > { %5836 = vmatprep.mubr.msk.f32.mxu0 %vm6710_vm0, %v6709_v0 }
 0x10d   : > { %5902 = vmatmul.mubr.msk.f32.gmra.mrb[104].mxu1 %vm439_vm2, %v7005_v42 }
 0x10e   : > { %5904 = vmatprep.mubr.msk.f32.mxu1 %vm6710_vm0, %v6709_v0 }
 0x10f   : > { %5837 = vmatmul.mubr.msk.f32.gmra.mrb[104].mxu0 %vm439_vm2, %v1461_v36  ;;  %v767_v39 = vpop.f32.mrb[0].mxu1 }
 0x110   : > { %5839 = vmatprep.mubr.msk.f32.mxu0 %vm6710_vm0, %v6709_v0  ;;  %v5613_v38 = vpop.f32.mrb[1].mxu1 }
 0x111   : > { %5905 = vmatmul.mubr.msk.f32.gmra.mrb[106].mxu1 %vm439_vm2, %v7017_v45 }
 0x112   : > { %v552_v43 = vpop.f32.mrb[0].mxu0  ;;  %5907 = vmatprep.mubr.msk.f32.mxu1 %vm6710_vm0, %v6709_v0 }
 0x113   : > { %v7537_v42 = vadd.f32 %v767_v39, %v552_v43  ;;  %v5548_v44 = vpop.f32.mrb[1].mxu0  ;;  %5840 = vmatmul.mubr.msk.f32.gmra.mrb[106].mxu0 %vm439_vm2, %v1463_v37  ;;  %v1472_v39 = vrot.slane %v7077_v60, 7 }
 0x114   : > { %v772_v47 = vpop.f32.mrb[2].mxu1  ;;  %5842 = vmatprep.mubr.msk.f32.mxu0 %vm6710_vm0, %v6709_v0 }
 0x115   : > { %v5616_v53 = vpop.f32.mrb[3].mxu1  ;;  %5908 = vmatmul.mubr.msk.f32.gmra.mrb[108].mxu1 %vm439_vm2, %v7029_v48  ;;  %v1473_v44 = vsel %vm1438_vm6, %v1470_v26, %v1472_v39 }
 0x116   : > { %v557_v45 = vpop.f32.mrb[2].mxu0  ;;  %5910 = vmatprep.mubr.msk.f32.mxu1 %vm6710_vm0, %v6709_v0 }
 0x117   : > { %v7548_v55 = vadd.f32 %v772_v47, %v557_v45  ;;  %v5551_v59 = vpop.f32.mrb[3].mxu0  ;;  %5843 = vmatmul.mubr.msk.f32.gmra.mrb[108].mxu0 %vm439_vm2, %v1465_v50  ;;  %v1474_v47 = vrot.slane %v7089_v63, 7 }
 0x118   : > { %v777_v61 = vpop.f32.mrb[4].mxu1  ;;  %5845 = vmatprep.mubr.msk.f32.mxu0 %vm6710_vm0, %v6709_v0 }
 0x119   : > { %v5619_v7 = vpop.f32.mrb[5].mxu1  ;;  %5911 = vmatmul.mubr.msk.f32.gmra.mrb[110].mxu1 %vm439_vm2, %v7041_v51  ;;  %v1475_v59 = vsel %vm1438_vm6, %v1472_v39, %v1474_v47  ;;  %v2204_v39 = vrot.slane %v6884_v10, 5 }
 0x11a   : > { %v562_v48 = vpop.f32.mrb[4].mxu0  ;;  %5913 = vmatprep.mubr.msk.f32.mxu1 %vm6710_vm0, %v6709_v0 }
 0x11b   : > { %v7559_v11 = vadd.f32 %v777_v61, %v562_v48  ;;  %v5554_v13 = vpop.f32.mrb[5].mxu0  ;;  %5846 = vmatmul.mubr.msk.f32.gmra.mrb[110].mxu0 %vm439_vm2, %v1467_v62  ;;  %v1476_v61 = vrot.slane %v7101_v3, 7 }
 0x11c   : > { %v782_v18 = vpop.f32.mrb[6].mxu1  ;;  %5848 = vmatprep.mubr.msk.f32.mxu0 %vm6710_vm0, %v6709_v0 }
 0x11d   : > { %v5622_v29 = vpop.f32.mrb[7].mxu1  ;;  %5914 = vmatmul.mubr.msk.f32.gmra.mrb[112].mxu1 %vm439_vm2, %v7053_v54  ;;  %v1477_v13 = vsel %vm1438_vm6, %v1474_v47, %v1476_v61  ;;  %v1924_v47 = vrot.slane %v6897_v14, 4 }
 0x11e   : > { %v567_v51 = vpop.f32.mrb[6].mxu0  ;;  %5916 = vmatprep.mubr.msk.f32.mxu1 %vm6710_vm0, %v6709_v0 }
 0x11f   : > { %v7570_v33 = vadd.f32 %v782_v18, %v567_v51  ;;  %v5557_v17 = vpop.f32.mrb[7].mxu0  ;;  %5849 = vmatmul.mubr.msk.f32.gmra.mrb[112].mxu0 %vm439_vm2, %v1469_v19  ;;  %v1478_v18 = vrot.slane %v7113_v8, 7 }
 0x120   : > { %v787_v36 = vpop.f32.mrb[8].mxu1  ;;  %5851 = vmatprep.mubr.msk.f32.mxu0 %vm6710_vm0, %v6709_v0 }
 0x121   : > { %v5625_v37 = vpop.f32.mrb[9].mxu1  ;;  %5917 = vmatmul.mubr.msk.f32.gmra.mrb[114].mxu1 %vm439_vm2, %v7065_v57  ;;  %v1479_v17 = vsel %vm1438_vm6, %v1476_v61, %v1478_v18 }
 0x122   : > { %v572_v54 = vpop.f32.mrb[8].mxu0  ;;  %5919 = vmatprep.mubr.msk.f32.mxu1 %vm6710_vm0, %v6709_v0  ;;  %v2205_v37 = vrot.slane %v6897_v14, 5 }
 0x123   : > { %v7581_v38 = vadd.f32 %v787_v36, %v572_v54  ;;  %v5560_v4 = vpop.f32.mrb[9].mxu0  ;;  %5852 = vmatmul.mubr.msk.f32.gmra.mrb[114].mxu0 %vm439_vm2, %v1471_v35  ;;  %v1480_v36 = vrot.slane %v7382_v16, 7 }
 0x124   : > { %v792_v43 = vpop.f32.mrb[10].mxu1  ;;  %5854 = vmatprep.mubr.msk.f32.mxu0 %vm6710_vm0, %v6709_v0 }
 0x125   : > { %v5628_v50 = vpop.f32.mrb[11].mxu1  ;;  %5920 = vmatmul.mubr.msk.f32.gmra.mrb[116].mxu1 %vm439_vm2, %v7077_v60 }
 0x126   : > { %v577_v57 = vpop.f32.mrb[10].mxu0  ;;  %5922 = vmatprep.mubr.msk.f32.mxu1 %vm6710_vm0, %v6709_v0 }
 0x127   : > { %v7592_v6 = vadd.f32 %v792_v43, %v577_v57  ;;  %v5563_v53 = vpop.f32.mrb[11].mxu0  ;;  %5855 = vmatmul.mubr.msk.f32.gmra.mrb[116].mxu0 %vm439_vm2, %v1473_v44  ;;  %v1481_v44 = vsel %vm1438_vm6, %v1478_v18, %v1480_v36  ;;  %v2209_v18 = vrot.slane %v6933_v24, 5 }
 0x128   : > { %v797_v45 = vpop.f32.mrb[12].mxu1  ;;  %5857 = vmatprep.mubr.msk.f32.mxu0 %vm6710_vm0, %v6709_v0  ;;  %v2206_v53 = vsel %vm482_vm1, %v2204_v39, %v2205_v37 }
 0x129   : > { %v5631_v62 = vpop.f32.mrb[13].mxu1  ;;  %5923 = vmatmul.mubr.msk.f32.gmra.mrb[118].mxu1 %vm439_vm2, %v7089_v63 }
 0x12a   : > { %v582_v60 = vpop.f32.mrb[12].mxu0  ;;  %5925 = vmatprep.mubr.msk.f32.mxu1 %vm6710_vm0, %v6709_v0  ;;  %v1926_v62 = vrot.slane %v6916_v20, 4 }
 0x12b   : > { %v7603_v5 = vadd.f32 %v797_v45, %v582_v60  ;;  %v5566_v7 = vpop.f32.mrb[13].mxu0  ;;  %5858 = vmatmul.mubr.msk.f32.gmra.mrb[118].mxu0 %vm439_vm2, %v1475_v59  ;;  %v2207_v45 = vrot.slane %v6916_v20, 5  ;;  %v5054_v60 = vld [vmem:[%s9068_s1 + $0x20] sm:$0x7] }
 0x12c   : > { %v802_v48 = vpop.f32.mrb[14].mxu1  ;;  %5860 = vmatprep.mubr.msk.f32.mxu0 %vm6710_vm0, %v6709_v0 }
 0x12d   : > { %v5634_v19 = vpop.f32.mrb[15].mxu1  ;;  %5926 = vmatmul.mubr.msk.f32.gmra.mrb[120].mxu1 %vm439_vm2, %v7101_v3 }
 0x12e   : > { %v587_v63 = vpop.f32.mrb[14].mxu0  ;;  %5928 = vmatprep.mubr.msk.f32.mxu1 %vm6710_vm0, %v6709_v0 }
 0x12f   : > { %v7614_v26 = vadd.f32 %v802_v48, %v587_v63  ;;  %v5569_v29 = vpop.f32.mrb[15].mxu0  ;;  %5861 = vmatmul.mubr.msk.f32.gmra.mrb[120].mxu0 %vm439_vm2, %v1477_v13  ;;  %v2208_v13 = vsel %vm482_vm1, %v2205_v37, %v2207_v45 }
 0x130   : > { %v807_v51 = vpop.f32.mrb[16].mxu1  ;;  %5863 = vmatprep.mubr.msk.f32.mxu0 %vm6710_vm0, %v6709_v0  ;;  %v1927_v29 = vsel %vm1922_vm7, %v1924_v47, %v1926_v62 }
 0x131   : > { %v5637_v35 = vpop.f32.mrb[17].mxu1  ;;  %5929 = vmatmul.mubr.msk.f32.gmra.mrb[122].mxu1 %vm439_vm2, %v7113_v8  ;;  %v1923_v8 = vrot.slane %v6884_v10, 4 }
 0x132   : > { %v592_v3 = vpop.f32.mrb[16].mxu0  ;;  %5931 = vmatprep.mubr.msk.f32.mxu1 %vm6710_vm0, %v6709_v0  ;;  %v2210_v35 = vsel %vm482_vm1, %v2207_v45, %v2209_v18 }
 0x133   : > { %v7627_v54 = vadd.f32 %v807_v51, %v592_v3  ;;  %v5572_v4 = vpop.f32.mrb[17].mxu0  ;;  %5864 = vmatmul.mubr.msk.f32.gmra.mrb[122].mxu0 %vm439_vm2, %v1479_v17  ;;  %v1925_v14 = vsel %vm1922_vm7, %v1923_v8, %v1924_v47  ;;  %v1928_v51 = vrot.slane %v6933_v24, 4  ;;  %v2211_v3 = vrot.slane %v6945_v27, 5 }
 0x134   : > { %v812_v43 = vpop.f32.mrb[18].mxu1  ;;  %5866 = vmatprep.mubr.msk.f32.mxu0 %vm6710_vm0, %v6709_v0 }
 0x135   : > { %v5640_v50 = vpop.f32.mrb[19].mxu1  ;;  %5932 = vmatmul.mubr.msk.f32.gmra.mrb[124].mxu1 %vm439_vm2, %v7382_v16  ;;  %v1929_v24 = vsel %vm1922_vm7, %v1926_v62, %v1928_v51  ;;  %v2212_v47 = vsel %vm482_vm1, %v2209_v18, %v2211_v3 }
 0x136   : > { %v597_v57 = vpop.f32.mrb[18].mxu0  ;;  %6001 = vmatprep.mubr.msk.f32.mxu1 %vm6710_vm0, %v6709_v0  ;;  %v2213_v50 = vrot.slane %v6957_v30, 5 }
 0x137   : > { %v7641_v59 = vadd.f32 %v812_v43, %v597_v57  ;;  %v5575_v61 = vpop.f32.mrb[19].mxu0  ;;  %5867 = vmatmul.mubr.msk.f32.gmra.mrb[124].mxu0 %vm439_vm2, %v1481_v44  ;;  %v1930_v43 = vrot.slane %v6945_v27, 4 }
 0x138   : > { %v817_v10 = vpop.f32.mrb[20].mxu1  ;;  %5936 = vmatprep.mubr.msk.f32.mxu0 %vm6710_vm0, %v6709_v0  ;;  %v6596_v61 = vld [vmem:[%s6857_s29 + $0x40] sm:$0xff]  ;;  %v2214_v30 = vsel %vm482_vm1, %v2211_v3, %v2213_v50 }
 0x139   : > { %v5643_v7 = vpop.f32.mrb[21].mxu1  ;;  %6002 = vmatmul.mubr.msk.f32.vlgmr.msra.gmra.mrb[126].mxu1 %vm439_vm2, %v2206_v53  ;;  %v1931_v27 = vsel %vm1922_vm7, %v1928_v51, %v1930_v43 }
 0x13a   : > { %v602_v48 = vpop.f32.mrb[20].mxu0  ;;  %6004 = vmatprep.mubr.msk.f32.mxu1 %vm6710_vm0, %v6709_v0 }
 0x13b   : > { %v7656_v19 = vadd.f32 %v817_v10, %v602_v48  ;;  %v5578_v63 = vpop.f32.mrb[21].mxu0  ;;  %5937 = vmatmul.mubr.msk.f32.vlgmr.msra.gmra.mrb[126].mxu0 %vm439_vm2, %v1925_v14  ;;  %v1932_v10 = vrot.slane %v6596_v61, 4 }
 0x13c   : > { %6065 = vmatpush3.msk.msra.mxu0 %vm482_vm1, %v5054_v60  ;;  %v822_v20 = vpop.f32.mrb[22].mxu1  ;;  %5939 = vmatprep.mubr.msk.f32.mxu0 %vm6710_vm0, %v6709_v0  ;;  %v6597_v60 = vld [vmem:[%s6857_s29 + $0x48] sm:$0xff] }
 0x13d   : > { %v5646_v17 = vpop.f32.mrb[23].mxu1  ;;  %6005 = vmatmul.mubr.msk.f32.gmra.mrb[128].mxu1 %vm439_vm2, %v2208_v13  ;;  %v2215_v7 = vrot.slane %v6597_v60, 5  ;;  %v1933_v63 = vsel %vm1922_vm7, %v1930_v43, %v1932_v10 }
 0x13e   : > { %v607_v36 = vpop.f32.mrb[22].mxu0  ;;  %6007 = vmatprep.mubr.msk.f32.mxu1 %vm6710_vm0, %v6709_v0 }
 0x13f   : > { %v7669_v39 = vadd.f32 %v822_v20, %v607_v36  ;;  %v5581_v37 = vpop.f32.mrb[23].mxu0  ;;  %5940 = vmatmul.mubr.msk.f32.gmra.mrb[128].mxu0 %vm439_vm2, %v1927_v29  ;;  %v1934_v20 = vrot.slane %v6597_v60, 4  ;;  %v2216_v17 = vsel %vm482_vm1, %v2213_v50, %v2215_v7  ;;  %v6598_v36 = vld [vmem:[%s6857_s29 + $0x50] sm:$0xff]  ;;  %v6599_v50 = vld [vmem:[%s6857_s29 + $0x58] sm:$0xff] }
 0x140   : > { %v827_v4 = vpop.f32.mrb[24].mxu1  ;;  %5942 = vmatprep.mubr.msk.f32.mxu0 %vm6710_vm0, %v6709_v0  ;;  %v1936_v43 = vrot.slane %v6598_v36, 4 }
 0x141   : > { %v5649_v44 = vpop.f32.mrb[25].mxu1  ;;  %6008 = vmatmul.mubr.msk.f32.gmra.mrb[130].mxu1 %vm439_vm2, %v2210_v35  ;;  %v2217_v35 = vrot.slane %v6598_v36, 5 }
 0x142   : > { %v612_v8 = vpop.f32.mrb[24].mxu0  ;;  %6010 = vmatprep.mubr.msk.f32.mxu1 %vm6710_vm0, %v6709_v0 }
 0x143   : > { %v7681_v57 = vadd.f32 %v827_v4, %v612_v8  ;;  %v5584_v53 = vpop.f32.mrb[25].mxu0  ;;  %5943 = vmatmul.mubr.msk.f32.gmra.mrb[130].mxu0 %vm439_vm2, %v1929_v24  ;;  %v1935_v24 = vsel %vm1922_vm7, %v1932_v10, %v1934_v20  ;;  %v1937_v10 = vsel %vm1922_vm7, %v1934_v20, %v1936_v43 }
 0x144   : > { %v832_v45 = vpop.f32.mrb[26].mxu1  ;;  %5945 = vmatprep.mubr.msk.f32.mxu0 %vm6710_vm0, %v6709_v0  ;;  %v2219_v53 = vrot.slane %v6599_v50, 5 }
 0x145   : > { %v5652_v14 = vpop.f32.mrb[27].mxu1  ;;  %6011 = vmatmul.mubr.msk.f32.gmra.mrb[132].mxu1 %vm439_vm2, %v2212_v47  ;;  %v2218_v47 = vsel %vm482_vm1, %v2215_v7, %v2217_v35  ;;  %v6600_v7 = vld [vmem:[%s6857_s29 + $0x60] sm:$0xff] }
 0x146   : > { %v617_v62 = vpop.f32.mrb[26].mxu0  ;;  %6013 = vmatprep.mubr.msk.f32.mxu1 %vm6710_vm0, %v6709_v0  ;;  %v1938_v14 = vrot.slane %v6599_v50, 4  ;;  %v2220_v60 = vsel %vm482_vm1, %v2217_v35, %v2219_v53 }
 0x147   : > { %v7693_v48 = vadd.f32 %v832_v45, %v617_v62  ;;  %v5587_v13 = vpop.f32.mrb[27].mxu0  ;;  %5946 = vmatmul.mubr.msk.f32.gmra.mrb[132].mxu0 %vm439_vm2, %v1931_v27 }
 0x148   : > { %v837_v18 = vpop.f32.mrb[28].mxu1  ;;  %5948 = vmatprep.mubr.msk.f32.mxu0 %vm6710_vm0, %v6709_v0  ;;  %v2221_v13 = vrot.slane %v6600_v7, 5  ;;  %v1939_v20 = vsel %vm1922_vm7, %v1936_v43, %v1938_v14 }
 0x149   : > { %v5655_v29 = vpop.f32.mrb[29].mxu1  ;;  %6014 = vmatmul.mubr.msk.f32.gmra.mrb[134].mxu1 %vm439_vm2, %v2214_v30 }
 0x14a   : > { %v622_v51 = vpop.f32.mrb[28].mxu0  ;;  %6016 = vmatprep.mubr.msk.f32.mxu1 %vm6710_vm0, %v6709_v0  ;;  %v2222_v35 = vsel %vm482_vm1, %v2219_v53, %v2221_v13 }
 0x14b   : > { %v7704_v3 = vadd.f32 %v837_v18, %v622_v51  ;;  %v5590_v37 = vpop.f32.mrb[29].mxu0  ;;  %5949 = vmatmul.mubr.msk.f32.gmra.mrb[134].mxu0 %vm439_vm2, %v1933_v63  ;;  %v1940_v51 = vrot.slane %v6600_v7, 4 }
 0x14c   : > { %v842_v4 = vpop.f32.mrb[30].mxu1  ;;  %5951 = vmatprep.mubr.msk.f32.mxu0 %vm6710_vm0, %v6709_v0  ;;  %v6601_v37 = vld [vmem:[%s6857_s29 + $0x68] sm:$0xff] }
 0x14d   : > { %v5658_v44 = vpop.f32.mrb[31].mxu1  ;;  %6017 = vmatmul.mubr.msk.f32.gmra.mrb[136].mxu1 %vm439_vm2, %v2216_v17  ;;  %v1941_v43 = vsel %vm1922_vm7, %v1938_v14, %v1940_v51 }
 0x14e   : > { %v627_v8 = vpop.f32.mrb[30].mxu0  ;;  %6019 = vmatprep.mubr.msk.f32.mxu1 %vm6710_vm0, %v6709_v0 }
 0x14f   : > { %v7715_v45 = vadd.f32 %v842_v4, %v627_v8  ;;  %v5593_v27 = vpop.f32.mrb[31].mxu0  ;;  %5952 = vmatmul.mubr.msk.f32.gmra.mrb[136].mxu0 %vm439_vm2, %v1935_v24  ;;  %v2223_v4 = vrot.slane %v6601_v37, 5 }
 0x150   : > { %v847_v61 = vpop.f32.mrb[32].mxu1  ;;  %5954 = vmatprep.mubr.msk.f32.mxu0 %vm6710_vm0, %v6709_v0 }
 0x151   : > { %v5661_v62 = vpop.f32.mrb[33].mxu1  ;;  %6020 = vmatmul.mubr.msk.f32.gmra.mrb[138].mxu1 %vm439_vm2, %v2218_v47  ;;  %v1942_v47 = vrot.slane %v6601_v37, 4  ;;  %v2224_v53 = vsel %vm482_vm1, %v2221_v13, %v2223_v4 }
 0x152   : > { %v632_v30 = vpop.f32.mrb[32].mxu0  ;;  %6022 = vmatprep.mubr.msk.f32.mxu1 %vm6710_vm0, %v6709_v0 }
 0x153   : > { %v7726_v18 = vadd.f32 %v847_v61, %v632_v30  ;;  %v5596_v63 = vpop.f32.mrb[33].mxu0  ;;  %5955 = vmatmul.mubr.msk.f32.gmra.mrb[138].mxu0 %vm439_vm2, %v1937_v10  ;;  %v6602_v61 = vld [vmem:[%s6857_s29 + $0x70] sm:$0xff]  ;;  %v1943_v14 = vsel %vm1922_vm7, %v1940_v51, %v1942_v47 }
 0x154   : > { %v852_v29 = vpop.f32.mrb[34].mxu1  ;;  %5957 = vmatprep.mubr.msk.f32.mxu0 %vm6710_vm0, %v6709_v0  ;;  %v2225_v10 = vrot.slane %v6602_v61, 5  ;;  %v1944_v7 = vrot.slane %v6602_v61, 4 }
 0x155   : > { %v5664_v17 = vpop.f32.mrb[35].mxu1  ;;  %6023 = vmatmul.mubr.msk.f32.gmra.mrb[140].mxu1 %vm439_vm2, %v2220_v60 }
 0x156   : > { %v637_v36 = vpop.f32.mrb[34].mxu0  ;;  %6025 = vmatprep.mubr.msk.f32.mxu1 %vm6710_vm0, %v6709_v0  ;;  %v2226_v13 = vsel %vm482_vm1, %v2223_v4, %v2225_v10  ;;  %v1945_v51 = vsel %vm1922_vm7, %v1942_v47, %v1944_v7 }
 0x157   : > { %v7737_v24 = vadd.f32 %v852_v29, %v637_v36  ;;  %v5599_v44 = vpop.f32.mrb[35].mxu0  ;;  %5958 = vmatmul.mubr.msk.f32.gmra.mrb[140].mxu0 %vm439_vm2, %v1939_v20  ;;  %v6603_v20 = vld [vmem:[%s6857_s29 + $0x78] sm:$0xff] }
 0x158   : > { %v857_v8 = vpop.f32.mrb[36].mxu1  ;;  %5960 = vmatprep.mubr.msk.f32.mxu0 %vm6710_vm0, %v6709_v0  ;;  %v2227_v17 = vrot.slane %v6603_v20, 5  ;;  %v1946_v44 = vrot.slane %v6603_v20, 4 }
 0x159   : > { %v5667_v50 = vpop.f32.mrb[37].mxu1  ;;  %6026 = vmatmul.mubr.msk.f32.gmra.mrb[142].mxu1 %vm439_vm2, %v2222_v35 }
 0x15a   : > { %v642_v27 = vpop.f32.mrb[36].mxu0  ;;  %6028 = vmatprep.mubr.msk.f32.mxu1 %vm6710_vm0, %v6709_v0  ;;  %v2228_v4 = vsel %vm482_vm1, %v2225_v10, %v2227_v17  ;;  %v6604_v50 = vld [vmem:[%s6857_s29 + $0x80] sm:$0xff]  ;;  %v1947_v47 = vsel %vm1922_vm7, %v1944_v7, %v1946_v44 }
 0x15b   : > { %v7748_v62 = vadd.f32 %v857_v8, %v642_v27  ;;  %v5602_v30 = vpop.f32.mrb[37].mxu0  ;;  %5961 = vmatmul.mubr.msk.f32.gmra.mrb[142].mxu0 %vm439_vm2, %v1941_v43  ;;  %v2229_v27 = vrot.slane %v6604_v50, 5 }
 0x15c   : > { %v862_v60 = vpop.f32.mrb[38].mxu1  ;;  %5963 = vmatprep.mubr.msk.f32.mxu0 %vm6710_vm0, %v6709_v0 }
 0x15d   : > { %v5670_v63 = vpop.f32.mrb[39].mxu1  ;;  %6029 = vmatmul.mubr.msk.f32.gmra.mrb[144].mxu1 %vm439_vm2, %v2224_v53  ;;  %v2230_v10 = vsel %vm482_vm1, %v2227_v17, %v2229_v27 }
 0x15e   : > { %v647_v29 = vpop.f32.mrb[38].mxu0  ;;  %6031 = vmatprep.mubr.msk.f32.mxu1 %vm6710_vm0, %v6709_v0 }
 0x15f   : > { %v7759_v36 = vadd.f32 %v862_v60, %v647_v29  ;;  %v5605_v35 = vpop.f32.mrb[39].mxu0  ;;  %5964 = vmatmul.mubr.msk.f32.gmra.mrb[144].mxu0 %vm439_vm2, %v1943_v14  ;;  %v1948_v60 = vrot.slane %v6604_v50, 4  ;;  %v6605_v29 = vld [vmem:[%s6857_s29 + $0x88] sm:$0xff] }
 0x160   : > { %v867_v37 = vpop.f32.mrb[40].mxu1  ;;  %5966 = vmatprep.mubr.msk.f32.mxu0 %vm6710_vm0, %v6709_v0 }
 0x161   : > { %6032 = vmatmul.mubr.msk.f32.gmra.mrb[146].mxu1 %vm439_vm2, %v2226_v13  ;;  %v5673_v8 = vpop.f32.mrb[41].mxu1  ;;  %v2231_v13 = vrot.slane %v6605_v29, 5  ;;  %v1949_v7 = vsel %vm1922_vm7, %v1946_v44, %v1948_v60 }
 0x162   : > { %v652_v43 = vpop.f32.mrb[40].mxu0  ;;  %6034 = vmatprep.mubr.msk.f32.mxu1 %vm6710_vm0, %v6709_v0 }
 0x163   : > { %v7770_v53 = vadd.f32 %v867_v37, %v652_v43  ;;  %v5608_v61 = vpop.f32.mrb[41].mxu0  ;;  %5967 = vmatmul.mubr.msk.f32.gmra.mrb[146].mxu0 %vm439_vm2, %v1945_v51  ;;  %v1950_v51 = vrot.slane %v6605_v29, 4  ;;  %v6607_v29 = vld [vmem:[%s6857_s29 + $0x98] sm:$0xff] }
 0x164   : > { %5969 = vmatprep.mubr.msk.f32.mxu0 %vm6710_vm0, %v6709_v0  ;;  %v1311_v30 = vpop.f32.mrb[42].mxu1 }
 0x165   : > { %6035 = vmatmul.mubr.msk.f32.gmra.mrb[148].mxu1 %vm439_vm2, %v2228_v4  ;;  %v5743_v14 = vpop.f32.mrb[43].mxu1  ;;  %v6606_v4 = vld [vmem:[%s6857_s29 + $0x90] sm:$0xff]  ;;  %v1951_v44 = vsel %vm1922_vm7, %v1948_v60, %v1950_v51 }
 0x166   : > { %v1028_v63 = vpop.f32.mrb[42].mxu0  ;;  %6037 = vmatprep.mubr.msk.f32.mxu1 %vm6710_vm0, %v6709_v0  ;;  %v2233_v50 = vrot.slane %v6606_v4, 5  ;;  %v1952_v14 = vrot.slane %v6606_v4, 4  ;;  %v6608_v4 = vld [vmem:[%s6857_s29 + $0xa0] sm:$0xff] }
 0x167   : > { %v1132_v20 = vadd.f32 %v1028_v63, %v7537_v42  ;;  %v5678_v35 = vpop.f32.mrb[43].mxu0  ;;  %5970 = vmatmul.mubr.msk.f32.gmra.mrb[148].mxu0 %vm439_vm2, %v1947_v47  ;;  %v2232_v42 = vsel %vm482_vm1, %v2229_v27, %v2231_v13 }
 0x168   : > { %5972 = vmatprep.mubr.msk.f32.mxu0 %vm6710_vm0, %v6709_v0  ;;  %v1316_v37 = vpop.f32.mrb[44].mxu1  ;;  %v1953_v60 = vsel %vm1922_vm7, %v1950_v51, %v1952_v14 }
 0x169   : > { %v7786_v8 = vadd.f32 %v1311_v30, %v1132_v20  ;;  %6038 = vmatmul.mubr.msk.f32.gmra.mrb[150].mxu1 %vm439_vm2, %v2230_v10  ;;  %v5746_v17 = vpop.f32.mrb[45].mxu1  ;;  %v2235_v20 = vrot.slane %v6607_v29, 5 }
 0x16a   : > { %v1033_v43 = vpop.f32.mrb[44].mxu0  ;;  %6040 = vmatprep.mubr.msk.f32.mxu1 %vm6710_vm0, %v6709_v0  ;;  %v1954_v17 = vrot.slane %v6607_v29, 4  ;;  %v6609_v29 = vld [vmem:[%s6857_s29 + $0xa8] sm:$0xff] }
 0x16b   : > { %v1133_v61 = vadd.f32 %v1033_v43, %v7548_v55  ;;  %v5681_v47 = vpop.f32.mrb[45].mxu0  ;;  %5973 = vmatmul.mubr.msk.f32.gmra.mrb[150].mxu0 %vm439_vm2, %v1949_v7  ;;  %v2234_v55 = vsel %vm482_vm1, %v2231_v13, %v2233_v50 }
 0x16c   : > { %5975 = vmatprep.mubr.msk.f32.mxu0 %vm6710_vm0, %v6709_v0  ;;  %v1321_v30 = vpop.f32.mrb[46].mxu1  ;;  %v1955_v51 = vsel %vm1922_vm7, %v1952_v14, %v1954_v17 }
 0x16d   : > { %v7798_v63 = vadd.f32 %v1316_v37, %v1133_v61  ;;  %6041 = vmatmul.mubr.msk.f32.gmra.mrb[152].mxu1 %vm439_vm2, %v2232_v42  ;;  %v5749_v27 = vpop.f32.mrb[47].mxu1  ;;  %v2237_v61 = vrot.slane %v6608_v4, 5 }
 0x16e   : > { %v1038_v10 = vpop.f32.mrb[46].mxu0  ;;  %6043 = vmatprep.mubr.msk.f32.mxu1 %vm6710_vm0, %v6709_v0  ;;  %v1956_v27 = vrot.slane %v6608_v4, 4  ;;  %v2241_v4 = vrot.slane %v7382_v16, 5 }
 0x16f   : > { %v1134_v35 = vadd.f32 %v1038_v10, %v7559_v11  ;;  %v5684_v7 = vpop.f32.mrb[47].mxu0  ;;  %5976 = vmatmul.mubr.msk.f32.gmra.mrb[152].mxu0 %vm439_vm2, %v1951_v44  ;;  %v2236_v11 = vsel %vm482_vm1, %v2233_v50, %v2235_v20 }
 0x170   : > { %5978 = vmatprep.mubr.msk.f32.mxu0 %vm6710_vm0, %v6709_v0  ;;  %v1326_v37 = vpop.f32.mrb[48].mxu1  ;;  %v1957_v14 = vsel %vm1922_vm7, %v1954_v17, %v1956_v27 }
 0x171   : > { %v7810_v43 = vadd.f32 %v1321_v30, %v1134_v35  ;;  %6044 = vmatmul.mubr.msk.f32.gmra.mrb[154].mxu1 %vm439_vm2, %v2234_v55  ;;  %v5752_v13 = vpop.f32.mrb[49].mxu1  ;;  %v2239_v35 = vrot.slane %v6609_v29, 5 }
 0x172   : > { %v1043_v42 = vpop.f32.mrb[48].mxu0  ;;  %6046 = vmatprep.mubr.msk.f32.mxu1 %vm6710_vm0, %v6709_v0  ;;  %v1958_v13 = vrot.slane %v6609_v29, 4 }
 0x173   : > { %v1135_v47 = vadd.f32 %v1043_v42, %v7570_v33  ;;  %v5687_v44 = vpop.f32.mrb[49].mxu0  ;;  %5979 = vmatmul.mubr.msk.f32.gmra.mrb[154].mxu0 %vm439_vm2, %v1953_v60  ;;  %v2238_v33 = vsel %vm482_vm1, %v2235_v20, %v2237_v61 }
 0x174   : > { %5981 = vmatprep.mubr.msk.f32.mxu0 %vm6710_vm0, %v6709_v0  ;;  %v1331_v30 = vpop.f32.mrb[50].mxu1  ;;  %v1959_v17 = vsel %vm1922_vm7, %v1956_v27, %v1958_v13 }
 0x175   : > { %v7822_v10 = vadd.f32 %v1326_v37, %v1135_v47  ;;  %6047 = vmatmul.mubr.msk.f32.gmra.mrb[156].mxu1 %vm439_vm2, %v2236_v11  ;;  %v5755_v50 = vpop.f32.mrb[51].mxu1 }
 0x176   : > { %v1048_v55 = vpop.f32.mrb[50].mxu0  ;;  %6049 = vmatprep.mubr.msk.f32.mxu1 %vm6710_vm0, %v6709_v0 }
 0x177   : > { %v1136_v7 = vadd.f32 %v1048_v55, %v7581_v38  ;;  %v5690_v60 = vpop.f32.mrb[51].mxu0  ;;  %5982 = vmatmul.mubr.msk.f32.gmra.mrb[156].mxu0 %vm439_vm2, %v1955_v51  ;;  %v2240_v38 = vsel %vm482_vm1, %v2237_v61, %v2239_v35  ;;  %v7851_v55 = vld [vmem:[%s6857_s29 + $0xb8] sm:$0xff] }
 0x178   : > { %5984 = vmatprep.mubr.msk.f32.mxu0 %vm6710_vm0, %v6709_v0  ;;  %v1336_v37 = vpop.f32.mrb[52].mxu1  ;;  %v2243_v29 = vrot.slane %v7851_v55, 5 }
 0x179   : > { %v7834_v42 = vadd.f32 %v1331_v30, %v1136_v7  ;;  %6050 = vmatmul.mubr.msk.f32.gmra.mrb[158].mxu1 %vm439_vm2, %v2238_v33  ;;  %v5758_v20 = vpop.f32.mrb[53].mxu1  ;;  %v1960_v30 = vrot.slane %v7382_v16, 4  ;;  %v2242_v33 = vsel %vm482_vm1, %v2239_v35, %v2241_v4 }
 0x17a   : > { %v1053_v11 = vpop.f32.mrb[52].mxu0  ;;  %6052 = vmatprep.mubr.msk.f32.mxu1 %vm6710_vm0, %v6709_v0 }
 0x17b   : > { %v1137_v47 = vadd.f32 %v1053_v11, %v7592_v6  ;;  %v5693_v44 = vpop.f32.mrb[53].mxu0  ;;  %5985 = vmatmul.mubr.msk.f32.gmra.mrb[158].mxu0 %vm439_vm2, %v1957_v14  ;;  %v1961_v60 = vsel %vm1922_vm7, %v1958_v13, %v1960_v30  ;;  %v7867_v11 = vld [vmem:[%s6857_s29 + $0xc0] sm:$0xff] }
 0x17c   : > { %5987 = vmatprep.mubr.msk.f32.mxu0 %vm6710_vm0, %v6709_v0  ;;  %v1341_v51 = vpop.f32.mrb[54].mxu1 }
 0x17d   : > { %v7847_v50 = vadd.f32 %v1336_v37, %v1137_v47  ;;  %6053 = vmatmul.mubr.msk.f32.gmra.mrb[160].mxu1 %vm439_vm2, %v2240_v38  ;;  %v5761_v61 = vpop.f32.mrb[55].mxu1  ;;  %v1962_v37 = vrot.slane %v7851_v55, 4  ;;  %v2245_v47 = vrot.slane %v7867_v11, 5 }
 0x17e   : > { %v1058_v6 = vpop.f32.mrb[54].mxu0  ;;  %6055 = vmatprep.mubr.msk.f32.mxu1 %vm6710_vm0, %v6709_v0  ;;  %v1964_v61 = vrot.slane %v7867_v11, 4 }
 0x17f   : > { %v1138_v27 = vadd.f32 %v1058_v6, %v7603_v5  ;;  %v5696_v7 = vpop.f32.mrb[55].mxu0  ;;  %5988 = vmatmul.mubr.msk.f32.gmra.mrb[160].mxu0 %vm439_vm2, %v1959_v17  ;;  %v2244_v5 = vsel %vm482_vm1, %v2241_v4, %v2243_v29  ;;  %v1963_v17 = vsel %vm1922_vm7, %v1960_v30, %v1962_v37 }
 0x180   : > { %5990 = vmatprep.mubr.msk.f32.mxu0 %vm6710_vm0, %v6709_v0  ;;  %v1346_v14 = vpop.f32.mrb[56].mxu1  ;;  %v1965_v30 = vsel %vm1922_vm7, %v1962_v37, %v1964_v61 }
 0x181   : > { %v7863_v20 = vadd.f32 %v1341_v51, %v1138_v27  ;;  %6056 = vmatmul.mubr.msk.f32.gmra.mrb[162].mxu1 %vm439_vm2, %v2242_v33  ;;  %v5764_v35 = vpop.f32.mrb[57].mxu1 }
 0x182   : > { %v1063_v38 = vpop.f32.mrb[56].mxu0  ;;  %6058 = vmatprep.mubr.msk.f32.mxu1 %vm6710_vm0, %v6709_v0 }
 0x183   : > { %v1139_v13 = vadd.f32 %v1063_v38, %v7614_v26  ;;  %v5699_v44 = vpop.f32.mrb[57].mxu0  ;;  %5991 = vmatmul.mubr.msk.f32.gmra.mrb[162].mxu0 %vm439_vm2, %v1961_v60  ;;  %v2246_v26 = vsel %vm482_vm1, %v2243_v29, %v2245_v47 }
 0x184   : > { %5993 = vmatprep.mubr.msk.f32.mxu0 %vm6710_vm0, %v6709_v0  ;;  %v1351_v51 = vpop.f32.mrb[58].mxu1 }
 0x185   : > { %v7879_v6 = vadd.f32 %v1346_v14, %v1139_v13  ;;  %6059 = vmatmul.mubr.msk.f32.gmra.mrb[164].mxu1 %vm439_vm2, %v2244_v5  ;;  %v5767_v4 = vpop.f32.mrb[59].mxu1 }
 0x186   : > { %v1068_v33 = vpop.f32.mrb[58].mxu0  ;;  %6061 = vmatprep.mubr.msk.f32.mxu1 %vm6710_vm0, %v6709_v0 }
 0x187   : > { %v1140_v27 = vadd.f32 %v1068_v33, %v7627_v54  ;;  %v5702_v7 = vpop.f32.mrb[59].mxu0  ;;  %5994 = vmatmul.mubr.msk.f32.gmra.mrb[164].mxu0 %vm439_vm2, %v1963_v17 }
 0x188   : > { %5996 = vmatprep.mubr.msk.f32.mxu0 %vm6710_vm0, %v6709_v0  ;;  %v1356_v60 = vpop.f32.mrb[60].mxu1 }
 0x189   : > { %v7890_v14 = vadd.f32 %v1351_v51, %v1140_v27  ;;  %6062 = vmatmul.mubr.msk.f32.gmra.mrb[166].mxu1 %vm439_vm2, %v2246_v26  ;;  %v5770_v35 = vpop.f32.mrb[61].mxu1 }
 0x18a   : > { %v1073_v38 = vpop.f32.mrb[60].mxu0  ;;  %6137 = vmatprep.mubr.msk.f32.mxu1 %vm6710_vm0, %v6709_v0 }
 0x18b   : > { %v1141_v54 = vadd.f32 %v1073_v38, %v7641_v59  ;;  %v5705_v29 = vpop.f32.mrb[61].mxu0  ;;  %5997 = vmatmul.mubr.msk.f32.gmra.mrb[166].mxu0 %vm439_vm2, %v1965_v30 }
 0x18c   : > { %6066 = vmatprep.mubr.msk.f32.mxu0 %vm6710_vm0, %v6709_v0  ;;  %v1361_v5 = vpop.f32.mrb[62].mxu1 }
 0x18d   : > { %v7899_v37 = vadd.f32 %v1356_v60, %v1141_v54  ;;  %v5773_v47 = vpop.f32.mrb[63].mxu1 }
 0x18e   : > { %v1078_v13 = vpop.f32.mrb[62].mxu0 }
 0x18f   : > { %v1142_v44 = vadd.f32 %v1078_v13, %v7656_v19  ;;  %v5708_v17 = vpop.f32.mrb[63].mxu0  ;;  %6067 = vmatmul.mubr.msk.f32.vlgmr.msra.gmra.mrb[168].mxu0 %vm439_vm2, %v7169_v21 }
 0x190   : > { %6069 = vmatprep.mubr.msk.f32.mxu0 %vm6710_vm0, %v6709_v0  ;;  %v1366_v59 = vpop.f32.mrb[64].mxu1 }
 0x191   : > { %v7906_v51 = vadd.f32 %v1361_v5, %v1142_v44  ;;  %v5776_v61 = vpop.f32.mrb[65].mxu1 }
 0x192   : > { %v1083_v4 = vpop.f32.mrb[64].mxu0 }
 0x193   : > { %v1143_v33 = vadd.f32 %v1083_v4, %v7669_v39  ;;  %v5711_v26 = vpop.f32.mrb[65].mxu0  ;;  %6070 = vmatmul.mubr.msk.f32.gmra.mrb[170].mxu0 %vm439_vm2, %v7182_v34 }
 0x194   : > { %6072 = vmatprep.mubr.msk.f32.mxu0 %vm6710_vm0, %v6709_v0  ;;  %v1371_v19 = vpop.f32.mrb[66].mxu1 }
 0x195   : > { %v7913_v27 = vadd.f32 %v1366_v59, %v1143_v33  ;;  %v5779_v21 = vpop.f32.mrb[67].mxu1 }
 0x196   : > { %v1088_v7 = vpop.f32.mrb[66].mxu0 }
 0x197   : > { %v1144_v30 = vadd.f32 %v1088_v7, %v7681_v57  ;;  %v5714_v60 = vpop.f32.mrb[67].mxu0  ;;  %6073 = vmatmul.mubr.msk.f32.gmra.mrb[172].mxu0 %vm439_vm2, %v7195_v40 }
 0x198   : > { %6075 = vmatprep.mubr.msk.f32.mxu0 %vm6710_vm0, %v6709_v0  ;;  %v1376_v39 = vpop.f32.mrb[68].mxu1 }
 0x199   : > { %v7920_v35 = vadd.f32 %v1371_v19, %v1144_v30  ;;  %v5782_v34 = vpop.f32.mrb[69].mxu1 }
 0x19a   : > { %v1093_v38 = vpop.f32.mrb[68].mxu0 }
 0x19b   : > { %v1145_v54 = vadd.f32 %v1093_v38, %v7693_v48  ;;  %v5717_v29 = vpop.f32.mrb[69].mxu0  ;;  %6076 = vmatmul.mubr.msk.f32.gmra.mrb[174].mxu0 %vm439_vm2, %v7208_v46 }
 0x19c   : > { %6078 = vmatprep.mubr.msk.f32.mxu0 %vm6710_vm0, %v6709_v0  ;;  %v1381_v57 = vpop.f32.mrb[70].mxu1 }
 0x19d   : > { %v7927_v5 = vadd.f32 %v1376_v39, %v1145_v54  ;;  %v5785_v40 = vpop.f32.mrb[71].mxu1 }
 0x19e   : > { %v1098_v47 = vpop.f32.mrb[70].mxu0 }
 0x19f   : > { %v1146_v13 = vadd.f32 %v1098_v47, %v7704_v3  ;;  %v5720_v44 = vpop.f32.mrb[71].mxu0  ;;  %6079 = vmatmul.mubr.msk.f32.gmra.mrb[176].mxu0 %vm439_vm2, %v7221_v52 }
 0x1a0   : > { %6081 = vmatprep.mubr.msk.f32.mxu0 %vm6710_vm0, %v6709_v0  ;;  %v1386_v48 = vpop.f32.mrb[72].mxu1 }
 0x1a1   : > { %v7934_v17 = vadd.f32 %v1381_v57, %v1146_v13  ;;  %v5788_v46 = vpop.f32.mrb[73].mxu1 }
 0x1a2   : > { %v1103_v59 = vpop.f32.mrb[72].mxu0 }
 0x1a3   : > { %v1147_v61 = vadd.f32 %v1103_v59, %v7715_v45  ;;  %v5723_v4 = vpop.f32.mrb[73].mxu0  ;;  %6082 = vmatmul.mubr.msk.f32.gmra.mrb[178].mxu0 %vm439_vm2, %v7234_v58 }
 0x1a4   : > { %6084 = vmatprep.mubr.msk.f32.mxu0 %vm6710_vm0, %v6709_v0  ;;  %v1391_v3 = vpop.f32.mrb[74].mxu1 }
 0x1a5   : > { %v7941_v33 = vadd.f32 %v1386_v48, %v1147_v61  ;;  %v5791_v52 = vpop.f32.mrb[75].mxu1 }
 0x1a6   : > { %v1108_v26 = vpop.f32.mrb[74].mxu0 }
 0x1a7   : > { %v1148_v19 = vadd.f32 %v1108_v26, %v7726_v18  ;;  %v5726_v21 = vpop.f32.mrb[75].mxu0  ;;  %6085 = vmatmul.mubr.msk.f32.gmra.mrb[180].mxu0 %vm439_vm2, %v7247_v1 }
 0x1a8   : > { %6087 = vmatprep.mubr.msk.f32.mxu0 %vm6710_vm0, %v6709_v0  ;;  %v1396_v45 = vpop.f32.mrb[76].mxu1 }
 0x1a9   : > { %v7948_v7 = vadd.f32 %v1391_v3, %v1148_v19  ;;  %v5794_v58 = vpop.f32.mrb[77].mxu1 }
 0x1aa   : > { %v1113_v30 = vpop.f32.mrb[76].mxu0 }
 0x1ab   : > { %v1149_v60 = vadd.f32 %v1113_v30, %v7737_v24  ;;  %v5729_v39 = vpop.f32.mrb[77].mxu0  ;;  %6088 = vmatmul.mubr.msk.f32.gmra.mrb[182].mxu0 %vm439_vm2, %v7260_v9 }
 0x1ac   : > { %6090 = vmatprep.mubr.msk.f32.mxu0 %vm6710_vm0, %v6709_v0  ;;  %v1401_v18 = vpop.f32.mrb[78].mxu1 }
 0x1ad   : > { %v7955_v34 = vadd.f32 %v1396_v45, %v1149_v60  ;;  %v5797_v1 = vpop.f32.mrb[79].mxu1 }
 0x1ae   : > { %v1118_v38 = vpop.f32.mrb[78].mxu0 }
 0x1af   : > { %v1150_v54 = vadd.f32 %v1118_v38, %v7748_v62  ;;  %v5732_v29 = vpop.f32.mrb[79].mxu0  ;;  %6091 = vmatmul.mubr.msk.f32.gmra.mrb[184].mxu0 %vm439_vm2, %v7273_v15 }
 0x1b0   : > { %6093 = vmatprep.mubr.msk.f32.mxu0 %vm6710_vm0, %v6709_v0  ;;  %v1406_v24 = vpop.f32.mrb[80].mxu1 }
 0x1b1   : > { %v7962_v57 = vadd.f32 %v1401_v18, %v1150_v54  ;;  %v5800_v9 = vpop.f32.mrb[81].mxu1 }
 0x1b2   : > { %v1123_v40 = vpop.f32.mrb[80].mxu0 }
 0x1b3   : > { %v1151_v47 = vadd.f32 %v1123_v40, %v7759_v36  ;;  %v5735_v13 = vpop.f32.mrb[81].mxu0  ;;  %6094 = vmatmul.mubr.msk.f32.gmra.mrb[186].mxu0 %vm439_vm2, %v7286_v22 }
 0x1b4   : > { %6096 = vmatprep.mubr.msk.f32.mxu0 %vm6710_vm0, %v6709_v0  ;;  %v1411_v62 = vpop.f32.mrb[82].mxu1 }
 0x1b5   : > { %v7969_v44 = vadd.f32 %v1406_v24, %v1151_v47  ;;  %v5803_v15 = vpop.f32.mrb[83].mxu1 }
 0x1b6   : > { %v1128_v48 = vpop.f32.mrb[82].mxu0 }
 0x1b7   : > { %v1152_v46 = vadd.f32 %v1128_v48, %v7770_v53  ;;  %v5738_v59 = vpop.f32.mrb[83].mxu0  ;;  %6097 = vmatmul.mubr.msk.f32.gmra.mrb[188].mxu0 %vm439_vm2, %v7299_v28 }
 0x1b8   : > { %6099 = vmatprep.mubr.msk.f32.mxu0 %vm6710_vm0, %v6709_v0  ;;  %v1793_v36 = vpop.f32.mrb[84].mxu1 }
 0x1b9   : > { %v7976_v61 = vadd.f32 %v1411_v62, %v1152_v46  ;;  %v5873_v22 = vpop.f32.mrb[85].mxu1 }
 0x1ba   : > { %v1593_v4 = vpop.f32.mrb[84].mxu0 }
 0x1bb   : > { %v1697_v3 = vadd.f32 %v1593_v4, %v7786_v8  ;;  %v5808_v52 = vpop.f32.mrb[85].mxu0  ;;  %6100 = vmatmul.mubr.msk.f32.gmra.mrb[190].mxu0 %vm439_vm2, %v7312_v32 }
 0x1bc   : > { %6102 = vmatprep.mubr.msk.f32.mxu0 %vm6710_vm0, %v6709_v0  ;;  %v1798_v53 = vpop.f32.mrb[86].mxu1 }
 0x1bd   : > { %v7983_v26 = vadd.f32 %v1793_v36, %v1697_v3  ;;  %v5876_v28 = vpop.f32.mrb[87].mxu1 }
 0x1be   : > { %v1598_v19 = vpop.f32.mrb[86].mxu0 }
 0x1bf   : > { %v1698_v21 = vadd.f32 %v1598_v19, %v7798_v63  ;;  %v5811_v45 = vpop.f32.mrb[87].mxu0  ;;  %6103 = vmatmul.mubr.msk.f32.gmra.mrb[192].mxu0 %vm439_vm2, %v7325_v41 }
 0x1c0   : > { %6105 = vmatprep.mubr.msk.f32.mxu0 %vm6710_vm0, %v6709_v0  ;;  %v1803_v8 = vpop.f32.mrb[88].mxu1 }
 0x1c1   : > { %v7990_v58 = vadd.f32 %v1798_v53, %v1698_v21  ;;  %v5879_v32 = vpop.f32.mrb[89].mxu1 }
 0x1c2   : > { %v1603_v30 = vpop.f32.mrb[88].mxu0 }
 0x1c3   : > { %v1699_v60 = vadd.f32 %v1603_v30, %v7810_v43  ;;  %v5814_v39 = vpop.f32.mrb[89].mxu0  ;;  %6106 = vmatmul.mubr.msk.f32.gmra.mrb[194].mxu0 %vm439_vm2, %v7338_v49 }
 0x1c4   : > { %6108 = vmatprep.mubr.msk.f32.mxu0 %vm6710_vm0, %v6709_v0  ;;  %v1808_v63 = vpop.f32.mrb[90].mxu1 }
 0x1c5   : > { %v7997_v18 = vadd.f32 %v1803_v8, %v1699_v60  ;;  %v5882_v41 = vpop.f32.mrb[91].mxu1 }
 0x1c6   : > { %v1608_v1 = vpop.f32.mrb[90].mxu0 }
 0x1c7   : > { %v1700_v38 = vadd.f32 %v1608_v1, %v7822_v10  ;;  %v5817_v54 = vpop.f32.mrb[91].mxu0  ;;  %6109 = vmatmul.mubr.msk.f32.gmra.mrb[196].mxu0 %vm439_vm2, %v7351_v56 }
 0x1c8   : > { %6111 = vmatprep.mubr.msk.f32.mxu0 %vm6710_vm0, %v6709_v0  ;;  %v1813_v43 = vpop.f32.mrb[92].mxu1 }
 0x1c9   : > { %v8004_v29 = vadd.f32 %v1808_v63, %v1700_v38  ;;  %v5885_v49 = vpop.f32.mrb[93].mxu1 }
 0x1ca   : > { %v1613_v24 = vpop.f32.mrb[92].mxu0 }
 0x1cb   : > { %v1701_v9 = vadd.f32 %v1613_v24, %v7834_v42  ;;  %v5820_v40 = vpop.f32.mrb[93].mxu0  ;;  %6112 = vmatmul.mubr.msk.f32.gmra.mrb[198].mxu0 %vm439_vm2, %v7364_v2 }
 0x1cc   : > { %6114 = vmatprep.mubr.msk.f32.mxu0 %vm6710_vm0, %v6709_v0  ;;  %v1818_v10 = vpop.f32.mrb[94].mxu1 }
 0x1cd   : > { %v8011_v47 = vadd.f32 %v1813_v43, %v1701_v9  ;;  %v5888_v56 = vpop.f32.mrb[95].mxu1 }
 0x1ce   : > { %v1618_v13 = vpop.f32.mrb[94].mxu0 }
 0x1cf   : > { %v1702_v62 = vadd.f32 %v1618_v13, %v7847_v50  ;;  %v5823_v15 = vpop.f32.mrb[95].mxu0  ;;  %6115 = vmatmul.mubr.msk.f32.gmra.mrb[200].mxu0 %vm439_vm2, %v7377_v12  ;;  %v2485_v12 = vrot.slane %v7851_v55, 6  ;;  %v2487_v55 = vrot.slane %v7867_v11, 6 }
 0x1d0   : > { %6117 = vmatprep.mubr.msk.f32.mxu0 %vm6710_vm0, %v6709_v0  ;;  %v1823_v42 = vpop.f32.mrb[96].mxu1 }
 0x1d1   : > { %v8018_v48 = vadd.f32 %v1818_v10, %v1702_v62  ;;  %v5891_v2 = vpop.f32.mrb[97].mxu1 }
 0x1d2   : > { %v1623_v46 = vpop.f32.mrb[96].mxu0 }
 0x1d3   : > { %v1703_v59 = vadd.f32 %v1623_v46, %v7863_v20  ;;  %v5826_v36 = vpop.f32.mrb[97].mxu0  ;;  %6118 = vmatmul.mubr.msk.f32.gmra.mrb[202].mxu0 %vm439_vm2, %v7393_v23  ;;  %v2486_v23 = vsel %vm1156_vm5, %v1198_v25, %v2485_v12 }
 0x1d4   : > { %6120 = vmatprep.mubr.msk.f32.mxu0 %vm6710_vm0, %v6709_v0  ;;  %v1828_v50 = vpop.f32.mrb[98].mxu1 }
 0x1d5   : > { %v8026_v22 = vadd.f32 %v1823_v42, %v1703_v59  ;;  %v5894_v4 = vpop.f32.mrb[99].mxu1 }
 0x1d6   : > { %v1628_v3 = vpop.f32.mrb[98].mxu0 }
 0x1d7   : > { %v1704_v52 = vadd.f32 %v1628_v3, %v7879_v6  ;;  %v5829_v53 = vpop.f32.mrb[99].mxu0  ;;  %6121 = vmatmul.mubr.msk.f32.gmra.mrb[204].mxu0 %vm439_vm2, %v7408_v31  ;;  %v2488_v31 = vsel %vm1156_vm5, %v2485_v12, %v2487_v55 }
 0x1d8   : > { %6123 = vmatprep.mubr.msk.f32.mxu0 %vm6710_vm0, %v6709_v0  ;;  %v1833_v20 = vpop.f32.mrb[100].mxu1 }
 0x1d9   : > { %v8037_v28 = vadd.f32 %v1828_v50, %v1704_v52  ;;  %v5897_v19 = vpop.f32.mrb[101].mxu1 }
 0x1da   : > { %v1633_v21 = vpop.f32.mrb[100].mxu0 }
 0x1db   : > { %v1705_v6 = vadd.f32 %v1633_v21, %v7890_v14  ;;  %v5832_v45 = vpop.f32.mrb[101].mxu0  ;;  %6124 = vmatmul.mubr.msk.f32.gmra.mrb[206].mxu0 %vm439_vm2, %v2486_v23 }
 0x1dc   : > { %6126 = vmatprep.mubr.msk.f32.mxu0 %vm6710_vm0, %v6709_v0  ;;  %v1838_v16 = vpop.f32.mrb[102].mxu1 }
 0x1dd   : > { %v8044_v8 = vadd.f32 %v1833_v20, %v1705_v6  ;;  %v5900_v25 = vpop.f32.mrb[103].mxu1 }
 0x1de   : > { %v1638_v32 = vpop.f32.mrb[102].mxu0 }
 0x1df   : > { %v1706_v11 = vadd.f32 %v1638_v32, %v7899_v37  ;;  %v5835_v30 = vpop.f32.mrb[103].mxu0  ;;  %6127 = vmatmul.mubr.msk.f32.gmra.mrb[208].mxu0 %vm439_vm2, %v2488_v31  ;;  %vm2859_vm2 = vcmask 261127  }
 0x1e0   : > { %v1843_v60 = vpop.f32.mrb[104].mxu1  ;;  %6256 = vmatprep.mubr.msk.f32.mxu0 %vm6710_vm0, %v6709_v0 }
 0x1e1   : > { %v8050_v14 = vadd.f32 %v1838_v16, %v1706_v11  ;;  %v5903_v39 = vpop.f32.mrb[105].mxu1 }
 0x1e2   : > { %v1643_v63 = vpop.f32.mrb[104].mxu0 }
 0x1e3   : > { %v1707_v41 = vadd.f32 %v1643_v63, %v7906_v51  ;;  %v5838_v1 = vpop.f32.mrb[105].mxu0 }
 0x1e4   : > { %v1848_v38 = vpop.f32.mrb[106].mxu1 }
 0x1e5   : > { %v8053_v54 = vadd.f32 %v1843_v60, %v1707_v41  ;;  %v5906_v43 = vpop.f32.mrb[107].mxu1 }
 0x1e6   : > { %v1648_v49 = vpop.f32.mrb[106].mxu0  ;;  %v2920_v43 = vld [vmem:[#allocation3 + $0x20] sm:$0xff] }
 0x1e7   : > { %v1708_v37 = vadd.f32 %v1648_v49, %v7913_v27  ;;  %v5841_v24 = vpop.f32.mrb[107].mxu0 }
 0x1e8   : > { %v1853_v9 = vpop.f32.mrb[108].mxu1  ;;  %v6711_v24 = vmov 0.0|0.0  }
 0x1e9   : > { %v8056_v40 = vadd.f32 %v1848_v38, %v1708_v37  ;;  %v5909_v10 = vpop.f32.mrb[109].mxu1  ;;  %6282 = vmatprep.subr.bf16.mxu1 %v6711_v24  ;;  %6324 = vmatprep.subr.bf16.mxu0 %v6711_v24 }
 0x1ea   : > { %v1653_v56 = vpop.f32.mrb[108].mxu0 }
 0x1eb   : > { %v1709_v13 = vadd.f32 %v1653_v56, %v7920_v35  ;;  %v5844_v62 = vpop.f32.mrb[109].mxu0 }
 0x1ec   : > { %v1858_v15 = vpop.f32.mrb[110].mxu1 }
 0x1ed   : > { %v8059_v42 = vadd.f32 %v1853_v9, %v1709_v13  ;;  %v5912_v51 = vpop.f32.mrb[111].mxu1 }
 0x1ee   : > { %v1658_v2 = vpop.f32.mrb[110].mxu0 }
 0x1ef   : > { %v1710_v46 = vadd.f32 %v1658_v2, %v7927_v5  ;;  %v5847_v59 = vpop.f32.mrb[111].mxu0 }
 0x1f0   : > { %v1863_v36 = vpop.f32.mrb[112].mxu1 }
 0x1f1   : > { %v8062_v50 = vadd.f32 %v1858_v15, %v1710_v46  ;;  %v5915_v27 = vpop.f32.mrb[113].mxu1 }
 0x1f2   : > { %v1663_v12 = vpop.f32.mrb[112].mxu0 }
 0x1f3   : > { %v1711_v4 = vadd.f32 %v1663_v12, %v7934_v17  ;;  %v5850_v3 = vpop.f32.mrb[113].mxu0 }
 0x1f4   : > { %v1868_v52 = vpop.f32.mrb[114].mxu1 }
 0x1f5   : > { %v8065_v53 = vadd.f32 %v1863_v36, %v1711_v4  ;;  %v5918_v35 = vpop.f32.mrb[115].mxu1 }
 0x1f6   : > { %v1668_v23 = vpop.f32.mrb[114].mxu0 }
 0x1f7   : > { %v1712_v20 = vadd.f32 %v1668_v23, %v7941_v33  ;;  %v5853_v55 = vpop.f32.mrb[115].mxu0 }
 0x1f8   : > { %v1873_v19 = vpop.f32.mrb[116].mxu1 }
 0x1f9   : > { %v8078_v5 = vadd.f32 %v1868_v52, %v1712_v20  ;;  %v5921_v17 = vpop.f32.mrb[117].mxu1 }
 0x1fa   : > { %v1673_v33 = vpop.f32.mrb[116].mxu0 }
 0x1fb   : > { %v1713_v21 = vadd.f32 %v1673_v33, %v7948_v7  ;;  %v5856_v6 = vpop.f32.mrb[117].mxu0  ;;  %v2921_v7 = vld [vmem:[#allocation3 + $0x28] sm:$0xff] }
 0x1fc   : > { %v1878_v45 = vpop.f32.mrb[118].mxu1  ;;  %v6283_v9 = vpack.c.bf16 %v2921_v7, %v2920_v43  ;;  %v2922_v43 = vld [vmem:[#allocation3 + $0x30] sm:$0xff]  ;;  %v2923_v7 = vld [vmem:[#allocation3 + $0x38] sm:$0xff] }
 0x1fd   : > { %v8081_v31 = vadd.f32 %v1873_v19, %v1713_v21  ;;  %v5924_v16 = vpop.f32.mrb[119].mxu1 }
 0x1fe   : > { %v1678_v25 = vpop.f32.mrb[118].mxu0  ;;  %6284 = vmatpush3.bf16.msra.mxu1 %v6283_v9  ;;  %v6286_v9 = vpack.c.bf16 %v2923_v7, %v2922_v43 }
 0x1ff   : > { %v1714_v32 = vadd.f32 %v1678_v25, %v7955_v34  ;;  %v5859_v11 = vpop.f32.mrb[119].mxu0  ;;  %6285 = vmatprep.subr.bf16.mxu1 %v6711_v24 }
 0x200   : > { %v1883_v30 = vpop.f32.mrb[120].mxu1 }
 0x201   : > { %v8084_v60 = vadd.f32 %v1878_v45, %v1714_v32  ;;  %v5927_v39 = vpop.f32.mrb[121].mxu1 }
 0x202   : > { %v1683_v63 = vpop.f32.mrb[120].mxu0  ;;  %6287 = vmatpush3.bf16.msra.mxu1 %v6286_v9 }
 0x203   : > { %v1715_v41 = vadd.f32 %v1683_v63, %v7962_v57  ;;  %v5862_v1 = vpop.f32.mrb[121].mxu0  ;;  %6288 = vmatprep.subr.bf16.mxu1 %v6711_v24 }
 0x204   : > { %v1888_v38 = vpop.f32.mrb[122].mxu1 }
 0x205   : > { %v8087_v49 = vadd.f32 %v1883_v30, %v1715_v41  ;;  %v5930_v37 = vpop.f32.mrb[123].mxu1 }
 0x206   : > { %v1688_v34 = vpop.f32.mrb[122].mxu0 }
 0x207   : > { %v1716_v10 = vadd.f32 %v1688_v34, %v7969_v44  ;;  %v5865_v56 = vpop.f32.mrb[123].mxu0 }
 0x208   : > { %v1893_v13 = vpop.f32.mrb[124].mxu1 }
 0x209   : > { %v8093_v57 = vadd.f32 %v1888_v38, %v1716_v10  ;;  %v5933_v62 = vpop.f32.mrb[125].mxu1 }
 0x20a   : > { %v1693_v15 = vpop.f32.mrb[124].mxu0 }
 0x20b   : > { %v1717_v51 = vadd.f32 %v1693_v15, %v7976_v61  ;;  %v5868_v2 = vpop.f32.mrb[125].mxu0 }
 0x20c   : > { %v2358_v46 = vpop.f32.mrb[126].mxu1 }
 0x20d   : > { %v8096_v59 = vadd.f32 %v1893_v13, %v1717_v51  ;;  %v6003_v36 = vpop.f32.mrb[127].mxu1 }
 0x20e   : > { %v2077_v27 = vpop.f32.mrb[126].mxu0 }
 0x20f   : > { %v2181_v12 = vadd.f32 %v2077_v27, %v7983_v26  ;;  %v5938_v44 = vpop.f32.mrb[127].mxu0 }
 0x210   : > { %v2363_v4 = vpop.f32.mrb[128].mxu1 }
 0x211   : > { %v8099_v3 = vadd.f32 %v2358_v46, %v2181_v12  ;;  %v6006_v52 = vpop.f32.mrb[129].mxu1 }
 0x212   : > { %v2082_v35 = vpop.f32.mrb[128].mxu0 }
 0x213   : > { %v2182_v23 = vadd.f32 %v2082_v35, %v7990_v58  ;;  %v5941_v20 = vpop.f32.mrb[129].mxu0 }
 0x214   : > { %v2368_v55 = vpop.f32.mrb[130].mxu1 }
 0x215   : > { %v8102_v19 = vadd.f32 %v2363_v4, %v2182_v23  ;;  %v6009_v61 = vpop.f32.mrb[131].mxu1 }
 0x216   : > { %v2087_v17 = vpop.f32.mrb[130].mxu0  ;;  %v3603_v61 = vld [vmem:[#allocation3 + $0xe0] sm:$0xff] }
 0x217   : > { %v2183_v33 = vadd.f32 %v2087_v17, %v7997_v18  ;;  %v5944_v21 = vpop.f32.mrb[131].mxu0  ;;  %v3604_v17 = vld [vmem:[#allocation3 + $0xe8] sm:$0xff] }
 0x218   : > { %v2373_v6 = vpop.f32.mrb[132].mxu1  ;;  %v6325_v21 = vpack.c.bf16 %v3604_v17, %v3603_v61 }
 0x219   : > { %v8105_v45 = vadd.f32 %v2368_v55, %v2183_v33  ;;  %v6012_v26 = vpop.f32.mrb[133].mxu1 }
 0x21a   : > { %v2092_v16 = vpop.f32.mrb[132].mxu0  ;;  %6326 = vmatpush3.bf16.msra.mxu0 %v6325_v21 }
 0x21b   : > { %v2184_v25 = vadd.f32 %v2092_v16, %v8004_v29  ;;  %v5947_v32 = vpop.f32.mrb[133].mxu0  ;;  %6327 = vmatprep.subr.bf16.mxu0 %v6711_v24 }
 0x21c   : > { %v2378_v11 = vpop.f32.mrb[134].mxu1  ;;  %v3606_v32 = vld [vmem:[#allocation3 + $0xf8] sm:$0xff] }
 0x21d   : > { %v8108_v30 = vadd.f32 %v2373_v6, %v2184_v25  ;;  %v6015_v58 = vpop.f32.mrb[135].mxu1 }
 0x21e   : > { %v2097_v39 = vpop.f32.mrb[134].mxu0 }
 0x21f   : > { %v2185_v63 = vadd.f32 %v2097_v39, %v8011_v47  ;;  %v5950_v41 = vpop.f32.mrb[135].mxu0 }
 0x220   : > { %v2383_v1 = vpop.f32.mrb[136].mxu1 }
 0x221   : > { %v8111_v38 = vadd.f32 %v2378_v11, %v2185_v63  ;;  %v6018_v18 = vpop.f32.mrb[137].mxu1 }
 0x222   : > { %v2102_v37 = vpop.f32.mrb[136].mxu0 }
 0x223   : > { %v2186_v34 = vadd.f32 %v2102_v37, %v8018_v48  ;;  %v5953_v29 = vpop.f32.mrb[137].mxu0 }
 0x224   : > { %v2388_v10 = vpop.f32.mrb[138].mxu1 }
 0x225   : > { %v8114_v56 = vadd.f32 %v2383_v1, %v2186_v34  ;;  %v6021_v13 = vpop.f32.mrb[139].mxu1 }
 0x226   : > { %v2107_v47 = vpop.f32.mrb[138].mxu0 }
 0x227   : > { %v2187_v62 = vadd.f32 %v2107_v47, %v8026_v22  ;;  %v5956_v15 = vpop.f32.mrb[139].mxu0 }
 0x228   : > { %v2393_v51 = vpop.f32.mrb[140].mxu1 }
 0x229   : > { %v8118_v2 = vadd.f32 %v2388_v10, %v2187_v62  ;;  %v6024_v46 = vpop.f32.mrb[141].mxu1 }
 0x22a   : > { %v2112_v36 = vpop.f32.mrb[140].mxu0 }
 0x22b   : > { %v2188_v27 = vadd.f32 %v2112_v36, %v8037_v28  ;;  %v5959_v48 = vpop.f32.mrb[141].mxu0 }
 0x22c   : > { %v2398_v12 = vpop.f32.mrb[142].mxu1 }
 0x22d   : > { %v8121_v44 = vadd.f32 %v2393_v51, %v2188_v27  ;;  %v6027_v4 = vpop.f32.mrb[143].mxu1 }
 0x22e   : > { %v2117_v52 = vpop.f32.mrb[142].mxu0 }
 0x22f   : > { %v2189_v35 = vadd.f32 %v2117_v52, %v8044_v8  ;;  %v5962_v23 = vpop.f32.mrb[143].mxu0  ;;  %v3605_v8 = vld [vmem:[#allocation3 + $0xf0] sm:$0xff] }
 0x230   : > { %v2403_v20 = vpop.f32.mrb[144].mxu1  ;;  %v6328_v58 = vpack.c.bf16 %v3606_v32, %v3605_v8 }
 0x231   : > { %v8124_v55 = vadd.f32 %v2398_v12, %v2189_v35  ;;  %v6030_v22 = vpop.f32.mrb[145].mxu1 }
 0x232   : > { %v2122_v33 = vpop.f32.mrb[144].mxu0  ;;  %6329 = vmatpush3.bf16.msra.mxu0 %v6328_v58 }
 0x233   : > { %v2190_v6 = vadd.f32 %v2122_v33, %v8050_v14  ;;  %v5965_v28 = vpop.f32.mrb[145].mxu0 }
 0x234   : > { %v2408_v26 = vpop.f32.mrb[146].mxu1 }
 0x235   : > { %v8127_v16 = vadd.f32 %v2403_v20, %v2190_v6  ;;  %v6033_v25 = vpop.f32.mrb[147].mxu1 }
 0x236   : > { %v2127_v11 = vpop.f32.mrb[146].mxu0 }
 0x237   : > { %v2191_v39 = vadd.f32 %v2127_v11, %v8053_v54  ;;  %v5968_v63 = vpop.f32.mrb[147].mxu0 }
 0x238   : > { %v2413_v41 = vpop.f32.mrb[148].mxu1 }
 0x239   : > { %v8131_v1 = vadd.f32 %v2408_v26, %v2191_v39  ;;  %v6036_v14 = vpop.f32.mrb[149].mxu1 }
 0x23a   : > { %v2132_v18 = vpop.f32.mrb[148].mxu0 }
 0x23b   : > { %v2192_v43 = vadd.f32 %v2132_v18, %v8056_v40  ;;  %v5971_v7 = vpop.f32.mrb[149].mxu0 }
 0x23c   : > { %v2418_v37 = vpop.f32.mrb[150].mxu1 }
 0x23d   : > { %v8134_v9 = vadd.f32 %v2413_v41, %v2192_v43  ;;  %v6039_v34 = vpop.f32.mrb[151].mxu1 }
 0x23e   : > { %v2137_v29 = vpop.f32.mrb[150].mxu0 }
 0x23f   : > { %v2193_v10 = vadd.f32 %v2137_v29, %v8059_v42  ;;  %v5974_v13 = vpop.f32.mrb[151].mxu0 }
 0x240   : > { %v2423_v47 = vpop.f32.mrb[152].mxu1 }
 0x241   : > { %v8137_v54 = vadd.f32 %v2418_v37, %v2193_v10  ;;  %v6042_v62 = vpop.f32.mrb[153].mxu1 }
 0x242   : > { %v2142_v15 = vpop.f32.mrb[152].mxu0 }
 0x243   : > { %v2194_v51 = vadd.f32 %v2142_v15, %v8062_v50  ;;  %v5977_v46 = vpop.f32.mrb[153].mxu0 }
 0x244   : > { %v2428_v36 = vpop.f32.mrb[154].mxu1 }
 0x245   : > { %v8140_v27 = vadd.f32 %v2423_v47, %v2194_v51  ;;  %v6045_v40 = vpop.f32.mrb[155].mxu1 }
 0x246   : > { %v2147_v48 = vpop.f32.mrb[154].mxu0 }
 0x247   : > { %v2195_v12 = vadd.f32 %v2147_v48, %v8065_v53  ;;  %v5980_v4 = vpop.f32.mrb[155].mxu0 }
 0x248   : > { %v2433_v52 = vpop.f32.mrb[156].mxu1 }
 0x249   : > { %v8143_v35 = vadd.f32 %v2428_v36, %v2195_v12  ;;  %v6048_v42 = vpop.f32.mrb[157].mxu1 }
 0x24a   : > { %v2152_v23 = vpop.f32.mrb[156].mxu0 }
 0x24b   : > { %v2196_v20 = vadd.f32 %v2152_v23, %v8078_v5  ;;  %v5983_v22 = vpop.f32.mrb[157].mxu0 }
 0x24c   : > { %v2438_v61 = vpop.f32.mrb[158].mxu1 }
 0x24d   : > { %v8146_v17 = vadd.f32 %v2433_v52, %v2196_v20  ;;  %v6051_v50 = vpop.f32.mrb[159].mxu1 }
 0x24e   : > { %v2157_v33 = vpop.f32.mrb[158].mxu0 }
 0x24f   : > { %v2197_v21 = vadd.f32 %v2157_v33, %v8081_v31  ;;  %v5986_v6 = vpop.f32.mrb[159].mxu0 }
 0x250   : > { %v2443_v28 = vpop.f32.mrb[160].mxu1 }
 0x251   : > { %v8149_v26 = vadd.f32 %v2438_v61, %v2197_v21  ;;  %v6054_v53 = vpop.f32.mrb[161].mxu1 }
 0x252   : > { %v2162_v25 = vpop.f32.mrb[160].mxu0 }
 0x253   : > { %v2198_v8 = vadd.f32 %v2162_v25, %v8084_v60  ;;  %v5989_v32 = vpop.f32.mrb[161].mxu0 }
 0x254   : > { %v2448_v11 = vpop.f32.mrb[162].mxu1 }
 0x255   : > { %v8152_v58 = vadd.f32 %v2443_v28, %v2198_v8  ;;  %v6057_v5 = vpop.f32.mrb[163].mxu1 }
 0x256   : > { %v2167_v39 = vpop.f32.mrb[162].mxu0 }
 0x257   : > { %v2199_v63 = vadd.f32 %v2167_v39, %v8087_v49  ;;  %v5992_v41 = vpop.f32.mrb[163].mxu0 }
 0x258   : > { %v2453_v14 = vpop.f32.mrb[164].mxu1 }
 0x259   : > { %v8155_v18 = vadd.f32 %v2448_v11, %v2199_v63  ;;  %v6060_v31 = vpop.f32.mrb[165].mxu1 }
 0x25a   : > { %v2172_v43 = vpop.f32.mrb[164].mxu0 }
 0x25b   : > { %v2200_v7 = vadd.f32 %v2172_v43, %v8093_v57  ;;  %v5995_v37 = vpop.f32.mrb[165].mxu0  ;;  %v8168_v57 = vld [vmem:[%s9069_s2] ss:$0 sm:$0xff] }
 0x25c   : > { %v2458_v34 = vpop.f32.mrb[166].mxu1 }
 0x25d   : > { %v8158_v29 = vadd.f32 %v2453_v14, %v2200_v7  ;;  %v6063_v60 = vpop.f32.mrb[167].mxu1 }
 0x25e   : > { %v2177_v10 = vpop.f32.mrb[166].mxu0 }
 0x25f   : > { %v2201_v13 = vadd.f32 %v2177_v10, %v8096_v59  ;;  %v5998_v47 = vpop.f32.mrb[167].mxu0 }
 0x261   : > { %v8161_v62 = vadd.f32 %v2458_v34, %v2201_v13 }
 0x262   : > { %v2562_v49 = vpop.f32.mrb[168].mxu0 }
 0x263   : > { %v2666_v15 = vadd.f32 %v2562_v49, %v8099_v3  ;;  %v6068_v51 = vpop.f32.mrb[169].mxu0 }
 0x265   : > { %v2694_v3 = vadd.f32 %v8168_v57, %v2666_v15 }
 0x266   : > { %v2567_v46 = vpop.f32.mrb[170].mxu0 }
 0x267   : > { %v2667_v36 = vadd.f32 %v2567_v46, %v8102_v19  ;;  %v6071_v40 = vpop.f32.mrb[171].mxu0  ;;  %v2715_v21 = vmax.f32 %v2694_v3, 0.0 }
 0x269   : > { %v2695_v48 = vadd.f32 %v8168_v57, %v2667_v36 }
 0x26a   : > { %v2572_v12 = vpop.f32.mrb[172].mxu0 }
 0x26b   : > { %v2668_v59 = vadd.f32 %v2572_v12, %v8105_v45  ;;  %v6074_v4 = vpop.f32.mrb[173].mxu0  ;;  %v2716_v52 = vmax.f32 %v2695_v48, 0.0 }
 0x26d   : > { %v2696_v42 = vadd.f32 %v8168_v57, %v2668_v59  ;;  %v2745_v61 = vrot.slane %v2716_v52, 6 }
 0x26e   : > { %v2577_v23 = vpop.f32.mrb[174].mxu0 }
 0x26f   : > { %v2717_v20 = vmax.f32 %v2696_v42, 0.0  ;;  %v2669_v19 = vadd.f32 %v2577_v23, %v8108_v30  ;;  %v6077_v22 = vpop.f32.mrb[175].mxu0 }
 0x271   : > { %v2746_v50 = vrot.slane %v2717_v20, 6  ;;  %v2697_v33 = vadd.f32 %v8168_v57, %v2669_v19 }
 0x272   : > { %v2582_v6 = vpop.f32.mrb[176].mxu0 }
 0x273   : > { %v2747_v28 = vsel %vm1156_vm5, %v2745_v61, %v2746_v50  ;;  %v2718_v45 = vmax.f32 %v2697_v33, 0.0  ;;  %v2670_v53 = vadd.f32 %v2582_v6, %v8111_v38  ;;  %v6080_v25 = vpop.f32.mrb[177].mxu0 }
 0x274   : > { %v2752_v8 = vmax.f32 %v2715_v21, %v2747_v28 }
 0x275   : > { %v2748_v32 = vrot.slane %v2718_v45, 6  ;;  %v2698_v11 = vadd.f32 %v8168_v57, %v2670_v53  ;;  %v2755_v31 = vrot.slane %v2718_v45, 4 }
 0x276   : > { %v2587_v5 = vpop.f32.mrb[178].mxu0 }
 0x277   : > { %v2719_v39 = vmax.f32 %v2698_v11, 0.0  ;;  %v2749_v30 = vsel %vm1156_vm5, %v2746_v50, %v2748_v32  ;;  %v2671_v63 = vadd.f32 %v2587_v5, %v8114_v56  ;;  %v6083_v41 = vpop.f32.mrb[179].mxu0 }
 0x278   : > { %v2753_v14 = vmax.f32 %v2716_v52, %v2749_v30 }
 0x279   : > { %v2756_v43 = vrot.slane %v2719_v39, 4  ;;  %v2699_v12 = vadd.f32 %v8168_v57, %v2671_v63 }
 0x27a   : > { %v2592_v7 = vpop.f32.mrb[180].mxu0 }
 0x27b   : > { %v2757_v37 = vsel %vm1922_vm7, %v2755_v31, %v2756_v43  ;;  %v2761_v34 = vmax.f32 %v2753_v14, %v2756_v43  ;;  %v2672_v38 = vadd.f32 %v2592_v7, %v8118_v2  ;;  %v6086_v60 = vpop.f32.mrb[181].mxu0  ;;  %v2720_v23 = vmax.f32 %v2699_v12, 0.0 }
 0x27c   : > { %v2760_v10 = vmax.f32 %v2752_v8, %v2757_v37 }
 0x27d   : > { %v2779_v13 = vrot.slane %v2761_v34, 1  ;;  %v2774_v15 = vrot.slane %v2761_v34, 2  ;;  %v2700_v22 = vadd.f32 %v8168_v57, %v2672_v38 }
 0x27e   : > { %v2763_v47 = vrot.slane %v2760_v10, 1  ;;  %v2597_v49 = vpop.f32.mrb[182].mxu0  ;;  %v2766_v40 = vrot.slane %v2760_v10, 2 }
 0x27f   : > { %v2781_v51 = vmax.f32 %v2761_v34, %v2779_v13  ;;  %v2673_v56 = vadd.f32 %v2597_v49, %v8121_v44  ;;  %v6089_v46 = vpop.f32.mrb[183].mxu0  ;;  %v2721_v45 = vmax.f32 %v2700_v22, 0.0 }
 0x280   : > { %v2765_v36 = vmax.f32 %v2760_v10, %v2763_v47 }
 0x281   : > { %v2782_v48 = vmax.f32 %v2781_v51, %v2774_v15  ;;  %v2701_v2 = vadd.f32 %v8168_v57, %v2673_v56 }
 0x282   : > { %v2768_v59 = vmax.f32 %v2765_v36, %v2766_v40  ;;  %v2776_v4 = vmax.f32 %v2765_v36, %v2774_v15  ;;  %v2602_v52 = vpop.f32.mrb[184].mxu0 }
 0x283   : > { %2784 = vst.msk [vmem:[#allocation2 + $0x9] sm:$0x2] %vm2783_vm11, %v2782_v48  ;;  %v2722_v42 = vmax.f32 %v2701_v2, 0.0  ;;  %v2674_v3 = vadd.f32 %v2602_v52, %v8124_v55  ;;  %v6092_v44 = vpop.f32.mrb[185].mxu0 }
 0x284   : > { %2770 = vst.msk [vmem:[#allocation2 + $0x7] sm:$0x1] %vm2769_vm9, %v2768_v59 }
 0x285   : > { %2772 = vst.msk [vmem:[#allocation2 + $0x5] sm:$0x8] %vm2771_vm10, %v2768_v59  ;;  %v2787_v20 = vrot.slane %v2722_v42, 6  ;;  %v2702_v19 = vadd.f32 %v8168_v57, %v2674_v3 }
 0x286   : > { %2778 = vst.msk [vmem:[#allocation2 + $0x3] sm:$0x40] %vm2777_vm12, %v2776_v4  ;;  %v2607_v61 = vpop.f32.mrb[186].mxu0 }
 0x287   : > { %v2792_v50 = vmax.f32 %v2720_v23, %v2787_v20  ;;  %v2723_v33 = vmax.f32 %v2702_v19, 0.0  ;;  %v2675_v21 = vadd.f32 %v2607_v61, %v8127_v16  ;;  %v6095_v6 = vpop.f32.mrb[187].mxu0 }
 0x289   : > { %v2788_v55 = vrot.slane %v2723_v33, 6  ;;  %v2703_v28 = vadd.f32 %v8168_v57, %v2675_v21  ;;  %v2796_v39 = vrot.slane %v2723_v33, 4 }
 0x28a   : > { %v2612_v53 = vpop.f32.mrb[188].mxu0 }
 0x28b   : > { %v2789_v25 = vsel %vm1156_vm5, %v2787_v20, %v2788_v55  ;;  %v2724_v8 = vmax.f32 %v2703_v28, 0.0  ;;  %v2676_v32 = vadd.f32 %v2612_v53, %v8131_v1  ;;  %v6098_v11 = vpop.f32.mrb[189].mxu0  ;;  %v8215_v28 = vld [vmem:[#allocation2] sm:$0xff]  ;;  %v2916_v53 = vld [vmem:[#allocation3 + $0x8] sm:$0xff] }
 0x28c   : > { %v2793_v5 = vmax.f32 %v2721_v45, %v2789_v25  ;;  %v2915_v45 = vld [vmem:[#allocation3] sm:$0xff] }
 0x28d   : > { %v2797_v30 = vrot.slane %v2724_v8, 4  ;;  %v2704_v63 = vadd.f32 %v8168_v57, %v2676_v32 }
 0x28e   : > { %v2617_v41 = vpop.f32.mrb[190].mxu0 }
 0x28f   : > { %v2798_v16 = vsel %vm1922_vm7, %v2796_v39, %v2797_v30  ;;  %v2725_v14 = vmax.f32 %v2704_v63, 0.0  ;;  %v2677_v31 = vadd.f32 %v2617_v41, %v8134_v9  ;;  %v6101_v43 = vpop.f32.mrb[191].mxu0  ;;  %v6289_v63 = vpack.c.bf16 %v2916_v53, %v2915_v45 }
 0x290   : > { %v2803_v7 = vmax.f32 %v2792_v50, %v2798_v16 }
 0x291   : > { %v2799_v37 = vrot.slane %v2725_v14, 4  ;;  %v2705_v4 = vadd.f32 %v8168_v57, %v2677_v31  ;;  %v2918_v31 = vld [vmem:[#allocation3 + $0x18] sm:$0xff] }
 0x292   : > { %v2806_v34 = vrot.slane %v2803_v7, 1  ;;  %v2622_v38 = vpop.f32.mrb[192].mxu0  ;;  %v2809_v47 = vrot.slane %v2803_v7, 2 }
 0x293   : > { %v2800_v60 = vsel %vm1922_vm7, %v2797_v30, %v2799_v37  ;;  %v2678_v1 = vadd.f32 %v2622_v38, %v8137_v54  ;;  %v6104_v10 = vpop.f32.mrb[193].mxu0  ;;  %v2726_v19 = vmax.f32 %v2705_v4, 0.0  ;;  %v2928_v30 = vrot.slane %v8215_v28, 1 }
 0x294   : > { %v2808_v13 = vmax.f32 %v2803_v7, %v2806_v34  ;;  %v2804_v49 = vmax.f32 %v2793_v5, %v2800_v60 }
 0x295   : > { %v2706_v15 = vadd.f32 %v8168_v57, %v2678_v1 }
 0x296   : > { %v2811_v51 = vmax.f32 %v2808_v13, %v2809_v47  ;;  %v2817_v56 = vrot.slane %v2804_v49, 1  ;;  %v2627_v9 = vpop.f32.mrb[194].mxu0  ;;  %v2820_v48 = vrot.slane %v2804_v49, 2 }
 0x297   : > { %v2727_v46 = vmax.f32 %v2706_v15, 0.0  ;;  %v2679_v36 = vadd.f32 %v2627_v9, %v8140_v27  ;;  %v6107_v40 = vpop.f32.mrb[195].mxu0 }
 0x298   : > { %2813 = vst.msk [vmem:[#allocation2 + $0xb] sm:$0x4] %vm2812_vm13, %v2811_v51  ;;  %v2819_v54 = vmax.f32 %v2804_v49, %v2817_v56 }
 0x299   : > { %2815 = vst.msk [vmem:[#allocation2 + $0x9] sm:$0x20] %vm2814_vm14, %v2811_v51  ;;  %v2827_v12 = vrot.slane %v2727_v46, 6  ;;  %v2707_v2 = vadd.f32 %v8168_v57, %v2679_v36 }
 0x29a   : > { %v2822_v59 = vmax.f32 %v2819_v54, %v2820_v48  ;;  %v2632_v52 = vpop.f32.mrb[196].mxu0 }
 0x29b   : > { %v2832_v42 = vmax.f32 %v2725_v14, %v2827_v12  ;;  %v2728_v3 = vmax.f32 %v2707_v2, 0.0  ;;  %v2680_v44 = vadd.f32 %v2632_v52, %v8143_v35  ;;  %v6110_v23 = vpop.f32.mrb[197].mxu0  ;;  %v2917_v14 = vld [vmem:[#allocation3 + $0x10] sm:$0xff] }
 0x29c   : > { %2823 = vst.msk [vmem:[#allocation2 + $0xf] sm:$0x1] %vm2769_vm9, %v2822_v59  ;;  %v6292_v10 = vpack.c.bf16 %v2918_v31, %v2917_v14 }
 0x29d   : > { %2824 = vst.msk [vmem:[#allocation2 + $0xd] sm:$0x8] %vm2771_vm10, %v2822_v59  ;;  %v2828_v27 = vrot.slane %v2728_v3, 6  ;;  %v2708_v20 = vadd.f32 %v8168_v57, %v2680_v44 }
 0x29e   : > { %v2637_v22 = vpop.f32.mrb[198].mxu0 }
 0x29f   : > { %v2829_v61 = vsel %vm1156_vm5, %v2827_v12, %v2828_v27  ;;  %v2729_v50 = vmax.f32 %v2708_v20, 0.0  ;;  %v2681_v33 = vadd.f32 %v2637_v22, %v8146_v17  ;;  %v6113_v21 = vpop.f32.mrb[199].mxu0 }
 0x2a0   : > { %v2833_v6 = vmax.f32 %v2726_v19, %v2829_v61 }
 0x2a1   : > { %v2836_v55 = vrot.slane %v2729_v50, 4  ;;  %v2709_v35 = vadd.f32 %v8168_v57, %v2681_v33 }
 0x2a2   : > { %v2642_v25 = vpop.f32.mrb[200].mxu0 }
 0x2a3   : > { %v2841_v8 = vmax.f32 %v2832_v42, %v2836_v55  ;;  %v2730_v32 = vmax.f32 %v2709_v35, 0.0  ;;  %v2682_v11 = vadd.f32 %v2642_v25, %v8149_v26  ;;  %v6116_v5 = vpop.f32.mrb[201].mxu0  ;;  %v8218_v39 = vld [vmem:[#allocation2 + $0x8] sm:$0xff] }
 0x2a4   : > { %v2929_v17 = vrot.slane %v8218_v39, 1  ;;  %v3607_v53 = vrot.slane %v8218_v39, 5 }
 0x2a5   : > { %v2844_v41 = vrot.slane %v2841_v8, 1  ;;  %v2837_v16 = vrot.slane %v2730_v32, 4  ;;  %v2847_v34 = vrot.slane %v2841_v8, 2  ;;  %v2710_v2 = vadd.f32 %v8168_v57, %v2682_v11 }
 0x2a6   : > { %v2647_v43 = vpop.f32.mrb[202].mxu0  ;;  %v2930_v7 = vsel %vm395_vm3, %v2928_v30, %v2929_v17 }
 0x2a7   : > { %v2846_v37 = vmax.f32 %v2841_v8, %v2844_v41  ;;  %v2838_v26 = vsel %vm1922_vm7, %v2836_v55, %v2837_v16  ;;  %v2683_v38 = vadd.f32 %v2647_v43, %v8152_v58  ;;  %v6119_v60 = vpop.f32.mrb[203].mxu0  ;;  %6138 = vmatmul.mubr.msk.f32.vlgmr.msra.gmra.mrb[168].mxu1 %vm2736_vm8, %v2930_v7  ;;  %v2731_v23 = vmax.f32 %v2710_v2, 0.0 }
 0x2a8   : > { %v2842_v1 = vmax.f32 %v2833_v6, %v2838_v26  ;;  %6140 = vmatprep.mubr.msk.f32.mxu1 %vm6710_vm0, %v6709_v0  ;;  %6290 = vmatpush3.bf16.msra.mxu1 %v6289_v63  ;;  %v8265_v26 = vld [vmem:[#allocation2 + $0x20] sm:$0xff]  ;;  %v3113_v2 = vrot.slane %v8218_v39, 2 }
 0x2a9   : > { %v2849_v13 = vmax.f32 %v2846_v37, %v2847_v34  ;;  %v2711_v47 = vadd.f32 %v8168_v57, %v2683_v38  ;;  %6291 = vmatprep.subr.bf16.mxu1 %v6711_v24 }
 0x2aa   : > { %v2853_v49 = vrot.slane %v2842_v1, 1  ;;  %v2652_v15 = vpop.f32.mrb[204].mxu0  ;;  %v2856_v46 = vrot.slane %v2842_v1, 2 }
 0x2ab   : > { %2851 = vst.msk [vmem:[#allocation2 + $0xf] sm:$0x10] %vm2850_vm15, %v2849_v13  ;;  %v2732_v58 = vmax.f32 %v2711_v47, 0.0  ;;  %v2684_v51 = vadd.f32 %v2652_v15, %v8155_v18  ;;  %v6122_v56 = vpop.f32.mrb[205].mxu0  ;;  %v3108_v13 = vld [vmem:[#allocation3 + $0x40] sm:$0xff]  ;;  %v3109_v47 = vld [vmem:[#allocation3 + $0x48] sm:$0xff] }
 0x2ac   : > { %v2855_v9 = vmax.f32 %v2841_v8, %v2853_v49  ;;  %v2861_v36 = vmax.f32 %v2842_v1, %v2853_v49  ;;  %6293 = vmatpush3.bf16.msra.mxu1 %v6292_v10  ;;  %v3511_v10 = vrot.slane %v8265_v26, 4  ;;  %v6295_v56 = vpack.c.bf16 %v3109_v47, %v3108_v13  ;;  %v3705_v13 = vld [vmem:[#allocation3 + $0x108] sm:$0xff] }
 0x2ad   : > { %v2867_v40 = vrot.slane %v2732_v58, 6  ;;  %v2712_v54 = vadd.f32 %v8168_v57, %v2684_v51  ;;  %6294 = vmatprep.subr.bf16.mxu1 %v6711_v24  ;;  %v3612_v51 = vrot.slane %v8265_v26, 5 }
 0x2ae   : > { %v2858_v48 = vmax.f32 %v2855_v9, %v2856_v46  ;;  %v2862_v12 = vmax.f32 %v2861_v36, %v2856_v46  ;;  %v2657_v59 = vpop.f32.mrb[206].mxu0  ;;  %v3110_v46 = vld [vmem:[#allocation3 + $0x50] sm:$0xff]  ;;  %v3111_v36 = vld [vmem:[#allocation3 + $0x58] sm:$0xff] }
 0x2af   : > { %v2873_v4 = vmax.f32 %v2730_v32, %v2867_v40  ;;  %v2733_v52 = vmax.f32 %v2712_v54, 0.0  ;;  %v2685_v18 = vadd.f32 %v2657_v59, %v8158_v29  ;;  %v6125_v42 = vpop.f32.mrb[207].mxu0  ;;  %v6298_v54 = vpack.c.bf16 %v3111_v36, %v3110_v46 }
 0x2b0   : > { %2863 = vst.msk [vmem:[#allocation2 + $0x13] sm:$0x4] %vm2812_vm13, %v2862_v12  ;;  %v3112_v59 = vrot.slane %v8215_v28, 2 }
 0x2b1   : > { %2864 = vst.msk [vmem:[#allocation2 + $0x11] sm:$0x20] %vm2814_vm14, %v2862_v12  ;;  %v2868_v3 = vrot.slane %v2733_v52, 6  ;;  %v2713_v44 = vadd.f32 %v8168_v57, %v2685_v18  ;;  %v3210_v12 = vld [vmem:[#allocation3 + $0x68] sm:$0xff]  ;;  %v3211_v52 = vld [vmem:[#allocation3 + $0x70] sm:$0xff]  ;;  %v3212_v18 = vld [vmem:[#allocation3 + $0x78] sm:$0xff] }
 0x2b2   : > { %2860 = vst.msk [vmem:[#allocation2 + $0xd] sm:$0x80] %vm2859_vm2, %v2858_v48  ;;  %v2662_v27 = vpop.f32.mrb[208].mxu0  ;;  %v3209_v48 = vld [vmem:[#allocation3 + $0x60] sm:$0xff]  ;;  %v3114_v42 = vsel %vm873_vm4, %v3112_v59, %v3113_v2  ;;  %v5108_v59 = vld [vmem:[%s9072_s5 + $0x110] sm:$0xff] }
 0x2b3   : > { %v2869_v20 = vsel %vm1156_vm5, %v2867_v40, %v2868_v3  ;;  %v2875_v19 = vmax.f32 %v2732_v58, %v2868_v3  ;;  %v2734_v22 = vmax.f32 %v2713_v44, 0.0  ;;  %v2686_v61 = vadd.f32 %v2662_v27, %v8161_v62  ;;  %v6128_v50 = vpop.f32.mrb[209].mxu0 }
 0x2b4   : > { %v2874_v29 = vmax.f32 %v2731_v23, %v2869_v20  ;;  %v6304_v44 = vpack.c.bf16 %v3212_v18, %v3211_v52  ;;  %v3310_v20 = vld [vmem:[#allocation3 + $0x80] sm:$0xff]  ;;  %v3213_v50 = vrot.slane %v8215_v28, 6 }
 0x2b5   : > { %v2878_v33 = vrot.slane %v2734_v22, 4  ;;  %v2714_v21 = vadd.f32 %v8168_v57, %v2686_v61  ;;  %v3214_v61 = vrot.slane %v8218_v39, 6  ;;  %v5115_v18 = vld [vmem:[%s9072_s5 + $0x148] sm:$0xff] }
 0x2b7   : > { %v2884_v6 = vmax.f32 %v2873_v4, %v2878_v33  ;;  %v2735_v55 = vmax.f32 %v2714_v21, 0.0  ;;  %v6301_v4 = vpack.c.bf16 %v3210_v12, %v3209_v48  ;;  %v3313_v21 = vld [vmem:[#allocation3 + $0x98] sm:$0xff] }
 0x2b8   : > { %v5110_v48 = vld [vmem:[%s9072_s5 + $0x120] sm:$0xff] }
 0x2b9   : > { %v8245_v35 = vld [vmem:[#allocation2 + $0x10] sm:$0xff]  ;;  %v2879_v8 = vrot.slane %v2735_v55, 4  ;;  %v2888_v32 = vrot.slane %v2884_v6, 1 }
 0x2ba   : > { %v2931_v45 = vrot.slane %v8245_v35, 1  ;;  %v3608_v25 = vrot.slane %v8245_v35, 5  ;;  %v3115_v3 = vrot.slane %v8245_v35, 2  ;;  %v3216_v55 = vrot.slane %v8245_v35, 6 }
 0x2bb   : > { %v2880_v57 = vsel %vm1922_vm7, %v2878_v33, %v2879_v8  ;;  %v2886_v5 = vmax.f32 %v2875_v19, %v2879_v8  ;;  %v2890_v41 = vmax.f32 %v2884_v6, %v2888_v32  ;;  %v3311_v19 = vld [vmem:[#allocation3 + $0x88] sm:$0xff]  ;;  %v3312_v33 = vld [vmem:[#allocation3 + $0x90] sm:$0xff]  ;;  %v3215_v6 = vsel %vm1156_vm5, %v3213_v50, %v3214_v61  ;;  %v3411_v8 = vld [vmem:[#allocation3 + $0xa0] sm:$0xff] }
 0x2bc   : > { %v2932_v62 = vsel %vm395_vm3, %v2929_v17, %v2931_v45  ;;  %v3609_v11 = vsel %vm482_vm1, %v3607_v53, %v3608_v25  ;;  %v2885_v30 = vmax.f32 %v2874_v29, %v2880_v57  ;;  %v3116_v23 = vsel %vm873_vm4, %v3113_v2, %v3115_v3  ;;  %v3412_v32 = vld [vmem:[#allocation3 + $0xa8] sm:$0xff] }
 0x2bd   : > { %6141 = vmatmul.mubr.msk.f32.gmra.mrb[170].mxu1 %vm2736_vm8, %v2932_v62  ;;  %6257 = vmatmul.mubr.msk.f32.vlgmr.msra.gmra.mrb[210].mxu0 %vm2736_vm8, %v3609_v11  ;;  %v2903_v63 = vrot.slane %v2886_v5, 1  ;;  %v2906_v31 = vrot.slane %v2886_v5, 2  ;;  %v6307_v29 = vpack.c.bf16 %v3311_v19, %v3310_v20  ;;  %v8331_v53 = vsel %vm1156_vm5, %v3214_v61, %v3216_v55  ;;  %v5118_v20 = vld [vmem:[%s9072_s5 + $0x160] sm:$0xff]  ;;  %v5116_v50 = vld [vmem:[%s9072_s5 + $0x150] sm:$0xff] }
 0x2be   : > { %6143 = vmatprep.mubr.msk.f32.mxu1 %vm6710_vm0, %v6709_v0  ;;  %6259 = vmatprep.mubr.msk.f32.mxu0 %vm6710_vm0, %v6709_v0  ;;  %v2892_v16 = vrot.slane %v2885_v30, 2  ;;  %v2896_v17 = vrot.slane %v2885_v30, 1  ;;  %v3315_v11 = vrot.slane %v8218_v39, 7  ;;  %v3314_v57 = vrot.slane %v8215_v28, 7 }
 0x2bf   : > { %v2905_v14 = vmax.f32 %v2885_v30, %v2903_v63  ;;  %v6313_v5 = vpack.c.bf16 %v3412_v32, %v3411_v8  ;;  %v3414_v63 = vld [vmem:[#allocation3 + $0xb8] sm:$0xff]  ;;  %v3507_v47 = vrot.slane %v8245_v35, 4 }
 0x2c0   : > { %v2894_v43 = vmax.f32 %v2890_v41, %v2892_v16  ;;  %v2898_v7 = vmax.f32 %v2885_v30, %v2896_v17  ;;  %v3413_v30 = vld [vmem:[#allocation3 + $0xb0] sm:$0xff]  ;;  %v3316_v41 = vsel %vm1438_vm6, %v3314_v57, %v3315_v11  ;;  %v5122_v8 = vld [vmem:[%s9072_s5 + $0x180] sm:$0xff]  ;;  %v5124_v57 = vld [vmem:[%s9072_s5 + $0x190] sm:$0xff] }
 0x2c1   : > { %v2908_v37 = vmax.f32 %v2905_v14, %v2906_v31  ;;  %v6316_v17 = vpack.c.bf16 %v3414_v63, %v3413_v30  ;;  %v3501_v31 = vld [vmem:[#allocation3 + $0xc0] sm:$0xff]  ;;  %v5126_v32 = vld [vmem:[%s9072_s5 + $0x1a0] sm:$0xff] }
 0x2c2   : > { %2895 = vst.msk [vmem:[#allocation2 + $0x13] sm:$0x40] %vm2777_vm12, %v2894_v43  ;;  %v2899_v34 = vmax.f32 %v2898_v7, %v2892_v16  ;;  %v3317_v16 = vrot.slane %v8245_v35, 7  ;;  %v3502_v43 = vld [vmem:[#allocation3 + $0xc8] sm:$0xff]  ;;  %v5131_v63 = vld [vmem:[%s9072_s5 + $0x1c8] sm:$0xff] }
 0x2c3   : > { %2909 = vst.msk [vmem:[#allocation2 + $0x15] sm:$0x80] %vm2859_vm2, %v2908_v37  ;;  %v6319_v37 = vpack.c.bf16 %v3502_v43, %v3501_v31  ;;  %v5134_v31 = vld [vmem:[%s9072_s5 + $0x1e0] sm:$0xff] }
 0x2c4   : > { %2900 = vst.msk [vmem:[#allocation2 + $0x19] sm:$0x2] %vm2783_vm11, %v2899_v34  ;;  %v3318_v14 = vsel %vm1438_vm6, %v3315_v11, %v3317_v16  ;;  %v6346_v11 = vpack.c.bf16 %v5126_v32, %v5122_v8 }
 0x2c5   : > { %2901 = vst.msk [vmem:[#allocation2 + $0x17] sm:$0x10] %vm2850_vm15, %v2899_v34  ;;  %v3503_v34 = vld [vmem:[#allocation3 + $0xd0] sm:$0xff] }
 0x2cc   : > { %v8267_v38 = vld [vmem:[#allocation2 + $0x18] sm:$0xff] }
 0x2cd   : > { %v2933_v60 = vrot.slane %v8267_v38, 1  ;;  %v3610_v1 = vrot.slane %v8267_v38, 5  ;;  %v3509_v49 = vrot.slane %v8267_v38, 4  ;;  %v3117_v27 = vrot.slane %v8267_v38, 2 }
 0x2cf   : > { %v2934_v15 = vsel %vm395_vm3, %v2931_v45, %v2933_v60  ;;  %v3611_v58 = vsel %vm482_vm1, %v3608_v25, %v3610_v1  ;;  %v8285_v9 = vsel %vm1922_vm7, %v3509_v49, %v3511_v10  ;;  %v3613_v40 = vsel %vm482_vm1, %v3610_v1, %v3612_v51  ;;  %v3504_v60 = vld [vmem:[#allocation3 + $0xd8] sm:$0xff]  ;;  %v3704_v10 = vld [vmem:[#allocation3 + $0x100] sm:$0xff]  ;;  %v3706_v51 = vld [vmem:[#allocation3 + $0x110] sm:$0xff] }
 0x2d0   : > { %6144 = vmatmul.mubr.msk.f32.gmra.mrb[172].mxu1 %vm2736_vm8, %v2934_v15  ;;  %6260 = vmatmul.mubr.msk.f32.gmra.mrb[212].mxu0 %vm2736_vm8, %v3611_v58  ;;  %v3118_v22 = vsel %vm873_vm4, %v3115_v3, %v3117_v27  ;;  %v6310_v45 = vpack.c.bf16 %v3313_v21, %v3312_v33  ;;  %v3218_v25 = vrot.slane %v8267_v38, 6  ;;  %v6322_v1 = vpack.c.bf16 %v3504_v60, %v3503_v34  ;;  %v5117_v3 = vld [vmem:[%s9072_s5 + $0x158] sm:$0xff]  ;;  %v5114_v27 = vld [vmem:[%s9072_s5 + $0x140] sm:$0xff]  ;;  %v5136_v34 = vld [vmem:[%s9072_s5 + $0x1f0] sm:$0xff] }
 0x2d1   : > { %6154 = vmatprep.mubr.msk.f32.mxu1 %vm6710_vm0, %v6709_v0  ;;  %6262 = vmatprep.mubr.msk.f32.mxu0 %vm6710_vm0, %v6709_v0  ;;  %v3506_v15 = vrot.slane %v8218_v39, 4  ;;  %v6331_v58 = vpack.c.bf16 %v3705_v13, %v3704_v10  ;;  %v3510_v36 = vsel %vm1922_vm7, %v3507_v47, %v3509_v49  ;;  %v5107_v49 = vld [vmem:[%s9072_s5 + $0x108] sm:$0xff]  ;;  %v6342_v61 = vpack.c.bf16 %v5118_v20, %v5114_v27  ;;  %v3822_v13 = vld [vmem:[%s9072_s5 + $0x18] sm:$0xff] }
 0x2d2   : > { %v3219_v62 = vsel %vm1156_vm5, %v3216_v55, %v3218_v25  ;;  %v5127_v55 = vld [vmem:[%s9072_s5 + $0x1a8] sm:$0xff] }
 0x2d3   : > { %v3508_v46 = vsel %vm1922_vm7, %v3506_v15, %v3507_v47  ;;  %v3824_v10 = vld [vmem:[%s9072_s5 + $0x28] sm:$0xff]  ;;  %v3826_v15 = vld [vmem:[%s9072_s5 + $0x38] sm:$0xff] }
 0x2d4   : > { %6155 = vmatmul.mubr.msk.f32.vlgmr.msra.gmra.mrb[174].mxu1 %vm2736_vm8, %v8215_v28  ;;  %6263 = vmatmul.mubr.msk.f32.gmra.mrb[214].mxu0 %vm2736_vm8, %v3613_v40  ;;  %v3319_v28 = vrot.slane %v8267_v38, 7 }
 0x2d5   : > { %6296 = vmatpush3.bf16.msra.mxu1 %v6295_v56  ;;  %6157 = vmatprep.mubr.msk.f32.mxu1 %vm6710_vm0, %v6709_v0  ;;  %v3707_v56 = vld [vmem:[#allocation3 + $0x118] sm:$0xff] }
 0x2d6   : > { %6297 = vmatprep.subr.bf16.mxu1 %v6711_v24  ;;  %3953 = vmatprep.mubr.f32.mxu0 %v6709_v0  ;;  %v3320_v7 = vsel %vm1438_vm6, %v3317_v16, %v3319_v28  ;;  %v5133_v16 = vld [vmem:[%s9072_s5 + $0x1d8] sm:$0xff]  ;;  %v5130_v28 = vld [vmem:[%s9072_s5 + $0x1c0] sm:$0xff] }
 0x2d8   : > { %6158 = vmatmul.mubr.msk.f32.gmra.mrb[176].mxu1 %vm2736_vm8, %v8218_v39 }
 0x2d9   : > { %6299 = vmatpush3.bf16.msra.mxu1 %v6298_v54  ;;  %6160 = vmatprep.mubr.msk.f32.mxu1 %vm6710_vm0, %v6709_v0  ;;  %v5106_v54 = vld [vmem:[%s9072_s5 + $0x100] sm:$0xff] }
 0x2da   : > { %6300 = vmatprep.subr.bf16.mxu1 %v6711_v24  ;;  %v6338_v2 = vpack.c.bf16 %v5110_v48, %v5106_v54 }
 0x2dc   : > { %6161 = vmatmul.mubr.msk.f32.gmra.mrb[178].mxu1 %vm2736_vm8, %v8245_v35 }
 0x2dd   : > { %6171 = vmatprep.mubr.msk.f32.mxu1 %vm6710_vm0, %v6709_v0 }
 0x2e0   : > { %6172 = vmatmul.mubr.msk.f32.vlgmr.msra.gmra.mrb[180].mxu1 %vm2736_vm8, %v3114_v42  ;;  %v5119_v42 = vld [vmem:[%s9072_s5 + $0x168] sm:$0xff] }
 0x2e1   : > { %6302 = vmatpush3.bf16.msra.mxu1 %v6301_v4  ;;  %6174 = vmatprep.mubr.msk.f32.mxu1 %vm6710_vm0, %v6709_v0  ;;  %v5112_v4 = vld [vmem:[%s9072_s5 + $0x130] sm:$0xff] }
 0x2e2   : > { %6303 = vmatprep.subr.bf16.mxu1 %v6711_v24  ;;  %v6354_v52 = vpack.c.bf16 %v5112_v4, %v5108_v59 }
 0x2e4   : > { %6175 = vmatmul.mubr.msk.f32.gmra.mrb[182].mxu1 %vm2736_vm8, %v3116_v23  ;;  %v5121_v23 = vld [vmem:[%s9072_s5 + $0x178] sm:$0xff] }
 0x2e5   : > { %6305 = vmatpush3.bf16.msra.mxu1 %v6304_v44  ;;  %6177 = vmatprep.mubr.msk.f32.mxu1 %vm6710_vm0, %v6709_v0  ;;  %v6340_v44 = vpack.c.bf16 %v5119_v42, %v5115_v18 }
 0x2e6   : > { %6306 = vmatprep.subr.bf16.mxu1 %v6711_v24 }
 0x2e8   : > { %6178 = vmatmul.mubr.msk.f32.gmra.mrb[184].mxu1 %vm2736_vm8, %v3118_v22  ;;  %v6356_v22 = vpack.c.bf16 %v5121_v23, %v5117_v3 }
 0x2e9   : > { %6188 = vmatprep.mubr.msk.f32.mxu1 %vm6710_vm0, %v6709_v0 }
 0x2ec   : > { %6189 = vmatmul.mubr.msk.f32.vlgmr.msra.gmra.mrb[186].mxu1 %vm2736_vm8, %v3215_v6  ;;  %v5123_v6 = vld [vmem:[%s9072_s5 + $0x188] sm:$0xff] }
 0x2ed   : > { %6308 = vmatpush3.bf16.msra.mxu1 %v6307_v29  ;;  %6191 = vmatprep.mubr.msk.f32.mxu1 %vm6710_vm0, %v6709_v0  ;;  %v5120_v29 = vld [vmem:[%s9072_s5 + $0x170] sm:$0xff] }
 0x2ee   : > { %6309 = vmatprep.subr.bf16.mxu1 %v6711_v24  ;;  %v6358_v21 = vpack.c.bf16 %v5120_v29, %v5116_v50 }
 0x2f0   : > { %6192 = vmatmul.mubr.msk.f32.gmra.mrb[188].mxu1 %vm2736_vm8, %v8331_v53 }
 0x2f1   : > { %6311 = vmatpush3.bf16.msra.mxu1 %v6310_v45  ;;  %6194 = vmatprep.mubr.msk.f32.mxu1 %vm6710_vm0, %v6709_v0  ;;  %v5125_v45 = vld [vmem:[%s9072_s5 + $0x198] sm:$0xff] }
 0x2f2   : > { %6312 = vmatprep.subr.bf16.mxu1 %v6711_v24 }
 0x2f4   : > { %6195 = vmatmul.mubr.msk.f32.gmra.mrb[190].mxu1 %vm2736_vm8, %v3219_v62 }
 0x2f5   : > { %6205 = vmatprep.mubr.msk.f32.mxu1 %vm6710_vm0, %v6709_v0 }
 0x2f8   : > { %6206 = vmatmul.mubr.msk.f32.vlgmr.msra.gmra.mrb[192].mxu1 %vm2736_vm8, %v3316_v41  ;;  %v5135_v41 = vld [vmem:[%s9072_s5 + $0x1e8] sm:$0xff] }
 0x2f9   : > { %6314 = vmatpush3.bf16.msra.mxu1 %v6313_v5  ;;  %6208 = vmatprep.mubr.msk.f32.mxu1 %vm6710_vm0, %v6709_v0  ;;  %v5128_v5 = vld [vmem:[%s9072_s5 + $0x1b0] sm:$0xff] }
 0x2fa   : > { %6315 = vmatprep.subr.bf16.mxu1 %v6711_v24  ;;  %v6362_v30 = vpack.c.bf16 %v5128_v5, %v5124_v57 }
 0x2fc   : > { %6209 = vmatmul.mubr.msk.f32.gmra.mrb[194].mxu1 %vm2736_vm8, %v3318_v14  ;;  %v5137_v14 = vld [vmem:[%s9072_s5 + $0x1f8] sm:$0xff] }
 0x2fd   : > { %6317 = vmatpush3.bf16.msra.mxu1 %v6316_v17  ;;  %6211 = vmatprep.mubr.msk.f32.mxu1 %vm6710_vm0, %v6709_v0  ;;  %v6348_v17 = vpack.c.bf16 %v5135_v41, %v5131_v63  ;;  %v6364_v43 = vpack.c.bf16 %v5137_v14, %v5133_v16 }
 0x2fe   : > { %6318 = vmatprep.subr.bf16.mxu1 %v6711_v24 }
 0x300   : > { %6212 = vmatmul.mubr.msk.f32.gmra.mrb[196].mxu1 %vm2736_vm8, %v3320_v7  ;;  %v6350_v7 = vpack.c.bf16 %v5134_v31, %v5130_v28 }
 0x301   : > { %6222 = vmatprep.mubr.msk.f32.mxu1 %vm6710_vm0, %v6709_v0 }
 0x304   : > { %6223 = vmatmul.mubr.msk.f32.vlgmr.msra.gmra.mrb[198].mxu1 %vm2736_vm8, %v8218_v39 }
 0x305   : > { %6320 = vmatpush3.bf16.msra.mxu1 %v6319_v37  ;;  %6225 = vmatprep.mubr.msk.f32.mxu1 %vm6710_vm0, %v6709_v0  ;;  %v5132_v37 = vld [vmem:[%s9072_s5 + $0x1d0] sm:$0xff] }
 0x306   : > { %6321 = vmatprep.subr.bf16.mxu1 %v6711_v24  ;;  %v6366_v60 = vpack.c.bf16 %v5136_v34, %v5132_v37 }
 0x308   : > { %6226 = vmatmul.mubr.msk.f32.gmra.mrb[200].mxu1 %vm2736_vm8, %v8245_v35  ;;  %v6334_v35 = vpack.c.bf16 %v3707_v56, %v3706_v51 }
 0x309   : > { %6323 = vmatpush3.bf16.msra.mxu1 %v6322_v1  ;;  %6228 = vmatprep.mubr.msk.f32.mxu1 %vm6710_vm0, %v6709_v0  ;;  %v3820_v1 = vld [vmem:[%s9072_s5 + $0x8] sm:$0xff] }
 0x30a   : > { %6330 = vmatprep.subr.bf16.mxu1 %v6711_v24  ;;  %v6368_v47 = vpack.c.bf16 %v3824_v10, %v3820_v1 }
 0x30c   : > { %6229 = vmatmul.mubr.msk.f32.gmra.mrb[202].mxu1 %vm2736_vm8, %v8267_v38  ;;  %v5113_v38 = vld [vmem:[%s9072_s5 + $0x138] sm:$0xff] }
 0x30d   : > { %6239 = vmatprep.mubr.msk.f32.mxu1 %vm6710_vm0, %v6709_v0 }
 0x310   : > { %6240 = vmatmul.mubr.msk.f32.vlgmr.msra.gmra.mrb[204].mxu1 %vm2736_vm8, %v3508_v46 }
 0x311   : > { %6332 = vmatpush3.bf16.msra.mxu1 %v6331_v58  ;;  %6242 = vmatprep.mubr.msk.f32.mxu1 %vm6710_vm0, %v6709_v0  ;;  %v6384_v58 = vpack.c.bf16 %v3826_v15, %v3822_v13 }
 0x312   : > { %6333 = vmatprep.subr.bf16.mxu1 %v6711_v24  ;;  %v3708_v24 = vrot.slane %v8265_v26, 6  ;;  %v5111_v26 = vld [vmem:[%s9072_s5 + $0x128] sm:$0xff] }
 0x313   : > { %v6336_v40 = vpack.c.bf16 %v5111_v26, %v5107_v49 }
 0x314   : > { %6243 = vmatmul.mubr.msk.f32.gmra.mrb[206].mxu1 %vm2736_vm8, %v3510_v36  ;;  %v3709_v39 = vsel %vm1156_vm5, %v3218_v25, %v3708_v24  ;;  %v5129_v25 = vld [vmem:[%s9072_s5 + $0x1b8] sm:$0xff] }
 0x315   : > { %6335 = vmatpush3.bf16.msra.mxu1 %v6334_v35  ;;  %6245 = vmatprep.mubr.msk.f32.mxu1 %vm6710_vm0, %v6709_v0 }
 0x316   : > { %6337 = vmatprep.subr.bf16.mxu0 %v6336_v40 }
 0x317   : > { %6339 = vmatpush1.bf16.msra.mxu0 %v6338_v2 }
 0x318   : > { %6246 = vmatmul.mubr.msk.f32.gmra.mrb[208].mxu1 %vm2736_vm8, %v8285_v9  ;;  %v5109_v9 = vld [vmem:[%s9072_s5 + $0x118] sm:$0xff]  ;;  %6341 = vmatprep.subr.bf16.mxu0 %v6340_v44 }
 0x319   : > { %6273 = vmatprep.mubr.msk.f32.mxu1 %vm6710_vm0, %v6709_v0  ;;  %v6352_v12 = vpack.c.bf16 %v5113_v38, %v5109_v9 }
 0x31b   : > { %6353 = vmatprep.subr.bf16.mxu1 %v6352_v12  ;;  %6343 = vmatpush1.bf16.msra.mxu0 %v6342_v61 }
 0x31c   : > { %6274 = vmatmul.mubr.msk.f32.vlgmr.msra.gmra.mrb[210].mxu1 %vm2736_vm8, %v8331_v53  ;;  %v6344_v53 = vpack.c.bf16 %v5127_v55, %v5123_v6 }
 0x31d   : > { %6276 = vmatprep.mubr.msk.f32.mxu1 %vm6710_vm0, %v6709_v0  ;;  %6355 = vmatpush1.bf16.msra.mxu1 %v6354_v52 }
 0x31e   : > { %6357 = vmatprep.subr.bf16.mxu1 %v6356_v22  ;;  %6345 = vmatprep.subr.bf16.mxu0 %v6344_v53 }
 0x31f   : > { %6347 = vmatpush1.bf16.msra.mxu0 %v6346_v11 }
 0x320   : > { %6277 = vmatmul.mubr.msk.f32.gmra.mrb[212].mxu1 %vm2736_vm8, %v3219_v62  ;;  %v6360_v62 = vpack.c.bf16 %v5129_v25, %v5125_v45  ;;  %6349 = vmatprep.subr.bf16.mxu0 %v6348_v17 }
 0x321   : > { %6279 = vmatprep.mubr.msk.f32.mxu1 %vm6710_vm0, %v6709_v0  ;;  %6359 = vmatpush1.bf16.msra.mxu1 %v6358_v21  ;;  %vm3886_vm0 = vcmask 523264  }
 0x322   : > { %6361 = vmatprep.subr.bf16.mxu1 %v6360_v62 }
 0x323   : > { %6351 = vmatpush1.bf16.msra.mxu0 %v6350_v7 }
 0x324   : > { %6280 = vmatmul.mubr.msk.f32.gmra.mrb[214].mxu1 %vm2736_vm8, %v3709_v39  ;;  %6369 = vmatprep.subr.bf16.mxu0 %v6368_v47 }
 0x325   : > { %4024 = vmatprep.mubr.f32.mxu1 %v6709_v0  ;;  %6363 = vmatpush1.bf16.msra.mxu1 %v6362_v30 }
 0x326   : > { %6365 = vmatprep.subr.bf16.mxu1 %v6364_v43 }
 0x329   : > { %6367 = vmatpush1.bf16.msra.mxu1 %v6366_v60 }
 0x32a   : > { %6385 = vmatprep.subr.bf16.mxu1 %v6384_v58 }
 0x37a   : > { %v3007_v19 = vpop.f32.mrb[168].mxu1 }
 0x37b   : > { %v6139_v33 = vpop.f32.mrb[169].mxu1 }
 0x390   : > { %v3012_v51 = vpop.f32.mrb[170].mxu1  ;;  %v3686_v56 = vpop.f32.mrb[210].mxu0 }
 0x391   : > { %v6142_v46 = vpop.f32.mrb[171].mxu1  ;;  %v6258_v35 = vpop.f32.mrb[211].mxu0 }
 0x3a3   : > { %v3017_v36 = vpop.f32.mrb[172].mxu1  ;;  %v3691_v24 = vpop.f32.mrb[212].mxu0 }
 0x3a4   : > { %v6145_v39 = vpop.f32.mrb[173].mxu1  ;;  %v6261_v49 = vpop.f32.mrb[213].mxu0 }
 0x3a5   : > { %v5105_v49 = vld [vmem:[%s9071_s4] ss:$0 sm:$0xff] }
 0x3a7   : > { %v3093_v26 = vpop.f32.mrb[174].mxu1  ;;  %v3696_v9 = vpop.f32.mrb[214].mxu0 }
 0x3a8   : > { %v3094_v40 = vadd.f32 %v3093_v26, %v3007_v19  ;;  %v6156_v38 = vpop.f32.mrb[175].mxu1  ;;  %v6264_v54 = vpop.f32.mrb[215].mxu0 }
 0x3ab   : > { %v3098_v48 = vpop.f32.mrb[176].mxu1 }
 0x3ac   : > { %v3099_v12 = vadd.f32 %v3098_v48, %v3012_v51  ;;  %v6159_v2 = vpop.f32.mrb[177].mxu1 }
 0x3af   : > { %v3103_v59 = vpop.f32.mrb[178].mxu1 }
 0x3b0   : > { %v3104_v4 = vadd.f32 %v3103_v59, %v3017_v36  ;;  %v6162_v52 = vpop.f32.mrb[179].mxu1 }
 0x3b3   : > { %v3191_v18 = vpop.f32.mrb[180].mxu1 }
 0x3b4   : > { %v3205_v42 = vadd.f32 %v3191_v18, %v3094_v40  ;;  %v6173_v3 = vpop.f32.mrb[181].mxu1 }
 0x3b7   : > { %v3196_v44 = vpop.f32.mrb[182].mxu1 }
 0x3b8   : > { %v3206_v23 = vadd.f32 %v3196_v44, %v3099_v12  ;;  %v6176_v27 = vpop.f32.mrb[183].mxu1 }
 0x3bb   : > { %v3201_v20 = vpop.f32.mrb[184].mxu1 }
 0x3bc   : > { %v3207_v22 = vadd.f32 %v3201_v20, %v3104_v4  ;;  %v6179_v61 = vpop.f32.mrb[185].mxu1  ;;  %v3819_v20 = vld [vmem:[%s9072_s5] sm:$0xff] }
 0x3bf   : > { %v3292_v50 = vpop.f32.mrb[186].mxu1 }
 0x3c0   : > { %v3306_v29 = vadd.f32 %v3292_v50, %v3205_v42  ;;  %v6190_v19 = vpop.f32.mrb[187].mxu1  ;;  %v3821_v50 = vld [vmem:[%s9072_s5 + $0x10] sm:$0xff] }
 0x3c1   : > { %v3828_v19 = vld [vmem:[%s9072_s5 + $0x48] sm:$0xff] }
 0x3c3   : > { %v3297_v33 = vpop.f32.mrb[188].mxu1 }
 0x3c4   : > { %v3307_v21 = vadd.f32 %v3297_v33, %v3206_v23  ;;  %v6193_v6 = vpop.f32.mrb[189].mxu1 }
 0x3c5   : > { %v3830_v6 = vld [vmem:[%s9072_s5 + $0x58] sm:$0xff] }
 0x3c7   : > { %v3302_v55 = vpop.f32.mrb[190].mxu1 }
 0x3c8   : > { %v3308_v45 = vadd.f32 %v3302_v55, %v3207_v22  ;;  %v6196_v53 = vpop.f32.mrb[191].mxu1  ;;  %v3823_v22 = vld [vmem:[%s9072_s5 + $0x20] sm:$0xff]  ;;  %v3834_v55 = vld [vmem:[%s9072_s5 + $0x78] sm:$0xff] }
 0x3c9   : > { %v6370_v53 = vpack.c.bf16 %v3823_v22, %v3819_v20  ;;  %v5154_v20 = vld [vmem:[%s9072_s5 + $0x260] sm:$0xff] }
 0x3cb   : > { %v3393_v25 = vpop.f32.mrb[192].mxu1 }
 0x3cc   : > { %v3407_v8 = vadd.f32 %v3393_v25, %v3306_v29  ;;  %v6207_v32 = vpop.f32.mrb[193].mxu1  ;;  %v3825_v29 = vld [vmem:[%s9072_s5 + $0x30] sm:$0xff] }
 0x3cd   : > { %v6386_v25 = vpack.c.bf16 %v3825_v29, %v3821_v50  ;;  %v3831_v32 = vld [vmem:[%s9072_s5 + $0x60] sm:$0xff]  ;;  %v5152_v50 = vld [vmem:[%s9072_s5 + $0x250] sm:$0xff] }
 0x3ce   : > { %v5156_v29 = vld [vmem:[%s9072_s5 + $0x270] sm:$0xff] }
 0x3cf   : > { %v3398_v62 = vpop.f32.mrb[194].mxu1 }
 0x3d0   : > { %v3408_v11 = vadd.f32 %v3398_v62, %v3307_v21  ;;  %v6210_v57 = vpop.f32.mrb[195].mxu1  ;;  %v3832_v21 = vld [vmem:[%s9072_s5 + $0x68] sm:$0xff] }
 0x3d1   : > { %v6388_v57 = vpack.c.bf16 %v3834_v55, %v3830_v6  ;;  %v5161_v6 = vld [vmem:[%s9072_s5 + $0x298] sm:$0xff] }
 0x3d2   : > { %v5165_v55 = vld [vmem:[%s9072_s5 + $0x2b8] sm:$0xff] }
 0x3d3   : > { %v3403_v5 = vpop.f32.mrb[196].mxu1 }
 0x3d4   : > { %v3409_v30 = vadd.f32 %v3403_v5, %v3308_v45  ;;  %v6213_v63 = vpop.f32.mrb[197].mxu1  ;;  %v3829_v5 = vld [vmem:[%s9072_s5 + $0x50] sm:$0xff] }
 0x3d5   : > { %v3836_v63 = vld [vmem:[%s9072_s5 + $0x88] sm:$0xff] }
 0x3d7   : > { %v3483_v41 = vpop.f32.mrb[198].mxu1 }
 0x3d8   : > { %v3497_v16 = vadd.f32 %v3483_v41, %v3407_v8  ;;  %v6224_v17 = vpop.f32.mrb[199].mxu1  ;;  %v3827_v8 = vld [vmem:[%s9072_s5 + $0x40] sm:$0xff]  ;;  %v3840_v41 = vld [vmem:[%s9072_s5 + $0xa8] sm:$0xff] }
 0x3d9   : > { %v3842_v17 = vld [vmem:[%s9072_s5 + $0xb8] sm:$0xff] }
 0x3db   : > { %v3488_v14 = vpop.f32.mrb[200].mxu1 }
 0x3dc   : > { %v3498_v28 = vadd.f32 %v3488_v14, %v3408_v11  ;;  %v6227_v31 = vpop.f32.mrb[201].mxu1  ;;  %v6372_v11 = vpack.c.bf16 %v3832_v21, %v3828_v19  ;;  %v6374_v14 = vpack.c.bf16 %v3831_v32, %v3827_v8  ;;  %v5159_v19 = vld [vmem:[%s9072_s5 + $0x288] sm:$0xff]  ;;  %v5158_v8 = vld [vmem:[%s9072_s5 + $0x280] sm:$0xff] }
 0x3dd   : > { %v3835_v31 = vld [vmem:[%s9072_s5 + $0x80] sm:$0xff]  ;;  %v5163_v21 = vld [vmem:[%s9072_s5 + $0x2a8] sm:$0xff] }
 0x3de   : > { %v5162_v32 = vld [vmem:[%s9072_s5 + $0x2a0] sm:$0xff] }
 0x3df   : > { %v3493_v43 = vpop.f32.mrb[202].mxu1 }
 0x3e0   : > { %v3499_v7 = vadd.f32 %v3493_v43, %v3409_v30  ;;  %v6230_v37 = vpop.f32.mrb[203].mxu1  ;;  %v3833_v30 = vld [vmem:[%s9072_s5 + $0x70] sm:$0xff]  ;;  %v3839_v43 = vld [vmem:[%s9072_s5 + $0xa0] sm:$0xff] }
 0x3e3   : > { %v3585_v34 = vpop.f32.mrb[204].mxu1 }
 0x3e4   : > { %v3599_v60 = vadd.f32 %v3585_v34, %v3497_v16  ;;  %v6241_v1 = vpop.f32.mrb[205].mxu1  ;;  %v3838_v16 = vld [vmem:[%s9072_s5 + $0x98] sm:$0xff]  ;;  %v3837_v34 = vld [vmem:[%s9072_s5 + $0x90] sm:$0xff] }
 0x3e5   : > { %v6392_v37 = vpack.c.bf16 %v3842_v17, %v3838_v16  ;;  %v3844_v1 = vld [vmem:[%s9072_s5 + $0xc8] sm:$0xff]  ;;  %v6410_v16 = vpack.c.bf16 %v5162_v32, %v5158_v8  ;;  %v5200_v8 = vld [vmem:[%s9072_s5 + $0x3c0] sm:$0xff] }
 0x3e6   : > { %v3700_v10 = vadd.f32 %v3686_v56, %v3599_v60  ;;  %v3841_v60 = vld [vmem:[%s9072_s5 + $0xb0] sm:$0xff]  ;;  %v5204_v32 = vld [vmem:[%s9072_s5 + $0x3e0] sm:$0xff] }
 0x3e7   : > { %v3590_v13 = vpop.f32.mrb[206].mxu1 }
 0x3e8   : > { %v3600_v47 = vadd.f32 %v3590_v13, %v3498_v28  ;;  %v6244_v15 = vpop.f32.mrb[207].mxu1  ;;  %v6390_v28 = vpack.c.bf16 %v3833_v30, %v3829_v5  ;;  %v3846_v13 = vld [vmem:[%s9072_s5 + $0xd8] sm:$0xff]  ;;  %v5167_v5 = vld [vmem:[%s9072_s5 + $0x2c8] sm:$0xff] }
 0x3e9   : > { %v6378_v15 = vpack.c.bf16 %v3839_v43, %v3835_v31  ;;  %v5171_v30 = vld [vmem:[%s9072_s5 + $0x2e8] sm:$0xff] }
 0x3ea   : > { %v3701_v58 = vadd.f32 %v3691_v24, %v3600_v47  ;;  %v3850_v47 = vld [vmem:[%s9072_s5 + $0xf8] sm:$0xff]  ;;  %v6412_v43 = vpack.c.bf16 %v5171_v30, %v5167_v5  ;;  %v4595_v5 = vld [vmem:[%s9074_s7 + $0x88] sm:$0xff]  ;;  %v4626_v30 = vld [vmem:[%s9074_s7 + $0x180] sm:$0xff] }
 0x3eb   : > { %v3595_v51 = vpop.f32.mrb[208].mxu1 }
 0x3ec   : > { %v3601_v46 = vadd.f32 %v3595_v51, %v3499_v7  ;;  %v6247_v35 = vpop.f32.mrb[209].mxu1  ;;  %v6376_v7 = vpack.c.bf16 %v3840_v41, %v3836_v63  ;;  %v3843_v51 = vld [vmem:[%s9072_s5 + $0xc0] sm:$0xff]  ;;  %v5169_v63 = vld [vmem:[%s9072_s5 + $0x2d8] sm:$0xff] }
 0x3ed   : > { %v5173_v41 = vld [vmem:[%s9072_s5 + $0x2f8] sm:$0xff] }
 0x3ee   : > { %v3702_v36 = vadd.f32 %v3696_v9, %v3601_v46  ;;  %v3847_v46 = vld [vmem:[%s9072_s5 + $0xe0] sm:$0xff] }
 0x3ef   : > { %v3778_v39 = vpop.f32.mrb[210].mxu1 }
 0x3f0   : > { %v3792_v26 = vadd.f32 %v3778_v39, %v3700_v10  ;;  %v6275_v40 = vpop.f32.mrb[211].mxu1  ;;  %v3848_v10 = vld [vmem:[%s9072_s5 + $0xe8] sm:$0xff]  ;;  %v3845_v39 = vld [vmem:[%s9072_s5 + $0xd0] sm:$0xff] }
 0x3f1   : > { %v6380_v35 = vpack.c.bf16 %v3848_v10, %v3844_v1  ;;  %v5147_v40 = vld [vmem:[%s9072_s5 + $0x228] sm:$0xff]  ;;  %v5179_v10 = vld [vmem:[%s9072_s5 + $0x318] sm:$0xff] }
 0x3f2   : > { %v3802_v38 = vadd.f32 %v5105_v49, %v3792_v26  ;;  %v5143_v26 = vld [vmem:[%s9072_s5 + $0x208] sm:$0xff] }
 0x3f3   : > { %v3783_v54 = vpop.f32.mrb[212].mxu1  ;;  %v5181_v1 = vld [vmem:[%s9072_s5 + $0x328] sm:$0xff] }
 0x3f4   : > { %v3793_v48 = vadd.f32 %v3783_v54, %v3701_v58  ;;  %v6278_v12 = vpop.f32.mrb[213].mxu1  ;;  %v3805_v56 = vmax.f32 %v3802_v38, 0.0  ;;  %v6394_v58 = vpack.c.bf16 %v3841_v60, %v3837_v34  ;;  %v5145_v38 = vld [vmem:[%s9072_s5 + $0x218] sm:$0xff]  ;;  %v5172_v34 = vld [vmem:[%s9072_s5 + $0x2f0] sm:$0xff]  ;;  %v5177_v60 = vld [vmem:[%s9072_s5 + $0x308] sm:$0xff] }
 0x3f5   : > { %v5149_v54 = vld [vmem:[%s9072_s5 + $0x238] sm:$0xff] }
 0x3f6   : > { %v3803_v2 = vadd.f32 %v5105_v49, %v3793_v48  ;;  %v3810_v18 = vrot.slane %v3805_v56, 6  ;;  %v6382_v48 = vpack.c.bf16 %v3847_v46, %v3843_v51  ;;  %v5180_v51 = vld [vmem:[%s9072_s5 + $0x320] sm:$0xff] }
 0x3f7   : > { %v3788_v59 = vpop.f32.mrb[214].mxu1 }
 0x3f8   : > { %v3806_v4 = vmax.f32 %v3803_v2, 0.0  ;;  %v3794_v24 = vadd.f32 %v3788_v59, %v3702_v36  ;;  %v6281_v52 = vpop.f32.mrb[215].mxu1  ;;  %v6396_v36 = vpack.c.bf16 %v3850_v47, %v3846_v13  ;;  %v5146_v2 = vld [vmem:[%s9072_s5 + $0x220] sm:$0xff]  ;;  %v6400_v59 = vpack.c.bf16 %v5147_v40, %v5143_v26  ;;  %v5183_v13 = vld [vmem:[%s9072_s5 + $0x338] sm:$0xff]  ;;  %v5185_v26 = vld [vmem:[%s9072_s5 + $0x348] sm:$0xff] }
 0x3f9   : > { %v5148_v52 = vld [vmem:[%s9072_s5 + $0x230] sm:$0xff]  ;;  %v5187_v40 = vld [vmem:[%s9072_s5 + $0x358] sm:$0xff] }
 0x3fa   : > { %v3811_v42 = vrot.slane %v3806_v4, 6  ;;  %v3804_v9 = vadd.f32 %v5105_v49, %v3794_v24  ;;  %v3849_v49 = vld [vmem:[%s9072_s5 + $0xf0] sm:$0xff] }
 0x3fb   : > { %v6398_v12 = vpack.c.bf16 %v3849_v49, %v3845_v39  ;;  %v5144_v24 = vld [vmem:[%s9072_s5 + $0x210] sm:$0xff] }
 0x3fc   : > { %v3812_v3 = vsel %vm1156_vm5, %v3810_v18, %v3811_v42  ;;  %v3807_v44 = vmax.f32 %v3804_v9, 0.0  ;;  %v5151_v18 = vld [vmem:[%s9072_s5 + $0x248] sm:$0xff]  ;;  %v5153_v9 = vld [vmem:[%s9072_s5 + $0x258] sm:$0xff]  ;;  %v5178_v39 = vld [vmem:[%s9072_s5 + $0x310] sm:$0xff] }
 0x3fd   : > { %v3814_v23 = vmax.f32 %v3805_v56, %v3812_v3  ;;  %v5142_v56 = vld [vmem:[%s9072_s5 + $0x200] sm:$0xff]  ;;  %v5155_v42 = vld [vmem:[%s9072_s5 + $0x268] sm:$0xff]  ;;  %v5157_v3 = vld [vmem:[%s9072_s5 + $0x278] sm:$0xff] }
 0x3fe   : > { %v4176_v27 = vrot.slane %v3807_v44, 6  ;;  %v6402_v44 = vpack.c.bf16 %v5146_v2, %v5142_v56  ;;  %v6404_v22 = vpack.c.bf16 %v5155_v42, %v5151_v18  ;;  %v5182_v49 = vld [vmem:[%s9072_s5 + $0x330] sm:$0xff]  ;;  %v5188_v56 = vld [vmem:[%s9072_s5 + $0x360] sm:$0xff]  ;;  %v5193_v18 = vld [vmem:[%s9072_s5 + $0x388] sm:$0xff] }
 0x3ff   : > { %v3816_v61 = vrot.slane %v3814_v23, 1  ;;  %v5197_v42 = vld [vmem:[%s9072_s5 + $0x3a8] sm:$0xff] }
 0x400   : > { %v8534_v33 = vmax.f32 %v3806_v4, %v4176_v27  ;;  %v6416_v4 = vpack.c.bf16 %v5149_v54, %v5145_v38  ;;  %v5150_v27 = vld [vmem:[%s9072_s5 + $0x240] sm:$0xff]  ;;  %v5191_v38 = vld [vmem:[%s9072_s5 + $0x378] sm:$0xff] }
 0x401   : > { %v8545_v45 = vmax.f32 %v3814_v23, %v3816_v61  ;;  %v6418_v23 = vpack.c.bf16 %v5148_v52, %v5144_v24  ;;  %v6420_v61 = vpack.c.bf16 %v5157_v3, %v5153_v9  ;;  %v5186_v24 = vld [vmem:[%s9072_s5 + $0x350] sm:$0xff]  ;;  %v5195_v9 = vld [vmem:[%s9072_s5 + $0x398] sm:$0xff] }
 0x402   : > { %v4180_v31 = vrot.slane %v8534_v33, 1  ;;  %v5190_v52 = vld [vmem:[%s9072_s5 + $0x370] sm:$0xff]  ;;  %v5199_v3 = vld [vmem:[%s9072_s5 + $0x3b8] sm:$0xff] }
 0x403   : > { %v3885_v62 = vrot.slane %v8545_v45, 2 }
 0x404   : > { %v8734_v46 = vmax.f32 %v8534_v33, %v4180_v31  ;;  %v5189_v33 = vld [vmem:[%s9072_s5 + $0x368] sm:$0xff] }
 0x405   : > { %5138 = vmatmul.mubr.msk.f32.vlgmr.msra.gmra.mrb[216].mxu0 %vm3886_vm0, %v3885_v62  ;;  %5139 = vmatmul.mubr.msk.f32.vlgmr.msra.gmra.mrb[216].mxu1 %vm3886_vm0, %v3885_v62  ;;  %v6408_v62 = vpack.c.bf16 %v5163_v21, %v5159_v19  ;;  %v5201_v19 = vld [vmem:[%s9072_s5 + $0x3c8] sm:$0xff] }
 0x406   : > { %6371 = vmatpush1.bf16.msra.mxu0 %v6370_v53  ;;  %6387 = vmatpush1.bf16.msra.mxu1 %v6386_v25  ;;  %v6406_v53 = vpack.c.bf16 %v5154_v20, %v5150_v27  ;;  %v6422_v25 = vpack.c.bf16 %v5156_v29, %v5152_v50  ;;  %v4217_v2 = vrot.slane %v8734_v46, 4  ;;  %v5192_v27 = vld [vmem:[%s9072_s5 + $0x380] sm:$0xff]  ;;  %v5194_v50 = vld [vmem:[%s9072_s5 + $0x390] sm:$0xff]  ;;  %v5205_v21 = vld [vmem:[%s9072_s5 + $0x3e8] sm:$0xff] }
 0x407   : > { %6373 = vmatprep.subr.bf16.mxu0 %v6372_v11  ;;  %6389 = vmatprep.subr.bf16.mxu1 %v6388_v57  ;;  %v6424_v11 = vpack.c.bf16 %v5165_v55, %v5161_v6  ;;  %v5164_v57 = vld [vmem:[%s9072_s5 + $0x2b0] sm:$0xff]  ;;  %v5196_v20 = vld [vmem:[%s9072_s5 + $0x3a0] sm:$0xff]  ;;  %v5203_v6 = vld [vmem:[%s9072_s5 + $0x3d8] sm:$0xff] }
 0x408   : > { %4097 = vmatprep.mubr.f32.mxu0 %v6709_v0  ;;  %4168 = vmatprep.mubr.f32.mxu1 %v6709_v0  ;;  %v5198_v29 = vld [vmem:[%s9072_s5 + $0x3b0] sm:$0xff]  ;;  %v5207_v55 = vld [vmem:[%s9072_s5 + $0x3f8] sm:$0xff] }
 0x40a   : > { %6375 = vmatpush1.bf16.msra.mxu0 %v6374_v14  ;;  %6391 = vmatpush1.bf16.msra.mxu1 %v6390_v28  ;;  %v5166_v14 = vld [vmem:[%s9072_s5 + $0x2c0] sm:$0xff] }
 0x40b   : > { %6377 = vmatprep.subr.bf16.mxu0 %v6376_v7  ;;  %6393 = vmatprep.subr.bf16.mxu1 %v6392_v37  ;;  %v5170_v28 = vld [vmem:[%s9072_s5 + $0x2e0] sm:$0xff]  ;;  %v6428_v7 = vpack.c.bf16 %v5173_v41, %v5169_v63  ;;  %v5168_v37 = vld [vmem:[%s9072_s5 + $0x2d0] sm:$0xff]  ;;  %v4627_v63 = vld [vmem:[%s9074_s7 + $0x188] sm:$0xff]  ;;  %v6446_v41 = vpack.c.bf16 %v5204_v32, %v5200_v8 }
 0x40c   : > { %v6414_v47 = vpack.c.bf16 %v5170_v28, %v5166_v14  ;;  %v4579_v14 = vld [vmem:[%s9074_s7 + $0x8] sm:$0xff]  ;;  %v6496_v31 = vpack.c.bf16 %v4627_v63, %v4626_v30  ;;  %v4618_v32 = vld [vmem:[%s9074_s7 + $0x140] sm:$0xff]  ;;  %v4588_v63 = vld [vmem:[%s9074_s7 + $0x50] sm:$0xff] }
 0x40e   : > { %6379 = vmatpush1.bf16.msra.mxu0 %v6378_v15  ;;  %6395 = vmatpush1.bf16.msra.mxu1 %v6394_v58  ;;  %v6430_v15 = vpack.c.bf16 %v5172_v34, %v5168_v37  ;;  %v5176_v58 = vld [vmem:[%s9072_s5 + $0x300] sm:$0xff]  ;;  %v4596_v37 = vld [vmem:[%s9074_s7 + $0x90] sm:$0xff]  ;;  %v4597_v34 = vld [vmem:[%s9074_s7 + $0x98] sm:$0xff] }
 0x40f   : > { %6381 = vmatprep.subr.bf16.mxu0 %v6380_v35  ;;  %6397 = vmatprep.subr.bf16.mxu1 %v6396_v36  ;;  %v6432_v35 = vpack.c.bf16 %v5181_v1, %v5177_v60  ;;  %v6448_v36 = vpack.c.bf16 %v5183_v13, %v5179_v10  ;;  %v6434_v54 = vpack.c.bf16 %v5180_v51, %v5176_v58  ;;  %v4628_v60 = vld [vmem:[%s9074_s7 + $0x190] sm:$0xff]  ;;  %v4629_v1 = vld [vmem:[%s9074_s7 + $0x198] sm:$0xff]  ;;  %v4399_v58 = vrot.slane %v8734_v46, 6  ;;  %v4599_v46 = vld [vmem:[%s9074_s7 + $0xa8] sm:$0xff] }
 0x410   : > { %v6468_v51 = vpack.c.bf16 %v4597_v34, %v4596_v37  ;;  %v4639_v37 = vld [vmem:[%s9074_s7 + $0x1e8] sm:$0xff] }
 0x412   : > { %6383 = vmatpush1.bf16.msra.mxu0 %v6382_v48  ;;  %6399 = vmatpush1.bf16.msra.mxu1 %v6398_v12  ;;  %v6450_v48 = vpack.c.bf16 %v5182_v49, %v5178_v39  ;;  %v5184_v12 = vld [vmem:[%s9072_s5 + $0x340] sm:$0xff]  ;;  %v4613_v39 = vld [vmem:[%s9074_s7 + $0x118] sm:$0xff] }
 0x413   : > { %6401 = vmatprep.subr.bf16.mxu0 %v6400_v59  ;;  %6417 = vmatprep.subr.bf16.mxu1 %v6416_v4  ;;  %v6436_v59 = vpack.c.bf16 %v5189_v33, %v5185_v26  ;;  %v6452_v4 = vpack.c.bf16 %v5191_v38, %v5187_v40  ;;  %v4598_v49 = vld [vmem:[%s9074_s7 + $0xa0] sm:$0xff]  ;;  %v4631_v33 = vld [vmem:[%s9074_s7 + $0x1a8] sm:$0xff] }
 0x414   : > { %v4630_v26 = vld [vmem:[%s9074_s7 + $0x1a0] sm:$0xff] }
 0x415   : > { %5140 = vmatmul.mubr.msk.f32.vlgmr.msra.gmra.mrb[216].mxu0 %vm3886_vm0, %v8545_v45  ;;  %5141 = vmatmul.mubr.msk.f32.vlgmr.msra.gmra.mrb[216].mxu1 %vm3886_vm0, %v8545_v45  ;;  %v5160_v45 = vld [vmem:[%s9072_s5 + $0x290] sm:$0xff] }
 0x416   : > { %6403 = vmatpush1.bf16.msra.mxu0 %v6402_v44  ;;  %6419 = vmatpush1.bf16.msra.mxu1 %v6418_v23  ;;  %v6426_v17 = vpack.c.bf16 %v5164_v57, %v5160_v45  ;;  %v6438_v44 = vpack.c.bf16 %v5188_v56, %v5184_v12  ;;  %v6454_v23 = vpack.c.bf16 %v5190_v52, %v5186_v24  ;;  %v5206_v45 = vld [vmem:[%s9072_s5 + $0x3f0] sm:$0xff]  ;;  %v4594_v57 = vld [vmem:[%s9074_s7 + $0x80] sm:$0xff]  ;;  %v4601_v24 = vld [vmem:[%s9074_s7 + $0xb8] sm:$0xff] }
 0x417   : > { %6405 = vmatprep.subr.bf16.mxu0 %v6404_v22  ;;  %6421 = vmatprep.subr.bf16.mxu1 %v6420_v61  ;;  %v6440_v22 = vpack.c.bf16 %v5197_v42, %v5193_v18  ;;  %v6456_v61 = vpack.c.bf16 %v5199_v3, %v5195_v9  ;;  %v6464_v28 = vpack.c.bf16 %v4595_v5, %v4594_v57  ;;  %v4632_v52 = vld [vmem:[%s9074_s7 + $0x1b0] sm:$0xff]  ;;  %v4633_v18 = vld [vmem:[%s9074_s7 + $0x1b8] sm:$0xff] }
 0x418   : > { %4284 = vmatprep.mubr.f32.mxu0 %v6709_v0  ;;  %4355 = vmatprep.mubr.f32.mxu1 %v6709_v0  ;;  %v6472_v12 = vpack.c.bf16 %v4599_v46, %v4598_v49  ;;  %v6504_v56 = vpack.c.bf16 %v4631_v33, %v4630_v26  ;;  %v4584_v3 = vld [vmem:[%s9074_s7 + $0x30] sm:$0xff]  ;;  %v4637_v57 = vld [vmem:[%s9074_s7 + $0x1d8] sm:$0xff] }
 0x419   : > { %v4640_v49 = vld [vmem:[%s9074_s7 + $0x1f0] sm:$0xff]  ;;  %v4641_v26 = vld [vmem:[%s9074_s7 + $0x1f8] sm:$0xff] }
 0x41a   : > { %6407 = vmatpush1.bf16.msra.mxu0 %v6406_v53  ;;  %6423 = vmatpush1.bf16.msra.mxu1 %v6422_v25  ;;  %v6442_v53 = vpack.c.bf16 %v5196_v20, %v5192_v27  ;;  %v6458_v25 = vpack.c.bf16 %v5198_v29, %v5194_v50  ;;  %v6508_v27 = vpack.c.bf16 %v4633_v18, %v4632_v52  ;;  %v4616_v20 = vld [vmem:[%s9074_s7 + $0x130] sm:$0xff]  ;;  %v4603_v50 = vld [vmem:[%s9074_s7 + $0xc8] sm:$0xff]  ;;  %v4634_v29 = vld [vmem:[%s9074_s7 + $0x1c0] sm:$0xff] }
 0x41b   : > { %6409 = vmatprep.subr.bf16.mxu0 %v6408_v62  ;;  %6425 = vmatprep.subr.bf16.mxu1 %v6424_v11  ;;  %v6444_v62 = vpack.c.bf16 %v5205_v21, %v5201_v19  ;;  %v6460_v11 = vpack.c.bf16 %v5207_v55, %v5203_v6  ;;  %v4635_v19 = vld [vmem:[%s9074_s7 + $0x1c8] sm:$0xff]  ;;  %v4586_v55 = vld [vmem:[%s9074_s7 + $0x40] sm:$0xff]  ;;  %v4592_v33 = vld [vmem:[%s9074_s7 + $0x70] sm:$0xff] }
 0x41c   : > { %v6512_v8 = vpack.c.bf16 %v4635_v19, %v4634_v29  ;;  %v4548_v52 = vld [vmem:[%s9073_s6] sm:$0xf] }
 0x41e   : > { %6411 = vmatpush1.bf16.msra.mxu0 %v6410_v16  ;;  %6427 = vmatpush1.bf16.msra.mxu1 %v6426_v17  ;;  %v4578_v17 = vld [vmem:[%s9074_s7] sm:$0xff] }
 0x41f   : > { %6413 = vmatprep.subr.bf16.mxu0 %v6412_v43  ;;  %6429 = vmatprep.subr.bf16.mxu1 %v6428_v7  ;;  %v4610_v43 = vld [vmem:[%s9074_s7 + $0x100] sm:$0xff]  ;;  %v4611_v7 = vld [vmem:[%s9074_s7 + $0x108] sm:$0xff]  ;;  %v6466_v10 = vpack.c.bf16 %v4579_v14, %v4578_v17  ;;  %v4620_v14 = vld [vmem:[%s9074_s7 + $0x150] sm:$0xff] }
 0x420   : > { %v6498_v13 = vpack.c.bf16 %v4611_v7, %v4610_v43  ;;  %v4607_v43 = vld [vmem:[%s9074_s7 + $0xe8] sm:$0xff]  ;;  %v4638_v7 = vld [vmem:[%s9074_s7 + $0x1e0] sm:$0xff] }
 0x422   : > { %6415 = vmatpush1.bf16.msra.mxu0 %v6414_v47  ;;  %6431 = vmatpush1.bf16.msra.mxu1 %v6430_v15  ;;  %v4580_v47 = vld [vmem:[%s9074_s7 + $0x10] sm:$0xff]  ;;  %v4581_v15 = vld [vmem:[%s9074_s7 + $0x18] sm:$0xff] }
 0x423   : > { %6433 = vmatprep.subr.bf16.mxu0 %v6432_v35  ;;  %6449 = vmatprep.subr.bf16.mxu1 %v6448_v36  ;;  %v6500_v35 = vpack.c.bf16 %v4629_v1, %v4628_v60  ;;  %v4612_v36 = vld [vmem:[%s9074_s7 + $0x110] sm:$0xff]  ;;  %v6470_v40 = vpack.c.bf16 %v4581_v15, %v4580_v47  ;;  %v4591_v47 = vld [vmem:[%s9074_s7 + $0x68] sm:$0xff] }
 0x424   : > { %v6502_v38 = vpack.c.bf16 %v4613_v39, %v4612_v36  ;;  %v4608_v36 = vld [vmem:[%s9074_s7 + $0xf0] sm:$0xff]  ;;  %v4609_v39 = vld [vmem:[%s9074_s7 + $0xf8] sm:$0xff] }
 0x425   : > { %5174 = vmatmul.mubr.msk.f32.vlgmr.msra.gmra.mrb[216].mxu0 %vm3886_vm0, %v4217_v2  ;;  %5175 = vmatmul.mubr.msk.f32.vlgmr.msra.gmra.mrb[216].mxu1 %vm3886_vm0, %v4217_v2  ;;  %v4614_v2 = vld [vmem:[%s9074_s7 + $0x120] sm:$0xff]  ;;  %v6492_v46 = vpack.c.bf16 %v4609_v39, %v4608_v36 }
 0x426   : > { %6435 = vmatpush1.bf16.msra.mxu0 %v6434_v54  ;;  %6451 = vmatpush1.bf16.msra.mxu1 %v6450_v48  ;;  %v4582_v54 = vld [vmem:[%s9074_s7 + $0x20] sm:$0xff]  ;;  %v4583_v48 = vld [vmem:[%s9074_s7 + $0x28] sm:$0xff] }
 0x427   : > { %6437 = vmatprep.subr.bf16.mxu0 %v6436_v59  ;;  %6453 = vmatprep.subr.bf16.mxu1 %v6452_v4  ;;  %v4615_v59 = vld [vmem:[%s9074_s7 + $0x128] sm:$0xff]  ;;  %v4600_v4 = vld [vmem:[%s9074_s7 + $0xb0] sm:$0xff]  ;;  %v6474_v42 = vpack.c.bf16 %v4583_v48, %v4582_v54 }
 0x428   : > { %4466 = vmatprep.mubr.f32.mxu0 %v6709_v0  ;;  %4537 = vmatprep.mubr.f32.mxu1 %v6709_v0  ;;  %v5202_v0 = vld [vmem:[%s9072_s5 + $0x3d0] sm:$0xff]  ;;  %v6506_v9 = vpack.c.bf16 %v4615_v59, %v4614_v2  ;;  %v4550_v2 = vlaneseq }
 0x429   : > { %v6462_v16 = vpack.c.bf16 %v5206_v45, %v5202_v0  ;;  %v4605_v0 = vld [vmem:[%s9074_s7 + $0xd8] sm:$0xff]  ;;  %v4636_v45 = vld [vmem:[%s9074_s7 + $0x1d0] sm:$0xff] }
 0x42a   : > { %6439 = vmatpush1.bf16.msra.mxu0 %v6438_v44  ;;  %6455 = vmatpush1.bf16.msra.mxu1 %v6454_v23  ;;  %v4585_v44 = vld [vmem:[%s9074_s7 + $0x38] sm:$0xff]  ;;  %v6476_v23 = vpack.c.bf16 %v4601_v24, %v4600_v4  ;;  %v6516_v17 = vpack.c.bf16 %v4637_v57, %v4636_v45  ;;  %v4624_v48 = vld [vmem:[%s9074_s7 + $0x170] sm:$0xff]  ;;  %v4551_v59 = vshrl.u32 %v4550_v2, 7 }
 0x42b   : > { %6441 = vmatprep.subr.bf16.mxu0 %v6440_v22  ;;  %6457 = vmatprep.subr.bf16.mxu1 %v6456_v61  ;;  %v4617_v22 = vld [vmem:[%s9074_s7 + $0x138] sm:$0xff]  ;;  %v4602_v61 = vld [vmem:[%s9074_s7 + $0xc0] sm:$0xff]  ;;  %v6478_v21 = vpack.c.bf16 %v4585_v44, %v4584_v3 }
 0x42c   : > { %v6510_v6 = vpack.c.bf16 %v4617_v22, %v4616_v20  ;;  %v4552_v4 = vsub.s32 0, %v4551_v59  ;;  %v4560_v24 = vsub.s32 2, %v4551_v59  ;;  %v4556_v18 = vsub.s32 1, %v4551_v59 }
 0x42e   : > { %6443 = vmatpush1.bf16.msra.mxu0 %v6442_v53  ;;  %6459 = vmatpush1.bf16.msra.mxu1 %v6458_v25  ;;  %v4587_v53 = vld [vmem:[%s9074_s7 + $0x48] sm:$0xff]  ;;  %v6480_v25 = vpack.c.bf16 %v4603_v50, %v4602_v61  ;;  %v4561_v3 = vrot.slane %v4548_v52, %v4560_v24  ;;  %v4557_v44 = vrot.slane %v4548_v52, %v4556_v18 }
 0x42f   : > { %6445 = vmatprep.subr.bf16.mxu0 %v6444_v62  ;;  %6461 = vmatprep.subr.bf16.mxu1 %v6460_v11  ;;  %v4619_v62 = vld [vmem:[%s9074_s7 + $0x148] sm:$0xff]  ;;  %v4604_v11 = vld [vmem:[%s9074_s7 + $0xd0] sm:$0xff]  ;;  %v6482_v5 = vpack.c.bf16 %v4587_v53, %v4586_v55 }
 0x430   : > { %v6514_v30 = vpack.c.bf16 %v4619_v62, %v4618_v32  ;;  %v4642_v62 = vld [vmem:[%s9075_s8] sm:$0x1] }
 0x432   : > { %6447 = vmatpush1.bf16.msra.mxu0 %v6446_v41  ;;  %6463 = vmatpush1.bf16.msra.mxu1 %v6462_v16  ;;  %v4589_v41 = vld [vmem:[%s9074_s7 + $0x58] sm:$0xff]  ;;  %v6484_v16 = vpack.c.bf16 %v4605_v0, %v4604_v11 }
 0x433   : > { %6465 = vmatprep.subr.bf16.mxu0 %v6464_v28  ;;  %6497 = vmatprep.subr.bf16.mxu1 %v6496_v31  ;;  %v4621_v28 = vld [vmem:[%s9074_s7 + $0x158] sm:$0xff]  ;;  %v4606_v31 = vld [vmem:[%s9074_s7 + $0xe0] sm:$0xff]  ;;  %v6486_v34 = vpack.c.bf16 %v4589_v41, %v4588_v63 }
 0x434   : > { %v6518_v60 = vpack.c.bf16 %v4621_v28, %v4620_v14  ;;  %v6488_v1 = vpack.c.bf16 %v4607_v43, %v4606_v31 }
 0x435   : > { %5208 = vmatmul.mubr.msk.f32.vlgmr.msra.gmra.mrb[216].mxu0 %vm3886_vm0, %v4399_v58  ;;  %5209 = vmatmul.mubr.msk.f32.vlgmr.msra.gmra.mrb[216].mxu1 %vm3886_vm0, %v4399_v58  ;;  %v4622_v58 = vld [vmem:[%s9074_s7 + $0x160] sm:$0xff] }
 0x436   : > { %6467 = vmatpush3.bf16.msra.mxu0 %v6466_v10  ;;  %6499 = vmatpush3.bf16.msra.mxu1 %v6498_v13  ;;  %v6520_v10 = vpack.c.bf16 %v4639_v37, %v4638_v7  ;;  %v4590_v13 = vld [vmem:[%s9074_s7 + $0x60] sm:$0xff] }
 0x437   : > { %6469 = vmatprep.subr.bf16.mxu0 %v6468_v51  ;;  %6501 = vmatprep.subr.bf16.mxu1 %v6500_v35  ;;  %v6490_v15 = vpack.c.bf16 %v4591_v47, %v4590_v13  ;;  %v4623_v51 = vld [vmem:[%s9074_s7 + $0x168] sm:$0xff] }
 0x438   : > { %v6522_v35 = vpack.c.bf16 %v4623_v51, %v4622_v58 }
 0x43a   : > { %6471 = vmatpush3.bf16.msra.mxu0 %v6470_v40  ;;  %6503 = vmatpush3.bf16.msra.mxu1 %v6502_v38  ;;  %v4593_v40 = vld [vmem:[%s9074_s7 + $0x78] sm:$0xff]  ;;  %v6524_v38 = vpack.c.bf16 %v4641_v26, %v4640_v49 }
 0x43b   : > { %6473 = vmatprep.subr.bf16.mxu0 %v6472_v12  ;;  %6505 = vmatprep.subr.bf16.mxu1 %v6504_v56  ;;  %v6494_v54 = vpack.c.bf16 %v4593_v40, %v4592_v33  ;;  %v4625_v12 = vld [vmem:[%s9074_s7 + $0x178] sm:$0xff] }
 0x43c   : > { %v6526_v56 = vpack.c.bf16 %v4625_v12, %v4624_v48 }
 0x43e   : > { %6475 = vmatpush3.bf16.msra.mxu0 %v6474_v42  ;;  %6507 = vmatpush3.bf16.msra.mxu1 %v6506_v9  ;;  %v4564_v42 = vsub.s32 3, %v4551_v59  ;;  %v4553_v9 = vrot.slane %v4548_v52, %v4552_v4 }
 0x43f   : > { %6477 = vmatprep.subr.bf16.mxu0 %v6476_v23  ;;  %6509 = vmatprep.subr.bf16.mxu1 %v6508_v27 }
 0x440   : > { %v4565_v23 = vrot.slane %v4548_v52, %v4564_v42 }
 0x442   : > { %6479 = vmatpush3.bf16.msra.mxu0 %v6478_v21  ;;  %6511 = vmatpush3.bf16.msra.mxu1 %v6510_v6 }
 0x443   : > { %6481 = vmatprep.subr.bf16.mxu0 %v6480_v25  ;;  %6513 = vmatprep.subr.bf16.mxu1 %v6512_v8 }
 0x446   : > { %6483 = vmatpush3.bf16.msra.mxu0 %v6482_v5  ;;  %6515 = vmatpush3.bf16.msra.mxu1 %v6514_v30 }
 0x447   : > { %6485 = vmatprep.subr.bf16.mxu0 %v6484_v16  ;;  %6517 = vmatprep.subr.bf16.mxu1 %v6516_v17 }
 0x44a   : > { %6487 = vmatpush3.bf16.msra.mxu0 %v6486_v34  ;;  %6519 = vmatpush3.bf16.msra.mxu1 %v6518_v60 }
 0x44b   : > { %6489 = vmatprep.subr.bf16.mxu0 %v6488_v1  ;;  %6521 = vmatprep.subr.bf16.mxu1 %v6520_v10 }
 0x44e   : > { %6491 = vmatpush3.bf16.msra.mxu0 %v6490_v15  ;;  %6523 = vmatpush3.bf16.msra.mxu1 %v6522_v35 }
 0x44f   : > { %6493 = vmatprep.subr.bf16.mxu0 %v6492_v46  ;;  %6525 = vmatprep.subr.bf16.mxu1 %v6524_v38 }
 0x452   : > { %6495 = vmatpush3.bf16.msra.mxu0 %v6494_v54  ;;  %6527 = vmatpush3.bf16.msra.mxu1 %v6526_v56 }
 0x508   : > { %v4468_v27 = vpop.f32.mrb[216].mxu0  ;;  %v4539_v20 = vpop.f32.mrb[216].mxu1 }
 0x509   : > { %v4570_v22 = vadd.f32 %v4553_v9, %v4468_v27  ;;  %v4572_v61 = vadd.f32 %v4561_v3, %v4539_v20  ;;  %v4470_v50 = vpop.f32.mrb[217].mxu0  ;;  %v4541_v29 = vpop.f32.mrb[217].mxu1 }
 0x50a   : > { %v4571_v19 = vadd.f32 %v4557_v44, %v4470_v50  ;;  %v4573_v21 = vadd.f32 %v4565_v23, %v4541_v29 }
 0x50b   : > { %v4574_v53 = vmax.f32 %v4570_v22, 0.0  ;;  %v4576_v25 = vmax.f32 %v4572_v61, 0.0 }
 0x50c   : > { %v4575_v6 = vmax.f32 %v4571_v19, 0.0  ;;  %v4577_v55 = vmax.f32 %v4573_v21, 0.0 }
 0x50e   : > { %4707 = vmatprep.mubr.f32.mxu0 %v4575_v6  ;;  %4777 = vmatprep.mubr.f32.mxu1 %v4577_v55 }
 0x50f   : > { %4708 = vmatmul.mubr.f32.vlgmr.msra.gmra.mrb[218].mxu0 %v4574_v53  ;;  %4778 = vmatmul.mubr.f32.vlgmr.msra.gmra.mrb[218].mxu1 %v4576_v25 }
 0x5e2   : > { %v5506_v8 = vpop.f32.mrb[218].mxu0  ;;  %v5541_v32 = vpop.f32.mrb[218].mxu1 }
 0x5e3   : > { %v5507_v11 = vpop.f32.mrb[219].mxu0  ;;  %v5542_v0 = vpop.f32.mrb[219].mxu1 }
 0x5e4   : > { %v5508_v45 = vadd.f32 %v5507_v11, %v5506_v8  ;;  %v5543_v57 = vadd.f32 %v5542_v0, %v5541_v32 }
 0x5e6   : > { %v4710_v5 = vadd.f32 %v5508_v45, %v4642_v62 }
 0x5e8   : > { %v4780_v30 = vadd.f32 %v5543_v57, %v4710_v5 }
 0x5ea   : > { %4783 = vst [vmem:[%s339_s26] sm:$0x1] %v4780_v30 }
 0x5eb   : > { %6651 = shalt.err (!%p6648_p7)
}
 0x5ec   : > { %s6652_s16 = scalar_lea.hbm %s9025_s23, 16  ;;  %s6656_s26 = scalar_lea.hbm %s9076_s9, 32 }
 0x5ed   : > { %p6653_p8 = scmp.ne.s32.totalorder %s9025_s23, %s6652_s16  ;;  %p6657_p1 = scmp.lt.u32.totalorder %s9025_s23, %s9076_s9 }
 0x5ee   : > { %p6658_p0 = scmp.lt.u32.totalorder %s6656_s26, %s6652_s16  ;;  %p6660_p6 = scmp.lt.u32.totalorder %s6652_s16, %s9025_s23 }
 0x5ef   : > { %p6654_p11 = pnand %p6653_p8, %p9087_p9 }
 0x5f0   : > { %p6659_p5 = por %p6658_p0, %p6657_p1 }
 0x5f1   : > { %p6655_p13 = pneg %p6654_p11 }
 0x5f2   : > { %p6661_p10 = por %p6660_p6, %p6659_p5 }
 0x5f4   : > { %p6662_p12 = pnand %p6661_p10, %p6655_p13 }
 0x5f6   : > { %6665 = shalt.err (!%p6662_p12)
}
 0x5f7   : > { %6545 = dma.vmem_to_hbm [thread:$0]  (%p9087_p9), %s9027_s28, 16, %s9025_s23, %s4785_s24  }
 0x5f8 PF: > { %p6557_p2 = scmp.ge.s32.totalorder %s6704_s12, 2  ;;  %s4809_s27 = sand.u32 1, %s6692_s30  }
 0x5f9   : > { %p9088_p3 = scmp.ne.s32.totalorder %s9081_s20, 0  ;;  %s4810_s13 = scalar_lea.sflag [#allocation5], %s4809_s27 }
 0x5fb   : > { %p6552_p4 = pnand %p6557_p2, %p9088_p3 }
 0x5fd   : > { %6687 = dma.done.wait (!%p6552_p4), %s4810_s13, 16  }
 0x5fe   : > { %6689 = vsyncadd (!%p6552_p4), %s4810_s13, 4294967280  ;;  %p20_p7 = scmp.ge.s32.totalorder %s6788_s15, 4   ;;  %s9089_s30 = smov %s6696_s10 }
 0x5ff   : > { %s9090_s10 = smov %s6700_s11  ;;  %s9091_s11 = smov %s6799_s18 }
 0x600   : > { %s9092_s12 = smov %s6788_s15  ;;  %22 = sbr.rel (!%p20_p7) target bundleno = 4 (0x4), region = 115 }
 0x607   :  { %4814 = vsyncpa [#allocation4], 1 }
 0x608   :  { %4816 = vsyncpa [#allocation4 + $0x1], 1 }
 0x609   :  { %4817 = vsyncpa [#allocation5], 1 }
 0x60a   :  { %4819 = vsyncpa [#allocation5 + $0x1], 1 }

</bundles_post_ra>
